<compile_context>
chip_gen: v6e
topology: v6e:2x2x1
jax: 0.10.0
libtpu: 0.0.40
codegen_flags: <defaults>
</compile_context>

<pallas_src>
import functools

import jax
import jax.numpy as jnp
from jax.experimental import pallas as pl
from jax.experimental.pallas import tpu as pltpu


_VMEM_LIMIT = 32 * 1024 * 1024   # safe on v5e/v6e, leaves headroom on v7x (64 MiB VMEM)


# ------------------------------ kernels -------------------------------------


def _gn_stats_kernel(x_ref, s_ref):
    """Accumulate per-channel (sum, sum_sq) over row tiles (GroupNorm-1 stats)."""
    r = pl.program_id(1)

    @pl.when(r == 0)
    def _init():
        s_ref[...] = jnp.zeros_like(s_ref)

    x = x_ref[0].astype(jnp.float32)
    x = x.reshape(-1, x.shape[-1])                      # (TH*W, C)
    s_ref[0] += jnp.stack([jnp.sum(x, axis=0), jnp.sum(x * x, axis=0)])


def _norm_silu_im2col(prev, main, nxt, scale, shift, r, nr, th, width, c):
    """GN-normalize + SiLU a haloed row tile, zero-pad it, build (TH*W, 9*C) patches."""
    a = jnp.concatenate([prev, main, nxt], axis=0).astype(jnp.float32)   # (TH+2, W, C)
    a = a * scale[None, None, :] + shift[None, None, :]
    a = a * jax.nn.sigmoid(a)                                            # SiLU (f32 VPU/EUP)

    # Halo rows fetched past the image edge stand in for the conv's zero padding.
    rows = jax.lax.broadcasted_iota(jnp.int32, (th + 2, 1, 1), 0)
    keep = jnp.logical_and(jnp.logical_or(rows > 0, r > 0),
                           jnp.logical_or(rows < th + 1, r < nr - 1))
    a = jnp.where(keep, a, 0.0)

    zcol = jnp.zeros((th + 2, 1, c), jnp.float32)
    ap = jnp.concatenate([zcol, a, zcol], axis=1).astype(jnp.bfloat16)   # (TH+2, W+2, C)

    taps = []
    for dy in range(3):                                  # tap order matches (3,3,Cin,Cout)
        for dx in range(3):                              # weights reshaped to (9*Cin, Cout)
            taps.append(jax.lax.slice(ap, (dy, dx, 0), (dy + th, dx + width, c)))
    return jnp.concatenate(taps, axis=-1).reshape(th * width, 9 * c)


def _gn_silu_conv1_kernel(xp_ref, xm_ref, xn_ref, sc_ref, sh_ref, w_ref, b_ref,
                          o_ref, st_ref, *, th, width, cin, cout):
    """Fused GN1-normalize + SiLU + 3x3 conv; also accumulates GN2 stats."""
    r = pl.program_id(1)
    nr = pl.num_programs(1)

    patches = _norm_silu_im2col(xp_ref[0], xm_ref[0], xn_ref[0],
                                sc_ref[0, 0], sh_ref[0, 0], r, nr, th, width, cin)
    y = jnp.dot(patches, w_ref[...], preferred_element_type=jnp.float32)  # K = 9*Cin
    y = y + b_ref[0].astype(jnp.float32)[None, :]                         # (TH*W, Cout)
    o_ref[0] = y.reshape(th, width, cout).astype(o_ref.dtype)

    # Per-channel partial sums for GroupNorm-2 (accumulated across row tiles).
    @pl.when(r == 0)
    def _init():
        st_ref[...] = jnp.zeros_like(st_ref)

    st_ref[0] += jnp.stack([jnp.sum(y, axis=0), jnp.sum(y * y, axis=0)])


def _make_gn_silu_conv2_kernel(th, width, cmid, cout, has_proj):
    """Fused GN2-normalize + SiLU + 3x3 conv + residual (identity or 1x1 proj)."""

    def kernel(*refs):
        if has_proj:
            (hp_ref, hm_ref, hn_ref, sc_ref, sh_ref, w_ref, b_ref,
             res_ref, wr_ref, br_ref, o_ref) = refs
        else:
            (hp_ref, hm_ref, hn_ref, sc_ref, sh_ref, w_ref, b_ref,
             res_ref, o_ref) = refs

        r = pl.program_id(1)
        nr = pl.num_programs(1)

        patches = _norm_silu_im2col(hp_ref[0], hm_ref[0], hn_ref[0],
                                    sc_ref[0, 0], sh_ref[0, 0], r, nr, th, width, cmid)
        y = jnp.dot(patches, w_ref[...], preferred_element_type=jnp.float32)
        y = y + b_ref[0].astype(jnp.float32)[None, :]

        res = res_ref[0].reshape(th * width, -1)
        if has_proj:
            y = y + jnp.dot(res.astype(jnp.bfloat16), wr_ref[...],
                            preferred_element_type=jnp.float32)
            y = y + br_ref[0].astype(jnp.float32)[None, :]
        else:
            y = y + res.astype(jnp.float32)

        o_ref[0] = y.reshape(th, width, cout).astype(o_ref.dtype)

    return kernel


# ------------------------------ wrappers ------------------------------------


def _pick_row_tile(h, width, cin, cout):
    """Largest divisor of H whose fused-conv working set fits a conservative budget."""
    budget = 6 * 1024 * 1024     # v7x guidance: keep live blocks well under VMEM

    def vmem_bytes(th):
        return ((th + 2) * width * cin * 4 * 2        # haloed input tile (x2 buffers)
                + th * width * 9 * cin * 2            # bf16 im2col patches
                + th * width * cout * 4 * 2           # f32 result + output tile
                + 9 * cin * cout * 2)                 # bf16 weights

    divisors = [t for t in range(1, h + 1) if h % t == 0]
    fitting = [t for t in divisors if vmem_bytes(t) <= budget]
    if not fitting:
        return 1
    multi = [t for t in fitting if h // t >= 2]       # >=2 row tiles -> DMA/compute overlap
    return max(multi) if multi else max(fitting)


def _gn_stats(x, th):
    B, H, W, C = x.shape
    return pl.pallas_call(
        _gn_stats_kernel,
        out_shape=jax.ShapeDtypeStruct((B, 2, C), jnp.float32),
        grid=(B, H // th),
        in_specs=[pl.BlockSpec((1, th, W, C), lambda b, r: (b, r, 0, 0))],
        out_specs=pl.BlockSpec((1, 2, C), lambda b, r: (b, 0, 0)),
        compiler_params=pltpu.CompilerParams(
            dimension_semantics=("parallel", "arbitrary"),
            vmem_limit_bytes=_VMEM_LIMIT),
    )(x)


def _gn_scale_shift(sums, gamma, beta, hw, groups, eps):
    """Turn per-channel (sum, sum_sq) into per-(batch, channel) scale/shift."""
    b, _, c = sums.shape
    cg = c // groups
    n = float(hw * cg)
    s1 = sums[:, 0, :].reshape(b, groups, cg).sum(-1)
    s2 = sums[:, 1, :].reshape(b, groups, cg).sum(-1)
    mean = s1 / n
    var = jnp.maximum(s2 / n - mean * mean, 0.0)          # guard E[x^2]-E[x]^2 cancellation
    rstd = jax.lax.rsqrt(var + eps)
    mean_c = jnp.repeat(mean, cg, axis=1)                 # (B, C)
    rstd_c = jnp.repeat(rstd, cg, axis=1)
    scale = rstd_c * gamma[None, :]
    shift = beta[None, :] - mean_c * scale
    return scale[:, None, :], shift[:, None, :]           # (B, 1, C) each


def _gn_silu_conv1(x, scale, shift, w_k, bias, th):
    B, H, W, Cin = x.shape
    Cout = w_k.shape[-1]
    kern = functools.partial(_gn_silu_conv1_kernel, th=th, width=W, cin=Cin, cout=Cout)
    return pl.pallas_call(
        kern,
        out_shape=(jax.ShapeDtypeStruct((B, H, W, Cout), x.dtype),
                   jax.ShapeDtypeStruct((B, 2, Cout), jnp.float32)),
        grid=(B, H // th),
        in_specs=[
            # 1-row top/bottom halos (clamped at the image edge; zeroed in-kernel).
            pl.BlockSpec((1, 1, W, Cin), lambda b, r: (b, jnp.maximum(r * th - 1, 0), 0, 0)),
            pl.BlockSpec((1, th, W, Cin), lambda b, r: (b, r, 0, 0)),
            pl.BlockSpec((1, 1, W, Cin), lambda b, r: (b, jnp.minimum(r * th + th, H - 1), 0, 0)),
            pl.BlockSpec((1, 1, Cin), lambda b, r: (b, 0, 0)),
            pl.BlockSpec((1, 1, Cin), lambda b, r: (b, 0, 0)),
            pl.BlockSpec((9 * Cin, Cout), lambda b, r: (0, 0)),
            pl.BlockSpec((1, Cout), lambda b, r: (0, 0)),
        ],
        out_specs=(pl.BlockSpec((1, th, W, Cout), lambda b, r: (b, r, 0, 0)),
                   pl.BlockSpec((1, 2, Cout), lambda b, r: (b, 0, 0))),
        compiler_params=pltpu.CompilerParams(
            # row axis accumulates GN2 stats -> must stay "arbitrary"
            dimension_semantics=("parallel", "arbitrary"),
            vmem_limit_bytes=_VMEM_LIMIT),
    )(x, x, x, scale, shift, w_k, bias)


def _gn_silu_conv2(h, scale, shift, w_k, bias, res, w_res, b_res, th):
    B, H, W, Cmid = h.shape
    Cout = w_k.shape[-1]
    Cres = res.shape[-1]
    has_proj = w_res is not None
    kern = _make_gn_silu_conv2_kernel(th, W, Cmid, Cout, has_proj)

    in_specs = [
        pl.BlockSpec((1, 1, W, Cmid), lambda b, r: (b, jnp.maximum(r * th - 1, 0), 0, 0)),
        pl.BlockSpec((1, th, W, Cmid), lambda b, r: (b, r, 0, 0)),
        pl.BlockSpec((1, 1, W, Cmid), lambda b, r: (b, jnp.minimum(r * th + th, H - 1), 0, 0)),
        pl.BlockSpec((1, 1, Cmid), lambda b, r: (b, 0, 0)),
        pl.BlockSpec((1, 1, Cmid), lambda b, r: (b, 0, 0)),
        pl.BlockSpec((9 * Cmid, Cout), lambda b, r: (0, 0)),
        pl.BlockSpec((1, Cout), lambda b, r: (0, 0)),
        pl.BlockSpec((1, th, W, Cres), lambda b, r: (b, r, 0, 0)),
    ]
    args = [h, h, h, scale, shift, w_k, bias, res]
    if has_proj:
        in_specs += [pl.BlockSpec((Cres, Cout), lambda b, r: (0, 0)),
                     pl.BlockSpec((1, Cout), lambda b, r: (0, 0))]
        args += [w_res, b_res]

    return pl.pallas_call(
        kern,
        out_shape=jax.ShapeDtypeStruct((B, H, W, Cout), h.dtype),
        grid=(B, H // th),
        in_specs=in_specs,
        out_specs=pl.BlockSpec((1, th, W, Cout), lambda b, r: (b, r, 0, 0)),
        compiler_params=pltpu.CompilerParams(
            dimension_semantics=("parallel", "parallel"),   # both v7x TCs can split the grid
            vmem_limit_bytes=_VMEM_LIMIT),
    )(*args)


# --------------------------- full residual block ----------------------------


def init_params(key, in_channels, out_channels):
    ks = jax.random.split(key, 10)
    p = {
        "gn1_w": 1.0 + 0.1 * jax.random.normal(ks[0], (in_channels,), jnp.float32),
        "gn1_b": 0.1 * jax.random.normal(ks[1], (in_channels,), jnp.float32),
        "gn2_w": 1.0 + 0.1 * jax.random.normal(ks[2], (out_channels,), jnp.float32),
        "gn2_b": 0.1 * jax.random.normal(ks[3], (out_channels,), jnp.float32),
        # Conv weights in HWIO flattened to (9*Cin, Cout) for the tap-stacked matmul.
        "conv1_w": 0.05 * jax.random.normal(
            ks[4], (3, 3, in_channels, out_channels), jnp.float32
        ).reshape(9 * in_channels, out_channels),
        "conv1_b": 0.05 * jax.random.normal(ks[5], (1, out_channels), jnp.float32),
        "conv2_w": 0.05 * jax.random.normal(
            ks[6], (3, 3, out_channels, out_channels), jnp.float32
        ).reshape(9 * out_channels, out_channels),
        "conv2_b": 0.05 * jax.random.normal(ks[7], (1, out_channels), jnp.float32),
    }
    if in_channels != out_channels:
        p["res_w"] = 0.05 * jax.random.normal(ks[8], (in_channels, out_channels), jnp.float32)
        p["res_b"] = 0.05 * jax.random.normal(ks[9], (1, out_channels), jnp.float32)
    return p


@functools.partial(jax.jit, static_argnames=("in_channels", "out_channels", "groups", "eps"))
def vae_residual_block(x_nchw, params, *, in_channels, out_channels, groups=32, eps=1e-5):
    x = jnp.transpose(x_nchw, (0, 2, 3, 1))                  # NCHW -> NHWC
    B, H, W, Cin = x.shape
    Cout = out_channels
    th = _pick_row_tile(H, W, max(Cin, Cout), Cout)

    # GroupNorm-1 statistics: the only extra read pass over x.
    sums1 = _gn_stats(x, th)
    scale1, shift1 = _gn_scale_shift(sums1, params["gn1_w"], params["gn1_b"], H * W, groups, eps)

    # Fused: GN1-normalize + SiLU + conv1 (also accumulates GN2 stats).
    h1, sums2 = _gn_silu_conv1(x, scale1, shift1,
                               params["conv1_w"].astype(jnp.bfloat16), params["conv1_b"], th)
    scale2, shift2 = _gn_scale_shift(sums2, params["gn2_w"], params["gn2_b"], H * W, groups, eps)

    # Fused: GN2-normalize + SiLU + conv2 + residual (identity or 1x1 projection).
    if in_channels == out_channels:
        w_res = b_res = None
    else:
        w_res = params["res_w"].astype(jnp.bfloat16)
        b_res = params["res_b"]
    out = _gn_silu_conv2(h1, scale2, shift2,
                         params["conv2_w"].astype(jnp.bfloat16), params["conv2_b"],
                         x, w_res, b_res, th)
    return jnp.transpose(out, (0, 3, 1, 2))                  # NHWC -> NCHW


# ------------------------------ reference -----------------------------------


def _reference_block(x_nchw, params, in_channels, out_channels, groups=32, eps=1e-5):
    """Pure-JAX f32 reference mirroring the PyTorch module."""
    x = jnp.transpose(x_nchw, (0, 2, 3, 1)).astype(jnp.float32)

    def gn(v, gamma, beta):
        b, h, w, c = v.shape
        vg = v.reshape(b, h, w, groups, c // groups)
        mean = vg.mean(axis=(1, 2, 4), keepdims=True)
        var = jnp.square(vg - mean).mean(axis=(1, 2, 4), keepdims=True)
        vn = ((vg - mean) * jax.lax.rsqrt(var + eps)).reshape(b, h, w, c)
        return vn * gamma[None, None, None, :] + beta[None, None, None, :]

    def silu(v):
        return v * jax.nn.sigmoid(v)

    def conv3(v, w9, bias):
        cin, cout = v.shape[-1], w9.shape[-1]
        w = w9.reshape(3, 3, cin, cout)
        y = jax.lax.conv_general_dilated(
            v, w, window_strides=(1, 1), padding=((1, 1), (1, 1)),
            dimension_numbers=("NHWC", "HWIO", "NHWC"),
            precision=jax.lax.Precision.HIGHEST)
        return y + bias.reshape(1, 1, 1, cout)

    h = conv3(silu(gn(x, params["gn1_w"], params["gn1_b"])), params["conv1_w"], params["conv1_b"])
    h = silu(gn(h, params["gn2_w"], params["gn2_b"]))
    h = conv3(h, params["conv2_w"], params["conv2_b"])
    if in_channels == out_channels:
        res = x
    else:
        res = jnp.einsum("bhwc,cd->bhwd", x, params["res_w"],
                         precision=jax.lax.Precision.HIGHEST) + params["res_b"].reshape(1, 1, 1, -1)
    return jnp.transpose(h + res, (0, 3, 1, 2))


def _close(out, ref, tol=0.15):
    # Loose tolerance: kernel uses bf16 MXU operands with f32 accumulation.
    err = jnp.abs(out.astype(jnp.float32) - ref)
    return bool(jnp.all(err <= tol + tol * jnp.abs(ref)))


if __name__ == "__main__":
    key = jax.random.PRNGKey(0)
    k_x, k_p1, k_p2 = jax.random.split(key, 3)

    # GroupNorm(32, C) needs C % 32 == 0. 32 -> 64 exercises the 1x1-conv
    # residual projection; 32 -> 32 exercises the identity residual.
    B, H, W = 2, 16, 16
    x = jax.random.normal(k_x, (B, 32, H, W), jnp.float32)           # NCHW input

    p_proj = init_params(k_p1, 32, 64)
    out = jax.block_until_ready(vae_residual_block(x, p_proj, in_channels=32, out_channels=64))
    assert out.shape == (B, 64, H, W), out.shape
    assert _close(out, _reference_block(x, p_proj, 32, 64)), "projection-path mismatch"

    p_id = init_params(k_p2, 32, 32)
    out2 = jax.block_until_ready(vae_residual_block(x, p_id, in_channels=32, out_channels=32))
    assert out2.shape == (B, 32, H, W), out2.shape
    assert _close(out2, _reference_block(x, p_id, 32, 32)), "identity-path mismatch"

    print("KERNEL_OK")
</pallas_src>

<mosaic_0001>
module attributes {stable_mosaic.version = 11 : i64} {
  func.func @_gn_stats_kernel(%arg0: i32, %arg1: i32, %arg2: memref<1x8x16x32xf32, #tpu.memory_space<vmem>>, %arg3: memref<1x2x32xf32, #tpu.memory_space<vmem>>) attributes {dimension_semantics = [#tpu.dimension_semantics<parallel>, #tpu.dimension_semantics<arbitrary>], iteration_bounds = array<i64: 2, 2>, scalar_prefetch = 0 : i64, scratch_operands = 0 : i64, tpu.core_type = #tpu.core_type<tc>, window_params = [{transform_indices = @transform_0, window_bounds = array<i64: 1, 8, 16, 32>}, {transform_indices = @transform_1, window_bounds = array<i64: 1, 2, 32>}]} {
    %c0_i32 = arith.constant 0 : i32
    %0 = arith.cmpi eq, %arg1, %c0_i32 : i32
    %1 = arith.extui %0 : i1 to i32
    %c0_i32_0 = arith.constant 0 : i32
    %2 = arith.cmpi ne, %1, %c0_i32_0 : i32
    scf.if %2 {
      %cst_11 = arith.constant 0.000000e+00 : f32
      %18 = vector.broadcast %cst_11 : f32 to vector<1x2x32xf32>
      %c0_12 = arith.constant 0 : index
      %c0_13 = arith.constant 0 : index
      %c0_14 = arith.constant 0 : index
      %19 = vector.load %arg3[%c0_12, %c0_13, %c0_14] : memref<1x2x32xf32, #tpu.memory_space<vmem>>, vector<1x2x32xf32>
      tpu.vector_store %arg3[%c0_12, %c0_13, %c0_14], %18 {strides = array<i32>} : memref<1x2x32xf32, #tpu.memory_space<vmem>>, vector<1x2x32xf32>,
    } else {
    }
    %c0 = arith.constant 0 : index
    %c0_1 = arith.constant 0 : index
    %c0_2 = arith.constant 0 : index
    %c0_3 = arith.constant 0 : index
    %3 = vector.load %arg2[%c0, %c0_1, %c0_2, %c0_3] : memref<1x8x16x32xf32, #tpu.memory_space<vmem>>, vector<1x8x16x32xf32>
    %4 = vector.shape_cast %3 : vector<1x8x16x32xf32> to vector<8x16x32xf32>
    %5 = vector.shape_cast %4 : vector<8x16x32xf32> to vector<128x32xf32>
    %c0_4 = arith.constant 0 : index
    %c0_5 = arith.constant 0 : index
    %c0_6 = arith.constant 0 : index
    %6 = vector.load %arg3[%c0_4, %c0_5, %c0_6] : memref<1x2x32xf32, #tpu.memory_space<vmem>>, vector<1x2x32xf32>
    %7 = vector.shape_cast %6 : vector<1x2x32xf32> to vector<2x32xf32>
    %cst = arith.constant dense<0.000000e+00> : vector<32xf32>
    %8 = vector.multi_reduction <add>, %5, %cst [0] : vector<128x32xf32> to vector<32xf32>
    %9 = arith.mulf %5, %5 : vector<128x32xf32>
    %cst_7 = arith.constant dense<0.000000e+00> : vector<32xf32>
    %10 = vector.multi_reduction <add>, %9, %cst_7 [0] : vector<128x32xf32> to vector<32xf32>
    %11 = vector.shape_cast %8 : vector<32xf32> to vector<1x32xf32>
    %12 = vector.shape_cast %10 : vector<32xf32> to vector<1x32xf32>
    %13 = tpu.concatenate %11, %12 in 0 : vector<1x32xf32>, vector<1x32xf32> -> vector<2x32xf32>
    %14 = arith.addf %7, %13 : vector<2x32xf32>
    %c0_8 = arith.constant 0 : index
    %c0_9 = arith.constant 0 : index
    %c0_10 = arith.constant 0 : index
    %15 = vector.load %arg3[%c0_8, %c0_9, %c0_10] : memref<1x2x32xf32, #tpu.memory_space<vmem>>, vector<1x2x32xf32>
    %16 = vector.shape_cast %15 : vector<1x2x32xf32> to vector<2x32xf32>
    %17 = vector.shape_cast %14 : vector<2x32xf32> to vector<1x2x32xf32>
    tpu.vector_store %arg3[%c0_8, %c0_9, %c0_10], %17 {strides = array<i32>} : memref<1x2x32xf32, #tpu.memory_space<vmem>>, vector<1x2x32xf32>,
    return
  }
  func.func @transform_0(%arg0: i32, %arg1: i32) -> (i32, i32, i32, i32) {
    %c0_i32 = arith.constant 0 : i32
    %c0_i32_0 = arith.constant 0 : i32
    %c0_i32_1 = arith.constant 0 : i32
    return %arg0, %arg1, %c0_i32, %c0_i32_0 : i32, i32, i32, i32
  }
  func.func @transform_1(%arg0: i32, %arg1: i32) -> (i32, i32, i32) {
    %c0_i32 = arith.constant 0 : i32
    %c0_i32_0 = arith.constant 0 : i32
    %c0_i32_1 = arith.constant 0 : i32
    return %arg0, %c0_i32, %c0_i32_0 : i32, i32, i32
  }
}

module attributes {stable_mosaic.version = 11 : i64} {
  func.func @_gn_silu_conv1_kernel(%arg0: i32, %arg1: i32, %arg2: memref<1x1x16x32xf32, #tpu.memory_space<vmem>>, %arg3: memref<1x8x16x32xf32, #tpu.memory_space<vmem>>, %arg4: memref<1x1x16x32xf32, #tpu.memory_space<vmem>>, %arg5: memref<1x1x32xf32, #tpu.memory_space<vmem>>, %arg6: memref<1x1x32xf32, #tpu.memory_space<vmem>>, %arg7: memref<288x64xbf16, #tpu.memory_space<vmem>>, %arg8: memref<1x64xf32, #tpu.memory_space<vmem>>, %arg9: memref<1x8x16x64xf32, #tpu.memory_space<vmem>>, %arg10: memref<1x2x64xf32, #tpu.memory_space<vmem>>) attributes {dimension_semantics = [#tpu.dimension_semantics<parallel>, #tpu.dimension_semantics<arbitrary>], iteration_bounds = array<i64: 2, 2>, scalar_prefetch = 0 : i64, scratch_operands = 0 : i64, tpu.core_type = #tpu.core_type<tc>, window_params = [{transform_indices = @transform_0, window_bounds = array<i64: 1, 1, 16, 32>}, {transform_indices = @transform_1, window_bounds = array<i64: 1, 8, 16, 32>}, {transform_indices = @transform_2, window_bounds = array<i64: 1, 1, 16, 32>}, {transform_indices = @transform_3, window_bounds = array<i64: 1, 1, 32>}, {transform_indices = @transform_4, window_bounds = array<i64: 1, 1, 32>}, {pipeline_mode = #tpu.pipeline_mode<synchronous>, transform_indices = @transform_5, window_bounds = array<i64: 288, 64>}, {pipeline_mode = #tpu.pipeline_mode<synchronous>, transform_indices = @transform_6, window_bounds = array<i64: 1, 64>}, {transform_indices = @transform_7, window_bounds = array<i64: 1, 8, 16, 64>}, {transform_indices = @transform_8, window_bounds = array<i64: 1, 2, 64>}]} {
    %c0 = arith.constant 0 : index
    %c0_0 = arith.constant 0 : index
    %c0_1 = arith.constant 0 : index
    %c0_2 = arith.constant 0 : index
    %0 = vector.load %arg2[%c0, %c0_0, %c0_1, %c0_2] : memref<1x1x16x32xf32, #tpu.memory_space<vmem>>, vector<1x1x16x32xf32>
    %1 = vector.shape_cast %0 : vector<1x1x16x32xf32> to vector<1x16x32xf32>
    %c0_3 = arith.constant 0 : index
    %c0_4 = arith.constant 0 : index
    %c0_5 = arith.constant 0 : index
    %c0_6 = arith.constant 0 : index
    %2 = vector.load %arg3[%c0_3, %c0_4, %c0_5, %c0_6] : memref<1x8x16x32xf32, #tpu.memory_space<vmem>>, vector<1x8x16x32xf32>
    %3 = vector.shape_cast %2 : vector<1x8x16x32xf32> to vector<8x16x32xf32>
    %c0_7 = arith.constant 0 : index
    %c0_8 = arith.constant 0 : index
    %c0_9 = arith.constant 0 : index
    %c0_10 = arith.constant 0 : index
    %4 = vector.load %arg4[%c0_7, %c0_8, %c0_9, %c0_10] : memref<1x1x16x32xf32, #tpu.memory_space<vmem>>, vector<1x1x16x32xf32>
    %5 = vector.shape_cast %4 : vector<1x1x16x32xf32> to vector<1x16x32xf32>
    %c0_11 = arith.constant 0 : index
    %c0_12 = arith.constant 0 : index
    %c0_13 = arith.constant 0 : index
    %6 = vector.load %arg5[%c0_11, %c0_12, %c0_13] : memref<1x1x32xf32, #tpu.memory_space<vmem>>, vector<1x1x32xf32>
    %7 = vector.shape_cast %6 : vector<1x1x32xf32> to vector<32xf32>
    %c0_14 = arith.constant 0 : index
    %c0_15 = arith.constant 0 : index
    %c0_16 = arith.constant 0 : index
    %8 = vector.load %arg6[%c0_14, %c0_15, %c0_16] : memref<1x1x32xf32, #tpu.memory_space<vmem>>, vector<1x1x32xf32>
    %9 = vector.shape_cast %8 : vector<1x1x32xf32> to vector<32xf32>
    %10 = tpu.concatenate %1, %3, %5 in 0 : vector<1x16x32xf32>, vector<8x16x32xf32>, vector<1x16x32xf32> -> vector<10x16x32xf32>
    %11 = vector.shape_cast %7 : vector<32xf32> to vector<1x1x32xf32>
    %12 = vector.broadcast %11 : vector<1x1x32xf32> to vector<10x16x32xf32>
    %13 = arith.mulf %10, %12 : vector<10x16x32xf32>
    %14 = vector.shape_cast %9 : vector<32xf32> to vector<1x1x32xf32>
    %15 = vector.broadcast %14 : vector<1x1x32xf32> to vector<10x16x32xf32>
    %16 = arith.addf %13, %15 : vector<10x16x32xf32>
    %17 = arith.negf %16 : vector<10x16x32xf32>
    %18 = math.exp %17 : vector<10x16x32xf32>
    %cst = arith.constant 1.000000e+00 : f32
    %19 = vector.broadcast %cst : f32 to vector<10x16x32xf32>
    %20 = arith.addf %19, %18 : vector<10x16x32xf32>
    %21 = arith.divf %19, %20 : vector<10x16x32xf32>
    %22 = arith.mulf %16, %21 : vector<10x16x32xf32>
    %23 = tpu.iota {dimensions = array<i32: 0>} : vector<10x1x1xi32>
    %c0_i32 = arith.constant 0 : i32
    %24 = vector.broadcast %c0_i32 : i32 to vector<10x1x1xi32>
    %25 = arith.cmpi sgt, %23, %24 : vector<10x1x1xi32>
    %c0_i32_17 = arith.constant 0 : i32
    %26 = arith.cmpi sgt, %arg1, %c0_i32_17 : i32
    %27 = vector.broadcast %26 : i1 to vector<10x1x1xi1>
    %28 = arith.ori %25, %27 : vector<10x1x1xi1>
    %c9_i32 = arith.constant 9 : i32
    %29 = vector.broadcast %c9_i32 : i32 to vector<10x1x1xi32>
    %30 = arith.cmpi slt, %23, %29 : vector<10x1x1xi32>
    %c1_i32 = arith.constant 1 : i32
    %31 = arith.cmpi slt, %arg1, %c1_i32 : i32
    %32 = vector.broadcast %31 : i1 to vector<10x1x1xi1>
    %33 = arith.ori %30, %32 : vector<10x1x1xi1>
    %34 = arith.andi %28, %33 : vector<10x1x1xi1>
    %cst_18 = arith.constant 0.000000e+00 : f32
    %35 = vector.shape_cast %34 : vector<10x1x1xi1> to vector<10x1x1xi1>
    %36 = vector.broadcast %35 : vector<10x1x1xi1> to vector<10x16x32xi1>
    %37 = vector.broadcast %cst_18 : f32 to vector<10x16x32xf32>
    %38 = arith.select %36, %22, %37 : vector<10x16x32xi1>, vector<10x16x32xf32>
    %cst_19 = arith.constant 0.000000e+00 : f32
    %39 = vector.broadcast %cst_19 : f32 to vector<10x1x32xf32>
    %40 = tpu.concatenate %39, %38, %39 in 1 : vector<10x1x32xf32>, vector<10x16x32xf32>, vector<10x1x32xf32> -> vector<10x18x32xf32>
    %41 = arith.truncf %40 : vector<10x18x32xf32> to vector<10x18x32xbf16>
    %42 = vector.extract_strided_slice %41 {offsets = [0, 0, 0], sizes = [8, 16, 32], strides = [1, 1, 1]} : vector<10x18x32xbf16> to vector<8x16x32xbf16>
    %43 = vector.extract_strided_slice %41 {offsets = [0, 1, 0], sizes = [8, 16, 32], strides = [1, 1, 1]} : vector<10x18x32xbf16> to vector<8x16x32xbf16>
    %44 = vector.extract_strided_slice %41 {offsets = [0, 2, 0], sizes = [8, 16, 32], strides = [1, 1, 1]} : vector<10x18x32xbf16> to vector<8x16x32xbf16>
    %45 = vector.extract_strided_slice %41 {offsets = [1, 0, 0], sizes = [8, 16, 32], strides = [1, 1, 1]} : vector<10x18x32xbf16> to vector<8x16x32xbf16>
    %46 = vector.extract_strided_slice %41 {offsets = [1, 1, 0], sizes = [8, 16, 32], strides = [1, 1, 1]} : vector<10x18x32xbf16> to vector<8x16x32xbf16>
    %47 = vector.extract_strided_slice %41 {offsets = [1, 2, 0], sizes = [8, 16, 32], strides = [1, 1, 1]} : vector<10x18x32xbf16> to vector<8x16x32xbf16>
    %48 = vector.extract_strided_slice %41 {offsets = [2, 0, 0], sizes = [8, 16, 32], strides = [1, 1, 1]} : vector<10x18x32xbf16> to vector<8x16x32xbf16>
    %49 = vector.extract_strided_slice %41 {offsets = [2, 1, 0], sizes = [8, 16, 32], strides = [1, 1, 1]} : vector<10x18x32xbf16> to vector<8x16x32xbf16>
    %50 = vector.extract_strided_slice %41 {offsets = [2, 2, 0], sizes = [8, 16, 32], strides = [1, 1, 1]} : vector<10x18x32xbf16> to vector<8x16x32xbf16>
    %51 = tpu.concatenate %42, %43, %44, %45, %46, %47, %48, %49, %50 in 2 : vector<8x16x32xbf16>, vector<8x16x32xbf16>, vector<8x16x32xbf16>, vector<8x16x32xbf16>, vector<8x16x32xbf16>, vector<8x16x32xbf16>, vector<8x16x32xbf16>, vector<8x16x32xbf16>, vector<8x16x32xbf16> -> vector<8x16x288xbf16>
    %52 = vector.shape_cast %51 : vector<8x16x288xbf16> to vector<128x288xbf16>
    %c0_20 = arith.constant 0 : index
    %c0_21 = arith.constant 0 : index
    %53 = vector.load %arg7[%c0_20, %c0_21] : memref<288x64xbf16, #tpu.memory_space<vmem>>, vector<288x64xbf16>
    %cst_22 = arith.constant dense<0.000000e+00> : vector<128x64xf32>
    %54 = tpu.matmul %52, %53, %cst_22 {dimension_numbers = #tpu.dot_dimension_numbers<[1], [0], [0], [1], [0, 0, 1, 1], [], []>} : vector<128x288xbf16>, vector<288x64xbf16>, vector<128x64xf32> -> vector<128x64xf32>
    %c0_23 = arith.constant 0 : index
    %c0_24 = arith.constant 0 : index
    %55 = vector.load %arg8[%c0_23, %c0_24] : memref<1x64xf32, #tpu.memory_space<vmem>>, vector<1x64xf32>
    %56 = vector.shape_cast %55 : vector<1x64xf32> to vector<64xf32>
    %57 = vector.shape_cast %56 : vector<64xf32> to vector<1x64xf32>
    %58 = vector.broadcast %57 : vector<1x64xf32> to vector<128x64xf32>
    %59 = arith.addf %54, %58 : vector<128x64xf32>
    %60 = vector.shape_cast %59 : vector<128x64xf32> to vector<8x16x64xf32>
    %c0_25 = arith.constant 0 : index
    %c0_26 = arith.constant 0 : index
    %c0_27 = arith.constant 0 : index
    %c0_28 = arith.constant 0 : index
    %61 = vector.load %arg9[%c0_25, %c0_26, %c0_27, %c0_28] : memref<1x8x16x64xf32, #tpu.memory_space<vmem>>, vector<1x8x16x64xf32>
    %62 = vector.shape_cast %61 : vector<1x8x16x64xf32> to vector<8x16x64xf32>
    %63 = vector.shape_cast %60 : vector<8x16x64xf32> to vector<1x8x16x64xf32>
    tpu.vector_store %arg9[%c0_25, %c0_26, %c0_27, %c0_28], %63 {strides = array<i32>} : memref<1x8x16x64xf32, #tpu.memory_space<vmem>>, vector<1x8x16x64xf32>,
    %c0_i32_29 = arith.constant 0 : i32
    %64 = arith.cmpi eq, %arg1, %c0_i32_29 : i32
    %65 = arith.extui %64 : i1 to i32
    %c0_i32_30 = arith.constant 0 : i32
    %66 = arith.cmpi ne, %65, %c0_i32_30 : i32
    scf.if %66 {
      %cst_39 = arith.constant 0.000000e+00 : f32
      %79 = vector.broadcast %cst_39 : f32 to vector<1x2x64xf32>
      %c0_40 = arith.constant 0 : index
      %c0_41 = arith.constant 0 : index
      %c0_42 = arith.constant 0 : index
      %80 = vector.load %arg10[%c0_40, %c0_41, %c0_42] : memref<1x2x64xf32, #tpu.memory_space<vmem>>, vector<1x2x64xf32>
      tpu.vector_store %arg10[%c0_40, %c0_41, %c0_42], %79 {strides = array<i32>} : memref<1x2x64xf32, #tpu.memory_space<vmem>>, vector<1x2x64xf32>,
    } else {
    }
    %c0_31 = arith.constant 0 : index
    %c0_32 = arith.constant 0 : index
    %c0_33 = arith.constant 0 : index
    %67 = vector.load %arg10[%c0_31, %c0_32, %c0_33] : memref<1x2x64xf32, #tpu.memory_space<vmem>>, vector<1x2x64xf32>
    %68 = vector.shape_cast %67 : vector<1x2x64xf32> to vector<2x64xf32>
    %cst_34 = arith.constant dense<0.000000e+00> : vector<64xf32>
    %69 = vector.multi_reduction <add>, %59, %cst_34 [0] : vector<128x64xf32> to vector<64xf32>
    %70 = arith.mulf %59, %59 : vector<128x64xf32>
    %cst_35 = arith.constant dense<0.000000e+00> : vector<64xf32>
    %71 = vector.multi_reduction <add>, %70, %cst_35 [0] : vector<128x64xf32> to vector<64xf32>
    %72 = vector.shape_cast %69 : vector<64xf32> to vector<1x64xf32>
    %73 = vector.shape_cast %71 : vector<64xf32> to vector<1x64xf32>
    %74 = tpu.concatenate %72, %73 in 0 : vector<1x64xf32>, vector<1x64xf32> -> vector<2x64xf32>
    %75 = arith.addf %68, %74 : vector<2x64xf32>
    %c0_36 = arith.constant 0 : index
    %c0_37 = arith.constant 0 : index
    %c0_38 = arith.constant 0 : index
    %76 = vector.load %arg10[%c0_36, %c0_37, %c0_38] : memref<1x2x64xf32, #tpu.memory_space<vmem>>, vector<1x2x64xf32>
    %77 = vector.shape_cast %76 : vector<1x2x64xf32> to vector<2x64xf32>
    %78 = vector.shape_cast %75 : vector<2x64xf32> to vector<1x2x64xf32>
    tpu.vector_store %arg10[%c0_36, %c0_37, %c0_38], %78 {strides = array<i32>} : memref<1x2x64xf32, #tpu.memory_space<vmem>>, vector<1x2x64xf32>,
    return
  }
  func.func @transform_0(%arg0: i32, %arg1: i32) -> (i32, i32, i32, i32) {
    %c8_i32 = arith.constant 8 : i32
    %0 = arith.muli %arg1, %c8_i32 : i32
    %c1_i32 = arith.constant 1 : i32
    %1 = arith.subi %0, %c1_i32 : i32
    %c0_i32 = arith.constant 0 : i32
    %2 = arith.maxsi %1, %c0_i32 : i32
    %c0_i32_0 = arith.constant 0 : i32
    %c0_i32_1 = arith.constant 0 : i32
    %c0_i32_2 = arith.constant 0 : i32
    return %arg0, %2, %c0_i32_0, %c0_i32_1 : i32, i32, i32, i32
  }
  func.func @transform_1(%arg0: i32, %arg1: i32) -> (i32, i32, i32, i32) {
    %c0_i32 = arith.constant 0 : i32
    %c0_i32_0 = arith.constant 0 : i32
    %c0_i32_1 = arith.constant 0 : i32
    return %arg0, %arg1, %c0_i32, %c0_i32_0 : i32, i32, i32, i32
  }
  func.func @transform_2(%arg0: i32, %arg1: i32) -> (i32, i32, i32, i32) {
    %c8_i32 = arith.constant 8 : i32
    %0 = arith.muli %arg1, %c8_i32 : i32
    %c8_i32_0 = arith.constant 8 : i32
    %1 = arith.addi %0, %c8_i32_0 : i32
    %c15_i32 = arith.constant 15 : i32
    %2 = arith.minsi %1, %c15_i32 : i32
    %c0_i32 = arith.constant 0 : i32
    %c0_i32_1 = arith.constant 0 : i32
    %c0_i32_2 = arith.constant 0 : i32
    return %arg0, %2, %c0_i32, %c0_i32_1 : i32, i32, i32, i32
  }
  func.func @transform_3(%arg0: i32, %arg1: i32) -> (i32, i32, i32) {
    %c0_i32 = arith.constant 0 : i32
    %c0_i32_0 = arith.constant 0 : i32
    %c0_i32_1 = arith.constant 0 : i32
    return %arg0, %c0_i32, %c0_i32_0 : i32, i32, i32
  }
  func.func @transform_4(%arg0: i32, %arg1: i32) -> (i32, i32, i32) {
    %c0_i32 = arith.constant 0 : i32
    %c0_i32_0 = arith.constant 0 : i32
    %c0_i32_1 = arith.constant 0 : i32
    return %arg0, %c0_i32, %c0_i32_0 : i32, i32, i32
  }
  func.func @transform_5(%arg0: i32, %arg1: i32) -> (i32, i32) {
    %c0_i32 = arith.constant 0 : i32
    %c0_i32_0 = arith.constant 0 : i32
    %c0_i32_1 = arith.constant 0 : i32
    return %c0_i32, %c0_i32_0 : i32, i32
  }
  func.func @transform_6(%arg0: i32, %arg1: i32) -> (i32, i32) {
    %c0_i32 = arith.constant 0 : i32
    %c0_i32_0 = arith.constant 0 : i32
    %c0_i32_1 = arith.constant 0 : i32
    return %c0_i32, %c0_i32_0 : i32, i32
  }
  func.func @transform_7(%arg0: i32, %arg1: i32) -> (i32, i32, i32, i32) {
    %c0_i32 = arith.constant 0 : i32
    %c0_i32_0 = arith.constant 0 : i32
    %c0_i32_1 = arith.constant 0 : i32
    return %arg0, %arg1, %c0_i32, %c0_i32_0 : i32, i32, i32, i32
  }
  func.func @transform_8(%arg0: i32, %arg1: i32) -> (i32, i32, i32) {
    %c0_i32 = arith.constant 0 : i32
    %c0_i32_0 = arith.constant 0 : i32
    %c0_i32_1 = arith.constant 0 : i32
    return %arg0, %c0_i32, %c0_i32_0 : i32, i32, i32
  }
}

module attributes {stable_mosaic.version = 11 : i64} {
  func.func @kernel(%arg0: i32, %arg1: i32, %arg2: memref<1x1x16x64xf32, #tpu.memory_space<vmem>>, %arg3: memref<1x8x16x64xf32, #tpu.memory_space<vmem>>, %arg4: memref<1x1x16x64xf32, #tpu.memory_space<vmem>>, %arg5: memref<1x1x64xf32, #tpu.memory_space<vmem>>, %arg6: memref<1x1x64xf32, #tpu.memory_space<vmem>>, %arg7: memref<576x64xbf16, #tpu.memory_space<vmem>>, %arg8: memref<1x64xf32, #tpu.memory_space<vmem>>, %arg9: memref<1x8x16x32xf32, #tpu.memory_space<vmem>>, %arg10: memref<32x64xbf16, #tpu.memory_space<vmem>>, %arg11: memref<1x64xf32, #tpu.memory_space<vmem>>, %arg12: memref<1x8x16x64xf32, #tpu.memory_space<vmem>>) attributes {dimension_semantics = [#tpu.dimension_semantics<parallel>, #tpu.dimension_semantics<parallel>], iteration_bounds = array<i64: 2, 2>, scalar_prefetch = 0 : i64, scratch_operands = 0 : i64, tpu.core_type = #tpu.core_type<tc>, window_params = [{transform_indices = @transform_0, window_bounds = array<i64: 1, 1, 16, 64>}, {transform_indices = @transform_1, window_bounds = array<i64: 1, 8, 16, 64>}, {transform_indices = @transform_2, window_bounds = array<i64: 1, 1, 16, 64>}, {transform_indices = @transform_3, window_bounds = array<i64: 1, 1, 64>}, {transform_indices = @transform_4, window_bounds = array<i64: 1, 1, 64>}, {pipeline_mode = #tpu.pipeline_mode<synchronous>, transform_indices = @transform_5, window_bounds = array<i64: 576, 64>}, {pipeline_mode = #tpu.pipeline_mode<synchronous>, transform_indices = @transform_6, window_bounds = array<i64: 1, 64>}, {transform_indices = @transform_7, window_bounds = array<i64: 1, 8, 16, 32>}, {pipeline_mode = #tpu.pipeline_mode<synchronous>, transform_indices = @transform_8, window_bounds = array<i64: 32, 64>}, {pipeline_mode = #tpu.pipeline_mode<synchronous>, transform_indices = @transform_9, window_bounds = array<i64: 1, 64>}, {transform_indices = @transform_10, window_bounds = array<i64: 1, 8, 16, 64>}]} {
    %c0 = arith.constant 0 : index
    %c0_0 = arith.constant 0 : index
    %c0_1 = arith.constant 0 : index
    %c0_2 = arith.constant 0 : index
    %0 = vector.load %arg2[%c0, %c0_0, %c0_1, %c0_2] : memref<1x1x16x64xf32, #tpu.memory_space<vmem>>, vector<1x1x16x64xf32>
    %1 = vector.shape_cast %0 : vector<1x1x16x64xf32> to vector<1x16x64xf32>
    %c0_3 = arith.constant 0 : index
    %c0_4 = arith.constant 0 : index
    %c0_5 = arith.constant 0 : index
    %c0_6 = arith.constant 0 : index
    %2 = vector.load %arg3[%c0_3, %c0_4, %c0_5, %c0_6] : memref<1x8x16x64xf32, #tpu.memory_space<vmem>>, vector<1x8x16x64xf32>
    %3 = vector.shape_cast %2 : vector<1x8x16x64xf32> to vector<8x16x64xf32>
    %c0_7 = arith.constant 0 : index
    %c0_8 = arith.constant 0 : index
    %c0_9 = arith.constant 0 : index
    %c0_10 = arith.constant 0 : index
    %4 = vector.load %arg4[%c0_7, %c0_8, %c0_9, %c0_10] : memref<1x1x16x64xf32, #tpu.memory_space<vmem>>, vector<1x1x16x64xf32>
    %5 = vector.shape_cast %4 : vector<1x1x16x64xf32> to vector<1x16x64xf32>
    %c0_11 = arith.constant 0 : index
    %c0_12 = arith.constant 0 : index
    %c0_13 = arith.constant 0 : index
    %6 = vector.load %arg5[%c0_11, %c0_12, %c0_13] : memref<1x1x64xf32, #tpu.memory_space<vmem>>, vector<1x1x64xf32>
    %7 = vector.shape_cast %6 : vector<1x1x64xf32> to vector<64xf32>
    %c0_14 = arith.constant 0 : index
    %c0_15 = arith.constant 0 : index
    %c0_16 = arith.constant 0 : index
    %8 = vector.load %arg6[%c0_14, %c0_15, %c0_16] : memref<1x1x64xf32, #tpu.memory_space<vmem>>, vector<1x1x64xf32>
    %9 = vector.shape_cast %8 : vector<1x1x64xf32> to vector<64xf32>
    %10 = tpu.concatenate %1, %3, %5 in 0 : vector<1x16x64xf32>, vector<8x16x64xf32>, vector<1x16x64xf32> -> vector<10x16x64xf32>
    %11 = vector.shape_cast %7 : vector<64xf32> to vector<1x1x64xf32>
    %12 = vector.broadcast %11 : vector<1x1x64xf32> to vector<10x16x64xf32>
    %13 = arith.mulf %10, %12 : vector<10x16x64xf32>
    %14 = vector.shape_cast %9 : vector<64xf32> to vector<1x1x64xf32>
    %15 = vector.broadcast %14 : vector<1x1x64xf32> to vector<10x16x64xf32>
    %16 = arith.addf %13, %15 : vector<10x16x64xf32>
    %17 = arith.negf %16 : vector<10x16x64xf32>
    %18 = math.exp %17 : vector<10x16x64xf32>
    %cst = arith.constant 1.000000e+00 : f32
    %19 = vector.broadcast %cst : f32 to vector<10x16x64xf32>
    %20 = arith.addf %19, %18 : vector<10x16x64xf32>
    %21 = arith.divf %19, %20 : vector<10x16x64xf32>
    %22 = arith.mulf %16, %21 : vector<10x16x64xf32>
    %23 = tpu.iota {dimensions = array<i32: 0>} : vector<10x1x1xi32>
    %c0_i32 = arith.constant 0 : i32
    %24 = vector.broadcast %c0_i32 : i32 to vector<10x1x1xi32>
    %25 = arith.cmpi sgt, %23, %24 : vector<10x1x1xi32>
    %c0_i32_17 = arith.constant 0 : i32
    %26 = arith.cmpi sgt, %arg1, %c0_i32_17 : i32
    %27 = vector.broadcast %26 : i1 to vector<10x1x1xi1>
    %28 = arith.ori %25, %27 : vector<10x1x1xi1>
    %c9_i32 = arith.constant 9 : i32
    %29 = vector.broadcast %c9_i32 : i32 to vector<10x1x1xi32>
    %30 = arith.cmpi slt, %23, %29 : vector<10x1x1xi32>
    %c1_i32 = arith.constant 1 : i32
    %31 = arith.cmpi slt, %arg1, %c1_i32 : i32
    %32 = vector.broadcast %31 : i1 to vector<10x1x1xi1>
    %33 = arith.ori %30, %32 : vector<10x1x1xi1>
    %34 = arith.andi %28, %33 : vector<10x1x1xi1>
    %cst_18 = arith.constant 0.000000e+00 : f32
    %35 = vector.shape_cast %34 : vector<10x1x1xi1> to vector<10x1x1xi1>
    %36 = vector.broadcast %35 : vector<10x1x1xi1> to vector<10x16x64xi1>
    %37 = vector.broadcast %cst_18 : f32 to vector<10x16x64xf32>
    %38 = arith.select %36, %22, %37 : vector<10x16x64xi1>, vector<10x16x64xf32>
    %cst_19 = arith.constant 0.000000e+00 : f32
    %39 = vector.broadcast %cst_19 : f32 to vector<10x1x64xf32>
    %40 = tpu.concatenate %39, %38, %39 in 1 : vector<10x1x64xf32>, vector<10x16x64xf32>, vector<10x1x64xf32> -> vector<10x18x64xf32>
    %41 = arith.truncf %40 : vector<10x18x64xf32> to vector<10x18x64xbf16>
    %42 = vector.extract_strided_slice %41 {offsets = [0, 0, 0], sizes = [8, 16, 64], strides = [1, 1, 1]} : vector<10x18x64xbf16> to vector<8x16x64xbf16>
    %43 = vector.extract_strided_slice %41 {offsets = [0, 1, 0], sizes = [8, 16, 64], strides = [1, 1, 1]} : vector<10x18x64xbf16> to vector<8x16x64xbf16>
    %44 = vector.extract_strided_slice %41 {offsets = [0, 2, 0], sizes = [8, 16, 64], strides = [1, 1, 1]} : vector<10x18x64xbf16> to vector<8x16x64xbf16>
    %45 = vector.extract_strided_slice %41 {offsets = [1, 0, 0], sizes = [8, 16, 64], strides = [1, 1, 1]} : vector<10x18x64xbf16> to vector<8x16x64xbf16>
    %46 = vector.extract_strided_slice %41 {offsets = [1, 1, 0], sizes = [8, 16, 64], strides = [1, 1, 1]} : vector<10x18x64xbf16> to vector<8x16x64xbf16>
    %47 = vector.extract_strided_slice %41 {offsets = [1, 2, 0], sizes = [8, 16, 64], strides = [1, 1, 1]} : vector<10x18x64xbf16> to vector<8x16x64xbf16>
    %48 = vector.extract_strided_slice %41 {offsets = [2, 0, 0], sizes = [8, 16, 64], strides = [1, 1, 1]} : vector<10x18x64xbf16> to vector<8x16x64xbf16>
    %49 = vector.extract_strided_slice %41 {offsets = [2, 1, 0], sizes = [8, 16, 64], strides = [1, 1, 1]} : vector<10x18x64xbf16> to vector<8x16x64xbf16>
    %50 = vector.extract_strided_slice %41 {offsets = [2, 2, 0], sizes = [8, 16, 64], strides = [1, 1, 1]} : vector<10x18x64xbf16> to vector<8x16x64xbf16>
    %51 = tpu.concatenate %42, %43, %44, %45, %46, %47, %48, %49, %50 in 2 : vector<8x16x64xbf16>, vector<8x16x64xbf16>, vector<8x16x64xbf16>, vector<8x16x64xbf16>, vector<8x16x64xbf16>, vector<8x16x64xbf16>, vector<8x16x64xbf16>, vector<8x16x64xbf16>, vector<8x16x64xbf16> -> vector<8x16x576xbf16>
    %52 = vector.shape_cast %51 : vector<8x16x576xbf16> to vector<128x576xbf16>
    %c0_20 = arith.constant 0 : index
    %c0_21 = arith.constant 0 : index
    %53 = vector.load %arg7[%c0_20, %c0_21] : memref<576x64xbf16, #tpu.memory_space<vmem>>, vector<576x64xbf16>
    %cst_22 = arith.constant dense<0.000000e+00> : vector<128x64xf32>
    %54 = tpu.matmul %52, %53, %cst_22 {dimension_numbers = #tpu.dot_dimension_numbers<[1], [0], [0], [1], [0, 0, 1, 1], [], []>} : vector<128x576xbf16>, vector<576x64xbf16>, vector<128x64xf32> -> vector<128x64xf32>
    %c0_23 = arith.constant 0 : index
    %c0_24 = arith.constant 0 : index
    %55 = vector.load %arg8[%c0_23, %c0_24] : memref<1x64xf32, #tpu.memory_space<vmem>>, vector<1x64xf32>
    %56 = vector.shape_cast %55 : vector<1x64xf32> to vector<64xf32>
    %57 = vector.shape_cast %56 : vector<64xf32> to vector<1x64xf32>
    %58 = vector.broadcast %57 : vector<1x64xf32> to vector<128x64xf32>
    %59 = arith.addf %54, %58 : vector<128x64xf32>
    %c0_25 = arith.constant 0 : index
    %c0_26 = arith.constant 0 : index
    %c0_27 = arith.constant 0 : index
    %c0_28 = arith.constant 0 : index
    %60 = vector.load %arg9[%c0_25, %c0_26, %c0_27, %c0_28] : memref<1x8x16x32xf32, #tpu.memory_space<vmem>>, vector<1x8x16x32xf32>
    %61 = vector.shape_cast %60 : vector<1x8x16x32xf32> to vector<8x16x32xf32>
    %62 = vector.shape_cast %61 : vector<8x16x32xf32> to vector<128x32xf32>
    %63 = arith.truncf %62 : vector<128x32xf32> to vector<128x32xbf16>
    %c0_29 = arith.constant 0 : index
    %c0_30 = arith.constant 0 : index
    %64 = vector.load %arg10[%c0_29, %c0_30] : memref<32x64xbf16, #tpu.memory_space<vmem>>, vector<32x64xbf16>
    %cst_31 = arith.constant dense<0.000000e+00> : vector<128x64xf32>
    %65 = tpu.matmul %63, %64, %cst_31 {dimension_numbers = #tpu.dot_dimension_numbers<[1], [0], [0], [1], [0, 0, 1, 1], [], []>} : vector<128x32xbf16>, vector<32x64xbf16>, vector<128x64xf32> -> vector<128x64xf32>
    %66 = arith.addf %59, %65 : vector<128x64xf32>
    %c0_32 = arith.constant 0 : index
    %c0_33 = arith.constant 0 : index
    %67 = vector.load %arg11[%c0_32, %c0_33] : memref<1x64xf32, #tpu.memory_space<vmem>>, vector<1x64xf32>
    %68 = vector.shape_cast %67 : vector<1x64xf32> to vector<64xf32>
    %69 = vector.shape_cast %68 : vector<64xf32> to vector<1x64xf32>
    %70 = vector.broadcast %69 : vector<1x64xf32> to vector<128x64xf32>
    %71 = arith.addf %66, %70 : vector<128x64xf32>
    %72 = vector.shape_cast %71 : vector<128x64xf32> to vector<8x16x64xf32>
    %c0_34 = arith.constant 0 : index
    %c0_35 = arith.constant 0 : index
    %c0_36 = arith.constant 0 : index
    %c0_37 = arith.constant 0 : index
    %73 = vector.load %arg12[%c0_34, %c0_35, %c0_36, %c0_37] : memref<1x8x16x64xf32, #tpu.memory_space<vmem>>, vector<1x8x16x64xf32>
    %74 = vector.shape_cast %73 : vector<1x8x16x64xf32> to vector<8x16x64xf32>
    %75 = vector.shape_cast %72 : vector<8x16x64xf32> to vector<1x8x16x64xf32>
    tpu.vector_store %arg12[%c0_34, %c0_35, %c0_36, %c0_37], %75 {strides = array<i32>} : memref<1x8x16x64xf32, #tpu.memory_space<vmem>>, vector<1x8x16x64xf32>,
    return
  }
  func.func @transform_0(%arg0: i32, %arg1: i32) -> (i32, i32, i32, i32) {
    %c8_i32 = arith.constant 8 : i32
    %0 = arith.muli %arg1, %c8_i32 : i32
    %c1_i32 = arith.constant 1 : i32
    %1 = arith.subi %0, %c1_i32 : i32
    %c0_i32 = arith.constant 0 : i32
    %2 = arith.maxsi %1, %c0_i32 : i32
    %c0_i32_0 = arith.constant 0 : i32
    %c0_i32_1 = arith.constant 0 : i32
    %c0_i32_2 = arith.constant 0 : i32
    return %arg0, %2, %c0_i32_0, %c0_i32_1 : i32, i32, i32, i32
  }
  func.func @transform_1(%arg0: i32, %arg1: i32) -> (i32, i32, i32, i32) {
    %c0_i32 = arith.constant 0 : i32
    %c0_i32_0 = arith.constant 0 : i32
    %c0_i32_1 = arith.constant 0 : i32
    return %arg0, %arg1, %c0_i32, %c0_i32_0 : i32, i32, i32, i32
  }
  func.func @transform_2(%arg0: i32, %arg1: i32) -> (i32, i32, i32, i32) {
    %c8_i32 = arith.constant 8 : i32
    %0 = arith.muli %arg1, %c8_i32 : i32
    %c8_i32_0 = arith.constant 8 : i32
    %1 = arith.addi %0, %c8_i32_0 : i32
    %c15_i32 = arith.constant 15 : i32
    %2 = arith.minsi %1, %c15_i32 : i32
    %c0_i32 = arith.constant 0 : i32
    %c0_i32_1 = arith.constant 0 : i32
    %c0_i32_2 = arith.constant 0 : i32
    return %arg0, %2, %c0_i32, %c0_i32_1 : i32, i32, i32, i32
  }
  func.func @transform_3(%arg0: i32, %arg1: i32) -> (i32, i32, i32) {
    %c0_i32 = arith.constant 0 : i32
    %c0_i32_0 = arith.constant 0 : i32
    %c0_i32_1 = arith.constant 0 : i32
    return %arg0, %c0_i32, %c0_i32_0 : i32, i32, i32
  }
  func.func @transform_4(%arg0: i32, %arg1: i32) -> (i32, i32, i32) {
    %c0_i32 = arith.constant 0 : i32
    %c0_i32_0 = arith.constant 0 : i32
    %c0_i32_1 = arith.constant 0 : i32
    return %arg0, %c0_i32, %c0_i32_0 : i32, i32, i32
  }
  func.func @transform_5(%arg0: i32, %arg1: i32) -> (i32, i32) {
    %c0_i32 = arith.constant 0 : i32
    %c0_i32_0 = arith.constant 0 : i32
    %c0_i32_1 = arith.constant 0 : i32
    return %c0_i32, %c0_i32_0 : i32, i32
  }
  func.func @transform_6(%arg0: i32, %arg1: i32) -> (i32, i32) {
    %c0_i32 = arith.constant 0 : i32
    %c0_i32_0 = arith.constant 0 : i32
    %c0_i32_1 = arith.constant 0 : i32
    return %c0_i32, %c0_i32_0 : i32, i32
  }
  func.func @transform_7(%arg0: i32, %arg1: i32) -> (i32, i32, i32, i32) {
    %c0_i32 = arith.constant 0 : i32
    %c0_i32_0 = arith.constant 0 : i32
    %c0_i32_1 = arith.constant 0 : i32
    return %arg0, %arg1, %c0_i32, %c0_i32_0 : i32, i32, i32, i32
  }
  func.func @transform_8(%arg0: i32, %arg1: i32) -> (i32, i32) {
    %c0_i32 = arith.constant 0 : i32
    %c0_i32_0 = arith.constant 0 : i32
    %c0_i32_1 = arith.constant 0 : i32
    return %c0_i32, %c0_i32_0 : i32, i32
  }
  func.func @transform_9(%arg0: i32, %arg1: i32) -> (i32, i32) {
    %c0_i32 = arith.constant 0 : i32
    %c0_i32_0 = arith.constant 0 : i32
    %c0_i32_1 = arith.constant 0 : i32
    return %c0_i32, %c0_i32_0 : i32, i32
  }
  func.func @transform_10(%arg0: i32, %arg1: i32) -> (i32, i32, i32, i32) {
    %c0_i32 = arith.constant 0 : i32
    %c0_i32_0 = arith.constant 0 : i32
    %c0_i32_1 = arith.constant 0 : i32
    return %arg0, %arg1, %c0_i32, %c0_i32_0 : i32, i32, i32, i32
  }
}

</mosaic_0001>

<bundles_post_ra>
// kernel: squeeze.6
= control target key start
LH: loop header
LB: loop body
LE: loop exit
PB: predicated region body
PF: predicated region fallthrough
CT: control target
= control target key end

     0   :  { %s355_s8 = smov 122   ;;  %s356_s9 = smov 124   ;;  %vm8_vm0 = vcmask 15360   ;;  %s654_s0 = inlined_call_operand.vmem [shape: f32[2,64], index: 0, kind: input, shape index: {}]   ;;  %s655_s1 = inlined_call_operand.vmem [shape: f32[2,32,2], index: 1, kind: output, shape index: {}]  }
   0x1   :  { %v5_v0 = vld [vmem:[%s654_s0] sm:$0x3]  ;;  %s354_s0 = smov 126   ;;  %s357_s10 = smov 120  }
   0x2   :  { %6 = vst [vmem:[#allocation0] sm:$0x3] %v5_v0  ;;  %s358_s11 = smov 118   ;;  %s359_s12 = smov 116  }
   0x3   :  { %s360_s13 = smov 114   ;;  %s361_s14 = smov 112  }
   0x4   :  { %s362_s15 = smov 110   ;;  %s363_s16 = smov 108  }
   0x5   :  { %s364_s17 = smov 106   ;;  %s365_s18 = smov 104  }
   0x6   :  { %s366_s19 = smov 102   ;;  %s367_s20 = smov 100  }
   0x7   :  { %s368_s21 = smov 98   ;;  %s369_s22 = smov 96  }
   0x8   :  { %s370_s23 = smov 94   ;;  %s371_s24 = smov 92  }
   0x9   :  { %v12_v1 = vld [vmem:[#allocation0] sm:$0x3]   ;;  %s372_s25 = smov 90   ;;  %s373_s26 = smov 88  }
   0xa   :  { %v28_v2 = vld [vmem:[#allocation0] sm:$0x3]   ;;  %13 = vrot.lane.b32.xlu0 %v12_v1, %s354_s0  ;;  %s374_s27 = smov 86   ;;  %s375_s28 = smov 84  }
   0xb   :  { %29 = vrot.lane.b32.xlu1 %v28_v2, %s355_s8  ;;  %v20_v3 = vld [vmem:[#allocation0] sm:$0x3]   ;;  %s376_s29 = smov 82   ;;  %s377_s30 = smov 80  }
   0xc   :  { %v36_v4 = vld [vmem:[#allocation0] sm:$0x3]   ;;  %s378_s6 = smov 78   ;;  %s379_s7 = smov 76  }
   0xd   :  { %v44_v5 = vld [vmem:[#allocation0] sm:$0x3]   ;;  %s380_s0 = smov 74   ;;  %s381_s8 = smov 72  }
   0xe   :  { %21 = vrot.lane.b32.xlu0 %v20_v3, %s356_s9  ;;  %v52_v6 = vld [vmem:[#allocation0] sm:$0x3]   ;;  %s382_s9 = smov 70  }
   0xf   :  { %37 = vrot.lane.b32.xlu1 %v36_v4, %s357_s10  ;;  %v60_v7 = vld [vmem:[#allocation0] sm:$0x3]   ;;  %s383_s10 = smov 68  }
  0x10   :  { %v68_v8 = vld [vmem:[#allocation0] sm:$0x3]  }
  0x11   :  { %v76_v9 = vld [vmem:[#allocation0] sm:$0x3]  }
  0x12   :  { %45 = vrot.lane.b32.xlu0 %v44_v5, %s358_s11  ;;  %v84_v10 = vld [vmem:[#allocation0] sm:$0x3]   ;;  %s384_s11 = smov 66  }
  0x13   :  { %53 = vrot.lane.b32.xlu1 %v52_v6, %s359_s12  ;;  %v92_v11 = vld [vmem:[#allocation0] sm:$0x3]  }
  0x14   :  { %v100_v12 = vld [vmem:[#allocation0] sm:$0x3]  }
  0x15   :  { %v108_v13 = vld [vmem:[#allocation0] sm:$0x3]  }
  0x16   :  { %61 = vrot.lane.b32.xlu0 %v60_v7, %s360_s13  ;;  %v116_v14 = vld [vmem:[#allocation0] sm:$0x3]  }
  0x17   :  { %69 = vrot.lane.b32.xlu1 %v68_v8, %s361_s14  ;;  %v124_v15 = vld [vmem:[#allocation0] sm:$0x3]  }
  0x18   :  { %v132_v16 = vld [vmem:[#allocation0] sm:$0x3]  }
  0x19   :  { %v140_v17 = vld [vmem:[#allocation0] sm:$0x3]  }
  0x1a   :  { %77 = vrot.lane.b32.xlu0 %v76_v9, %s362_s15  ;;  %v148_v18 = vld [vmem:[#allocation0] sm:$0x3]  }
  0x1b   :  { %85 = vrot.lane.b32.xlu1 %v84_v10, %s363_s16  ;;  %v156_v19 = vld [vmem:[#allocation0] sm:$0x3]  }
  0x1c   :  { %v164_v20 = vld [vmem:[#allocation0] sm:$0x3]  }
  0x1d   :  { %v172_v21 = vld [vmem:[#allocation0] sm:$0x3]  }
  0x1e   :  { %93 = vrot.lane.b32.xlu0 %v92_v11, %s364_s17  ;;  %v180_v22 = vld [vmem:[#allocation0] sm:$0x3]  }
  0x1f   :  { %101 = vrot.lane.b32.xlu1 %v100_v12, %s365_s18  ;;  %v188_v23 = vld [vmem:[#allocation0] sm:$0x3]  }
  0x20   :  { %v196_v24 = vld [vmem:[#allocation0] sm:$0x3]  }
  0x21   :  { %v204_v25 = vld [vmem:[#allocation0] sm:$0x3]  }
  0x22   :  { %109 = vrot.lane.b32.xlu0 %v108_v13, %s366_s19  ;;  %v212_v26 = vld [vmem:[#allocation0] sm:$0x3]  }
  0x23   :  { %117 = vrot.lane.b32.xlu1 %v116_v14, %s367_s20  ;;  %v7_v27 = vld [vmem:[#allocation0] sm:$0x3]  }
  0x24   :  { %9 = vst.msk [vmem:[%s655_s1] sm:$0x1] %vm8_vm0, %v7_v27   ;;  %260 = vst.msk [vmem:[%s655_s1 + $0x1f] sm:$0x2] %vm8_vm0, %v7_v27   ;;  %v220_v28 = vld [vmem:[#allocation0] sm:$0x3]  }
  0x25   :  { %v228_v29 = vld [vmem:[#allocation0] sm:$0x3]  }
  0x26   :  { %125 = vrot.lane.b32.xlu0 %v124_v15, %s368_s21  ;;  %v236_v30 = vld [vmem:[#allocation0] sm:$0x3]  }
  0x27   :  { %133 = vrot.lane.b32.xlu1 %v132_v16, %s369_s22  ;;  %v244_v31 = vld [vmem:[#allocation0] sm:$0x3]  }
  0x28   :  { %v252_v32 = vld [vmem:[#allocation0] sm:$0x3]  }
  0x2a   :  { %141 = vrot.lane.b32.xlu0 %v140_v17, %s370_s23 }
  0x2b   :  { %149 = vrot.lane.b32.xlu1 %v148_v18, %s371_s24 }
  0x2e   :  { %157 = vrot.lane.b32.xlu0 %v156_v19, %s372_s25 }
  0x2f   :  { %165 = vrot.lane.b32.xlu1 %v164_v20, %s373_s26 }
  0x32   :  { %173 = vrot.lane.b32.xlu0 %v172_v21, %s374_s27 }
  0x33   :  { %181 = vrot.lane.b32.xlu1 %v180_v22, %s375_s28 }
  0x36   :  { %189 = vrot.lane.b32.xlu0 %v188_v23, %s376_s29 }
  0x37   :  { %197 = vrot.lane.b32.xlu1 %v196_v24, %s377_s30 }
  0x3a   :  { %205 = vrot.lane.b32.xlu0 %v204_v25, %s378_s6 }
  0x3b   :  { %213 = vrot.lane.b32.xlu1 %v212_v26, %s379_s7 }
  0x3e   :  { %221 = vrot.lane.b32.xlu0 %v220_v28, %s380_s0 }
  0x3f   :  { %229 = vrot.lane.b32.xlu1 %v228_v29, %s381_s8 }
  0x42   :  { %237 = vrot.lane.b32.xlu0 %v236_v30, %s382_s9 }
  0x43   :  { %245 = vrot.lane.b32.xlu1 %v244_v31, %s383_s10 }
  0x46   :  { %253 = vrot.lane.b32.xlu0 %v252_v32, %s384_s11 }
  0x7c   :  { %v14_v33 = vpop.permute.xlu0 %13  }
  0x7d   :  { %v30_v34 = vpop.permute.xlu1 %29   ;;  %261 = vst.msk [vmem:[%s655_s1 + $0x1] sm:$0x1] %vm8_vm0, %v14_v33   ;;  %262 = vst.msk [vmem:[%s655_s1 + $0x20] sm:$0x2] %vm8_vm0, %v14_v33  }
  0x7e   :  { %265 = vst.msk [vmem:[%s655_s1 + $0x3] sm:$0x1] %vm8_vm0, %v30_v34   ;;  %266 = vst.msk [vmem:[%s655_s1 + $0x22] sm:$0x2] %vm8_vm0, %v30_v34  }
  0x80   :  { %v22_v35 = vpop.permute.xlu0 %21  }
  0x81   :  { %v38_v36 = vpop.permute.xlu1 %37   ;;  %263 = vst.msk [vmem:[%s655_s1 + $0x2] sm:$0x1] %vm8_vm0, %v22_v35   ;;  %264 = vst.msk [vmem:[%s655_s1 + $0x21] sm:$0x2] %vm8_vm0, %v22_v35  }
  0x82   :  { %267 = vst.msk [vmem:[%s655_s1 + $0x4] sm:$0x1] %vm8_vm0, %v38_v36   ;;  %268 = vst.msk [vmem:[%s655_s1 + $0x23] sm:$0x2] %vm8_vm0, %v38_v36  }
  0x84   :  { %v46_v37 = vpop.permute.xlu0 %45  }
  0x85   :  { %v54_v38 = vpop.permute.xlu1 %53   ;;  %269 = vst.msk [vmem:[%s655_s1 + $0x5] sm:$0x1] %vm8_vm0, %v46_v37   ;;  %270 = vst.msk [vmem:[%s655_s1 + $0x24] sm:$0x2] %vm8_vm0, %v46_v37  }
  0x86   :  { %271 = vst.msk [vmem:[%s655_s1 + $0x6] sm:$0x1] %vm8_vm0, %v54_v38   ;;  %272 = vst.msk [vmem:[%s655_s1 + $0x25] sm:$0x2] %vm8_vm0, %v54_v38  }
  0x88   :  { %v62_v39 = vpop.permute.xlu0 %61  }
  0x89   :  { %v70_v40 = vpop.permute.xlu1 %69   ;;  %273 = vst.msk [vmem:[%s655_s1 + $0x7] sm:$0x1] %vm8_vm0, %v62_v39   ;;  %274 = vst.msk [vmem:[%s655_s1 + $0x26] sm:$0x2] %vm8_vm0, %v62_v39  }
  0x8a   :  { %275 = vst.msk [vmem:[%s655_s1 + $0x8] sm:$0x1] %vm8_vm0, %v70_v40   ;;  %276 = vst.msk [vmem:[%s655_s1 + $0x27] sm:$0x2] %vm8_vm0, %v70_v40  }
  0x8c   :  { %v78_v41 = vpop.permute.xlu0 %77  }
  0x8d   :  { %v86_v42 = vpop.permute.xlu1 %85   ;;  %277 = vst.msk [vmem:[%s655_s1 + $0x9] sm:$0x1] %vm8_vm0, %v78_v41   ;;  %278 = vst.msk [vmem:[%s655_s1 + $0x28] sm:$0x2] %vm8_vm0, %v78_v41  }
  0x8e   :  { %279 = vst.msk [vmem:[%s655_s1 + $0xa] sm:$0x1] %vm8_vm0, %v86_v42   ;;  %280 = vst.msk [vmem:[%s655_s1 + $0x29] sm:$0x2] %vm8_vm0, %v86_v42  }
  0x90   :  { %v94_v43 = vpop.permute.xlu0 %93  }
  0x91   :  { %v102_v44 = vpop.permute.xlu1 %101   ;;  %281 = vst.msk [vmem:[%s655_s1 + $0xb] sm:$0x1] %vm8_vm0, %v94_v43   ;;  %282 = vst.msk [vmem:[%s655_s1 + $0x2a] sm:$0x2] %vm8_vm0, %v94_v43  }
  0x92   :  { %283 = vst.msk [vmem:[%s655_s1 + $0xc] sm:$0x1] %vm8_vm0, %v102_v44   ;;  %284 = vst.msk [vmem:[%s655_s1 + $0x2b] sm:$0x2] %vm8_vm0, %v102_v44  }
  0x94   :  { %v110_v45 = vpop.permute.xlu0 %109  }
  0x95   :  { %v118_v46 = vpop.permute.xlu1 %117   ;;  %285 = vst.msk [vmem:[%s655_s1 + $0xd] sm:$0x1] %vm8_vm0, %v110_v45   ;;  %286 = vst.msk [vmem:[%s655_s1 + $0x2c] sm:$0x2] %vm8_vm0, %v110_v45  }
  0x96   :  { %287 = vst.msk [vmem:[%s655_s1 + $0xe] sm:$0x1] %vm8_vm0, %v118_v46   ;;  %288 = vst.msk [vmem:[%s655_s1 + $0x2d] sm:$0x2] %vm8_vm0, %v118_v46  }
  0x98   :  { %v126_v47 = vpop.permute.xlu0 %125  }
  0x99   :  { %v134_v48 = vpop.permute.xlu1 %133   ;;  %289 = vst.msk [vmem:[%s655_s1 + $0xf] sm:$0x1] %vm8_vm0, %v126_v47   ;;  %290 = vst.msk [vmem:[%s655_s1 + $0x2e] sm:$0x2] %vm8_vm0, %v126_v47  }
  0x9a   :  { %291 = vst.msk [vmem:[%s655_s1 + $0x10] sm:$0x1] %vm8_vm0, %v134_v48   ;;  %292 = vst.msk [vmem:[%s655_s1 + $0x2f] sm:$0x2] %vm8_vm0, %v134_v48  }
  0x9c   :  { %v142_v49 = vpop.permute.xlu0 %141  }
  0x9d   :  { %v150_v50 = vpop.permute.xlu1 %149   ;;  %293 = vst.msk [vmem:[%s655_s1 + $0x11] sm:$0x1] %vm8_vm0, %v142_v49   ;;  %294 = vst.msk [vmem:[%s655_s1 + $0x30] sm:$0x2] %vm8_vm0, %v142_v49  }
  0x9e   :  { %295 = vst.msk [vmem:[%s655_s1 + $0x12] sm:$0x1] %vm8_vm0, %v150_v50   ;;  %296 = vst.msk [vmem:[%s655_s1 + $0x31] sm:$0x2] %vm8_vm0, %v150_v50  }
  0xa0   :  { %v158_v51 = vpop.permute.xlu0 %157  }
  0xa1   :  { %v166_v52 = vpop.permute.xlu1 %165   ;;  %297 = vst.msk [vmem:[%s655_s1 + $0x13] sm:$0x1] %vm8_vm0, %v158_v51   ;;  %298 = vst.msk [vmem:[%s655_s1 + $0x32] sm:$0x2] %vm8_vm0, %v158_v51  }
  0xa2   :  { %299 = vst.msk [vmem:[%s655_s1 + $0x14] sm:$0x1] %vm8_vm0, %v166_v52   ;;  %300 = vst.msk [vmem:[%s655_s1 + $0x33] sm:$0x2] %vm8_vm0, %v166_v52  }
  0xa4   :  { %v174_v53 = vpop.permute.xlu0 %173  }
  0xa5   :  { %v182_v54 = vpop.permute.xlu1 %181   ;;  %301 = vst.msk [vmem:[%s655_s1 + $0x15] sm:$0x1] %vm8_vm0, %v174_v53   ;;  %302 = vst.msk [vmem:[%s655_s1 + $0x34] sm:$0x2] %vm8_vm0, %v174_v53  }
  0xa6   :  { %303 = vst.msk [vmem:[%s655_s1 + $0x16] sm:$0x1] %vm8_vm0, %v182_v54   ;;  %304 = vst.msk [vmem:[%s655_s1 + $0x35] sm:$0x2] %vm8_vm0, %v182_v54  }
  0xa8   :  { %v190_v55 = vpop.permute.xlu0 %189  }
  0xa9   :  { %v198_v56 = vpop.permute.xlu1 %197   ;;  %305 = vst.msk [vmem:[%s655_s1 + $0x17] sm:$0x1] %vm8_vm0, %v190_v55   ;;  %306 = vst.msk [vmem:[%s655_s1 + $0x36] sm:$0x2] %vm8_vm0, %v190_v55  }
  0xaa   :  { %307 = vst.msk [vmem:[%s655_s1 + $0x18] sm:$0x1] %vm8_vm0, %v198_v56   ;;  %308 = vst.msk [vmem:[%s655_s1 + $0x37] sm:$0x2] %vm8_vm0, %v198_v56  }
  0xac   :  { %v206_v57 = vpop.permute.xlu0 %205  }
  0xad   :  { %v214_v58 = vpop.permute.xlu1 %213   ;;  %309 = vst.msk [vmem:[%s655_s1 + $0x19] sm:$0x1] %vm8_vm0, %v206_v57   ;;  %310 = vst.msk [vmem:[%s655_s1 + $0x38] sm:$0x2] %vm8_vm0, %v206_v57  }
  0xae   :  { %311 = vst.msk [vmem:[%s655_s1 + $0x1a] sm:$0x1] %vm8_vm0, %v214_v58   ;;  %312 = vst.msk [vmem:[%s655_s1 + $0x39] sm:$0x2] %vm8_vm0, %v214_v58  }
  0xb0   :  { %v222_v59 = vpop.permute.xlu0 %221  }
  0xb1   :  { %v230_v60 = vpop.permute.xlu1 %229   ;;  %313 = vst.msk [vmem:[%s655_s1 + $0x1b] sm:$0x1] %vm8_vm0, %v222_v59   ;;  %314 = vst.msk [vmem:[%s655_s1 + $0x3a] sm:$0x2] %vm8_vm0, %v222_v59  }
  0xb2   :  { %315 = vst.msk [vmem:[%s655_s1 + $0x1c] sm:$0x1] %vm8_vm0, %v230_v60   ;;  %316 = vst.msk [vmem:[%s655_s1 + $0x3b] sm:$0x2] %vm8_vm0, %v230_v60  }
  0xb4   :  { %v238_v61 = vpop.permute.xlu0 %237  }
  0xb5   :  { %v246_v62 = vpop.permute.xlu1 %245   ;;  %317 = vst.msk [vmem:[%s655_s1 + $0x1d] sm:$0x1] %vm8_vm0, %v238_v61   ;;  %318 = vst.msk [vmem:[%s655_s1 + $0x3c] sm:$0x2] %vm8_vm0, %v238_v61  }
  0xb6   :  { %319 = vst.msk [vmem:[%s655_s1 + $0x1e] sm:$0x1] %vm8_vm0, %v246_v62   ;;  %320 = vst.msk [vmem:[%s655_s1 + $0x3d] sm:$0x2] %vm8_vm0, %v246_v62  }
  0xb8   :  { %v254_v63 = vpop.permute.xlu0 %253  }
  0xb9   :  { %321 = vst.msk [vmem:[%s655_s1 + $0x1f] sm:$0x1] %vm8_vm0, %v254_v63   ;;  %322 = vst.msk [vmem:[%s655_s1 + $0x3e] sm:$0x2] %vm8_vm0, %v254_v63  }

// kernel: vae_residual_block.3
= control target key start
LH: loop header
LB: loop body
LE: loop exit
PB: predicated region body
PF: predicated region fallthrough
CT: control target
= control target key end

     0   :  { %6 = vsyncpa [#allocation3], 0  ;;  %s730_s0 = inlined_call_operand.hbm [shape: f32[2,16,16,32], index: 0, kind: input, shape index: {}]   ;;  %s731_s1 = inlined_call_operand.vmem [shape: f32[2,2,32], index: 1, kind: output, shape index: {}]  }
   0x1   :  { %8 = vsyncpa [#allocation3 + $0x1], 0  ;;  %s551_s6 = smov 0   ;;  %s553_s7 = smov 0  }
   0x2   :  { %s555_s8 = smov 0   ;;  %s557_s9 = smov 0  }
   0x3   :  { %s559_s10 = smov 0   ;;  %s561_s11 = smov 0  }
   0x4   :  { %s563_s12 = smov 0   ;;  %s565_s13 = smov 0  }
   0x5 LB: > { %s351_s14 = sadd.s32 4294967295, %s535_s13   ;;  %s23_s15 = sadd.s32 1, %s527_s11  ;;  %s535_s13 = sphi %s565_s13, %s14_s13   ;;  %s531_s12 = sphi %s563_s12, %s741_s12   ;;  %s527_s11 = sphi %s561_s11, %s740_s11   ;;  %s523_s10 = sphi %s559_s10, %s739_s10   ;;  %s519_s9 = sphi %s557_s9, %s738_s9   ;;  %s515_s8 = sphi %s555_s8, %s737_s8   ;;  %s511_s7 = sphi %s553_s7, %s736_s7   ;;  %s507_s6 = sphi %s551_s6, %s735_s6  }
   0x6   : > { %p24_p0 = scmp.ge.s32.totalorder %s23_s15, 2  ;;  %s26_s16 = sadd.s32 1, %s531_s12 }
   0x7   : > { %s35_s17 = sadd.s32 1, %s515_s8  ;;  %p42_p1 = scmp.ne.s32.totalorder %s515_s8, %s511_s7 }
   0x8   : > { %s743_s15 = smov (%p24_p0, %s23_s15), 0  ;;  %s745_s16 = smov (!%p24_p0, %s26_s16), %s531_s12 }
   0x9   : > { %s31_s18 = ssub.s32 %s527_s11, %s743_s15  ;;  %p43_p2 = scmp.eq.s32.totalorder %s535_s13, 0 }
   0xa   : > { %p28_p3 = scmp.ge.s32.totalorder %s745_s16, 2  ;;  %p48_p4 = scmp.ne.s32.totalorder %s511_s7, %s507_s6 }
   0xb   : > { %p602_p5 = por %p43_p2, %p42_p1  ;;  %p49_p6 = scmp.eq.s32.totalorder %s351_s14, 0 }
   0xc   : > { %s747_s16 = smov (%p28_p3, %s745_s16), 0  ;;  %p373_p8 = scmp.lt.s32.totalorder %s535_s13, 4 }
   0xd   : > { %p608_p7 = por %p49_p6, %p48_p4  ;;  %s30_s21 = ssub.s32 %s531_s12, %s747_s16 }
   0xe   : > { %s32_s22 = sor.u32 %s31_s18, %s30_s21  ;;  %s98_s23 = sand.u32 1, %s515_s8  }
   0xf   : > { %p33_p9 = scmp.eq.s32.totalorder %s32_s22, 0  ;;  %s355_s24 = sshll.u32 %s98_s23, 7 }
  0x10   : > { %s366_s25 = sshll.u32 %s527_s11, 4  ;;  %s358_s27 = sshll.u32 %s531_s12, 5 }
  0x11   : > { %s618_s26 = scalar_select %p33_p9, %s515_s8, %s35_s17  }
  0x12   : > { %s109_s28 = sadd.s32 %s366_s25, %s358_s27  ;;  %s102_s29 = scalar_lea.vmem [#allocation2], %s355_s24 }
  0x13   : > { %s112_s30 = sshll.u32 %s102_s29, 4  ;;  %s359_s2 = sshll.u32 %s109_s28, 7  ;;  %s113_s30 = int_to_ptr.vmem [resolvable:$true] %s112_s30 }
  0x14   : > { %s111_s5 = scalar_lea.hbm %s730_s0, %s359_s2  ;;  %p628_p10 = pnand %p373_p8, %p602_p5 }
  0x15   : > { %p360_p11 = scmp.ge.s32.totalorder %s535_s13, 1  ;;  %s99_s14 = scalar_lea.sflag [#allocation3], %s98_s23 }
  0x16   : > { %p443_p12 = pneg %p628_p10  ;;  %s454_s17 = scalar_lea.vmem %s113_s30, 2048 }
  0x17   : > { %p455_p13 = scmp.ne.s32.totalorder %s113_s30, %s454_s17  ;;  %s537_s18 = smov [#allocation2]  }
  0x18   : > { %s459_s21 = sshll.u32 %s537_s18, 4  ;;  %s460_s21 = int_to_ptr.vmem [resolvable:$false] %s459_s21 }
  0x19   : > { %p457_p0 = pnand %p455_p13, %p443_p12  ;;  %s461_s22 = scalar_lea.vmem %s460_s21, 4096 }
  0x1a   : > { %p462_p2 = scmp.lt.s32.totalorder %s113_s30, %s460_s21  ;;  %p463_p3 = scmp.lt.s32.totalorder %s461_s22, %s454_s17 }
  0x1b   : > { %p458_p1 = pneg %p457_p0 }
  0x1c   : > { %p464_p4 = por %p463_p3, %p462_p2 }
  0x1e   : > { %p465_p5 = pnand %p464_p4, %p458_p1 }
  0x20   : > { %468 = shalt.err (!%p465_p5)
}
  0x21   : > { %s538_s19 = smov 128   ;;  %s539_s23 = smov 8  }
  0x22   : > { %372 = dma.hbm_to_vmem [thread:$0]  (!%p628_p10), %s111_s5, 2048, %s113_s30, %s99_s14, %s538_s19, %s538_s19, %s539_s23  }
  0x23   : > { %p120_p6 = scmp.lt.s32.totalorder %s535_s13, 5 }
  0x25   : > { %p121_p8 = pnand %p360_p11, %p120_p6 }
  0x26   : > { %s126_s24 = sand.u32 (!%p121_p8), 1, %s511_s7  }
  0x27   : > { %124 = sbr.rel (%p121_p8) target bundleno = 105 (0x69), region = 24  ;;  %s361_s25 = sshll.u32 (!%p121_p8), %s126_s24, 7 }
  0x28   : > { %s127_s27 = scalar_lea.sflag (!%p121_p8), [#allocation3], %s126_s24  ;;  %s641_s28 = scalar_lea.vmem (!%p121_p8), [#allocation2], %s361_s25 }
  0x2c   : > { %502 = dma.done.wait (%p608_p7), %s127_s27, 2048  }
  0x2d   : > { %504 = vsyncadd (%p608_p7), %s127_s27, 4294965248  ;;  %p149_p9 = scmp.lt.s32.totalorder %s523_s10, 1  ;;  %p363_p10 = scmp.ne.s32.totalorder %s519_s9, 0 }
  0x2f   : > { %s749_s10 = smov (!%p149_p9, %s523_s10), 1  ;;  %156 = sbr.rel (%p363_p10) target bundleno = 54 (0x36), region = 32 }
  0x30   : > { %s362_s29 = sshll.u32 %s749_s10, 1 }
  0x31   : > { %s652_s3 = scalar_lea.vmem %s731_s1, %s362_s29 }
  0x34   : > { %vm157_vm0 = vcmask 254976   ;;  %v540_v0 = vmov 0.0  }
  0x35   : > { %158 = vst.msk [vmem:[%s652_s3] sm:$0x3] %vm157_vm0, %v540_v0 }
  0x36 PF: > { %v159_v1 = vld [vmem:[%s641_s28] sm:$0xff]  ;;  %v160_v2 = vld [vmem:[%s641_s28 + $0x8] sm:$0xff]  ;;  %v161_v3 = vld [vmem:[%s641_s28 + $0x10] sm:$0xff]  ;;  %vm176_vm1 = vcmask 261120   ;;  %vm267_vm2 = vcmask 1040384   ;;  %vm270_vm3 = vcmask 254976  }
  0x37   : > { %v177_v4 = vsel %vm176_vm1, %v159_v1, 0.0  ;;  %v178_v5 = vsel %vm176_vm1, %v160_v2, 0.0  ;;  %v180_v6 = vsel %vm176_vm1, %v161_v3, 0.0  ;;  %v162_v7 = vld [vmem:[%s641_s28 + $0x18] sm:$0xff]  ;;  %v163_v10 = vld [vmem:[%s641_s28 + $0x20] sm:$0xff]  ;;  %v164_v13 = vld [vmem:[%s641_s28 + $0x28] sm:$0xff]  ;;  %v214_v15 = vmul.f32 %v159_v1, %v159_v1 }
  0x38   : > { %v179_v8 = vadd.f32 %v178_v5, %v177_v4  ;;  %v182_v9 = vsel %vm176_vm1, %v162_v7, 0.0  ;;  %v184_v12 = vsel %vm176_vm1, %v163_v10, 0.0  ;;  %v215_v16 = vmul.f32 %v160_v2, %v160_v2  ;;  %v165_v19 = vld [vmem:[%s641_s28 + $0x30] sm:$0xff]  ;;  %v166_v24 = vld [vmem:[%s641_s28 + $0x38] sm:$0xff]  ;;  %v167_v31 = vld [vmem:[%s641_s28 + $0x40] sm:$0xff] }
  0x39   : > { %v216_v17 = vmul.f32 %v161_v3, %v161_v3  ;;  %v186_v18 = vsel %vm176_vm1, %v164_v13, 0.0  ;;  %v217_v21 = vmul.f32 %v162_v7, %v162_v7  ;;  %v188_v22 = vsel %vm176_vm1, %v165_v19, 0.0  ;;  %v168_v37 = vld [vmem:[%s641_s28 + $0x48] sm:$0xff]  ;;  %v169_v43 = vld [vmem:[%s641_s28 + $0x50] sm:$0xff]  ;;  %v170_v49 = vld [vmem:[%s641_s28 + $0x58] sm:$0xff] }
  0x3a   : > { %v181_v11 = vadd.f32 %v180_v6, %v179_v8  ;;  %v218_v23 = vmul.f32 %v163_v10, %v163_v10  ;;  %v230_v26 = vsel %vm176_vm1, %v214_v15, 0.0  ;;  %v231_v27 = vsel %vm176_vm1, %v215_v16, 0.0  ;;  %v171_v55 = vld [vmem:[%s641_s28 + $0x60] sm:$0xff]  ;;  %v172_v61 = vld [vmem:[%s641_s28 + $0x68] sm:$0xff]  ;;  %v173_v3 = vld [vmem:[%s641_s28 + $0x70] sm:$0xff] }
  0x3b   : > { %v233_v28 = vsel %vm176_vm1, %v216_v17, 0.0  ;;  %v190_v29 = vsel %vm176_vm1, %v166_v24, 0.0  ;;  %v232_v30 = vadd.f32 %v231_v27, %v230_v26  ;;  %v219_v33 = vmul.f32 %v164_v13, %v164_v13 }
  0x3c   : > { %v183_v14 = vadd.f32 %v182_v9, %v181_v11  ;;  %v235_v34 = vsel %vm176_vm1, %v217_v21, 0.0  ;;  %v192_v35 = vsel %vm176_vm1, %v167_v31, 0.0  ;;  %v220_v39 = vmul.f32 %v165_v19, %v165_v19  ;;  %v174_v9 = vld [vmem:[%s641_s28 + $0x78] sm:$0xff] }
  0x3d   : > { %v234_v36 = vadd.f32 %v233_v28, %v232_v30  ;;  %v237_v40 = vsel %vm176_vm1, %v218_v23, 0.0  ;;  %v194_v41 = vsel %vm176_vm1, %v168_v37, 0.0  ;;  %v221_v45 = vmul.f32 %v166_v24, %v166_v24 }
  0x3e   : > { %v185_v20 = vadd.f32 %v184_v12, %v183_v14  ;;  %v239_v46 = vsel %vm176_vm1, %v219_v33, 0.0  ;;  %v196_v47 = vsel %vm176_vm1, %v169_v43, 0.0  ;;  %v222_v51 = vmul.f32 %v167_v31, %v167_v31 }
  0x3f   : > { %v236_v42 = vadd.f32 %v235_v34, %v234_v36  ;;  %v241_v52 = vsel %vm176_vm1, %v220_v39, 0.0  ;;  %v198_v53 = vsel %vm176_vm1, %v170_v49, 0.0  ;;  %v223_v57 = vmul.f32 %v168_v37, %v168_v37 }
  0x40   : > { %v187_v25 = vadd.f32 %v186_v18, %v185_v20  ;;  %v243_v58 = vsel %vm176_vm1, %v221_v45, 0.0  ;;  %v200_v59 = vsel %vm176_vm1, %v171_v55, 0.0  ;;  %v224_v63 = vmul.f32 %v169_v43, %v169_v43 }
  0x41   : > { %v238_v48 = vadd.f32 %v237_v40, %v236_v42  ;;  %v245_v0 = vsel %vm176_vm1, %v222_v51, 0.0  ;;  %v202_v1 = vsel %vm176_vm1, %v172_v61, 0.0  ;;  %v225_v5 = vmul.f32 %v170_v49, %v170_v49  ;;  %v175_v42 = vld [vmem:[%s652_s3] sm:$0x3] }
  0x42   : > { %v189_v32 = vadd.f32 %v188_v22, %v187_v25  ;;  %v247_v6 = vsel %vm176_vm1, %v223_v57, 0.0  ;;  %v204_v7 = vsel %vm176_vm1, %v173_v3, 0.0  ;;  %v226_v11 = vmul.f32 %v171_v55, %v171_v55 }
  0x43   : > { %v240_v54 = vadd.f32 %v239_v46, %v238_v48  ;;  %v249_v12 = vsel %vm176_vm1, %v224_v63, 0.0  ;;  %v206_v13 = vsel %vm176_vm1, %v174_v9, 0.0  ;;  %v227_v16 = vmul.f32 %v172_v61, %v172_v61 }
  0x44   : > { %v191_v38 = vadd.f32 %v190_v29, %v189_v32  ;;  %v251_v17 = vsel %vm176_vm1, %v225_v5, 0.0  ;;  %v228_v20 = vmul.f32 %v173_v3, %v173_v3  ;;  %v253_v21 = vsel %vm176_vm1, %v226_v11, 0.0 }
  0x45   : > { %v242_v60 = vadd.f32 %v241_v52, %v240_v54  ;;  %v229_v24 = vmul.f32 %v174_v9, %v174_v9  ;;  %v255_v25 = vsel %vm176_vm1, %v227_v16, 0.0 }
  0x46   : > { %v193_v44 = vadd.f32 %v192_v35, %v191_v38  ;;  %v257_v28 = vsel %vm176_vm1, %v228_v20, 0.0 }
  0x47   : > { %v244_v2 = vadd.f32 %v243_v58, %v242_v60  ;;  %v259_v30 = vsel %vm176_vm1, %v229_v24, 0.0 }
  0x48   : > { %v195_v50 = vadd.f32 %v194_v41, %v193_v44 }
  0x49   : > { %v246_v8 = vadd.f32 %v245_v0, %v244_v2 }
  0x4a   : > { %v197_v56 = vadd.f32 %v196_v47, %v195_v50 }
  0x4b   : > { %v248_v14 = vadd.f32 %v247_v6, %v246_v8 }
  0x4c   : > { %v199_v62 = vadd.f32 %v198_v53, %v197_v56 }
  0x4d   : > { %v250_v18 = vadd.f32 %v249_v12, %v248_v14 }
  0x4e   : > { %v201_v4 = vadd.f32 %v200_v59, %v199_v62 }
  0x4f   : > { %v252_v22 = vadd.f32 %v251_v17, %v250_v18 }
  0x50   : > { %v203_v10 = vadd.f32 %v202_v1, %v201_v4 }
  0x51   : > { %v254_v26 = vadd.f32 %v253_v21, %v252_v22 }
  0x52   : > { %v205_v15 = vadd.f32 %v204_v7, %v203_v10 }
  0x53   : > { %v256_v29 = vadd.f32 %v255_v25, %v254_v26 }
  0x54   : > { %v207_v19 = vadd.f32 %v206_v13, %v205_v15 }
  0x55   : > { %v258_v32 = vadd.f32 %v257_v28, %v256_v29 }
  0x56   : > { %v208_v23 = vrot.slane %v207_v19, 4 }
  0x57   : > { %v260_v33 = vadd.f32 %v259_v30, %v258_v32 }
  0x58   : > { %v209_v27 = vadd.f32 %v208_v23, %v207_v19 }
  0x59   : > { %v261_v35 = vrot.slane %v260_v33, 4 }
  0x5a   : > { %v210_v31 = vrot.slane %v209_v27, 2 }
  0x5b   : > { %v262_v36 = vadd.f32 %v261_v35, %v260_v33 }
  0x5c   : > { %v211_v34 = vadd.f32 %v210_v31, %v209_v27 }
  0x5d   : > { %v263_v38 = vrot.slane %v262_v36, 2 }
  0x5e   : > { %v212_v37 = vrot.slane %v211_v34, 1 }
  0x5f   : > { %v264_v39 = vadd.f32 %v263_v38, %v262_v36 }
  0x60   : > { %v213_v40 = vadd.f32 %v212_v37, %v211_v34 }
  0x61   : > { %v265_v41 = vrot.slane %v264_v39, 1 }
  0x63   : > { %v266_v43 = vadd.f32 %v265_v41, %v264_v39 }
  0x65   : > { %v268_v44 = vsel %vm267_vm2, %v213_v40, %v266_v43 }
  0x66   : > { %v269_v45 = vadd.f32 %v268_v44, %v175_v42 }
  0x68   : > { %271 = vst.msk [vmem:[%s652_s3] sm:$0x3] %vm270_vm3, %v269_v45 }
  0x69 PF: > { %s14_s13 = sadd.s32 1, %s535_s13   ;;  %s735_s6 = smov %s511_s7 }
  0x6a   : > { %p11_p7 = scmp.ge.s32.totalorder %s14_s13, 6   ;;  %s736_s7 = smov %s515_s8 }
  0x6b   : > { %s737_s8 = smov %s618_s26  ;;  %s738_s9 = smov %s527_s11 }
  0x6c   : > { %s739_s10 = smov %s531_s12  ;;  %s740_s11 = smov %s743_s15 }
  0x6d   : > { %s741_s12 = smov %s747_s16  ;;  %13 = sbr.rel (!%p11_p7) target bundleno = 5 (0x5), region = 68 }
  0x72   :  { %291 = vsyncpa [#allocation3], 1 }
  0x73   :  { %293 = vsyncpa [#allocation3 + $0x1], 1 }

// kernel: vae_residual_block.4
= control target key start
LH: loop header
LB: loop body
LE: loop exit
PB: predicated region body
PF: predicated region fallthrough
CT: control target
= control target key end

     0   :  { %s2380_s27 = smov 0   ;;  %s2382_s28 = smov 0   ;;  %s3270_s0 = inlined_call_operand.vmem [shape: f32[2,16,16,32], index: 0, kind: input, shape index: {}, may-alias: {0,1,2}]   ;;  %s3271_s1 = inlined_call_operand.vmem [shape: f32[2,16,16,32], index: 1, kind: input, shape index: {}, may-alias: {0,1,2}]   ;;  %s3272_s2 = inlined_call_operand.vmem [shape: f32[2,16,16,32], index: 2, kind: input, shape index: {}, may-alias: {0,1,2}]   ;;  %s3273_s3 = inlined_call_operand.vmem [shape: f32[2,1,32], index: 3, kind: input, shape index: {}]   ;;  %s3274_s4 = inlined_call_operand.vmem [shape: f32[2,1,32], index: 4, kind: input, shape index: {}]   ;;  %s3275_s5 = inlined_call_operand.vmem [shape: bf16[288,64], index: 5, kind: input, shape index: {}]   ;;  %s3276_s6 = inlined_call_operand.vmem [shape: f32[1,64], index: 6, kind: input, shape index: {}]   ;;  %s3277_s7 = inlined_call_operand.vmem [shape: f32[2,16,16,64], index: 7, kind: output, shape index: {0}]   ;;  %s3278_s8 = inlined_call_operand.vmem [shape: f32[2,2,64], index: 8, kind: output, shape index: {1}]  }
   0x1   :  { %s2384_s29 = smov 0   ;;  %s2386_s30 = smov 0  }
   0x2   :  { %s2388_s9 = smov 0  }
   0x3 LB: > { %s28_s10 = sadd.s32 1, %s2321_s29  ;;  %s31_s11 = sadd.s32 1, %s2325_s30  ;;  %s2329_s9 = sphi %s2388_s9, %s19_s9   ;;  %s2325_s30 = sphi %s2386_s30, %s3289_s30   ;;  %s2321_s29 = sphi %s2384_s29, %s3288_s29   ;;  %s2317_s28 = sphi %s2382_s28, %s3287_s28   ;;  %s2313_s27 = sphi %s2380_s27, %s3286_s27  }
   0x4   : > { %p29_p0 = scmp.ge.s32.totalorder %s28_s10, 2  ;;  %p1958_p1 = scmp.ge.s32.totalorder %s2329_s9, 1 }
   0x5   : > { %p367_p2 = scmp.lt.s32.totalorder %s2329_s9, 5 }
   0x6   : > { %s3291_s10 = smov (%p29_p0, %s28_s10), 0  ;;  %s3293_s11 = smov (!%p29_p0, %s31_s11), %s2325_s30 }
   0x7   : > { %p368_p3 = pnand %p1958_p1, %p367_p2  ;;  %p33_p4 = scmp.ge.s32.totalorder %s3293_s11, 2 }
   0x8   : > { %s2413_s12 = sshll.u32 (!%p368_p3), %s2313_s27, 3  ;;  %p451_p5 = scmp.lt.s32.totalorder (!%p368_p3), %s2317_s28, 1 }
   0x9   : > { %s3295_s11 = smov (%p33_p4, %s3293_s11), 0  ;;  %371 = sbr.rel (%p368_p3) target bundleno = 538 (0x21a), region = 48 }
   0xa   : > { %3279 = sst [smem:[#allocation2_spill]] %s3295_s11  ;;  %p467_p6 = scmp.lt.s32.totalorder (!%p368_p3), %s2413_s12, 15 }
   0xb   : > { %p732_p10 = scmp.lt.s32.totalorder (!%p368_p3), %s2313_s27, 1  ;;  %p728_p11 = scmp.gt.s32.totalorder (!%p368_p3), %s2313_s27, 0 }
   0xc   : > { %p2034_p12 = scmp.ne.s32.totalorder (!%p368_p3), %s2313_s27, 0 }
   0xe   : > { %s3297_s28 = smov (!%p451_p5, %s2317_s28), 1  ;;  %vm780_vm0 = vcmask 1040384   ;;  %vm1010_vm1 = vcmask 1046528   ;;  %vm881_vm3 = vsmask.f32 7424  ;;  %vm1149_vm5 = vcmask 261120  }
   0xf   : > { %s468_s13 = scalar_select %p467_p6, %s2413_s12, 15  ;;  %vm1166_vm6 = vcmask 523264   ;;  %vm1183_vm7 = vcmask 785408  }
  0x10   : > { %s2417_s14 = sshll.u32 %s3297_s28, 5  ;;  %s494_s17 = scalar_lea.vmem %s3273_s3, %s3297_s28 }
  0x11   : > { %s1970_s18 = sshll.u32 %s468_s13, 1  ;;  %s497_s21 = scalar_lea.vmem %s3274_s4, %s3297_s28  ;;  %v2428_v0 = vld [vmem:[%s494_s17] ss:$0 sm:$0xff] }
  0x12   : > { %s2426_s22 = sadd.s32 %s1970_s18, %s2417_s14  ;;  %s1984_s23 = sshll.u32 %s3297_s28, 1  ;;  %v2443_v1 = vld [vmem:[%s497_s21] ss:$0 sm:$0xff] }
  0x13   : > { %s1972_s24 = sshll.u32 %s2426_s22, 3  ;;  %s2434_s11 = scalar_lea.vmem %s3278_s8, %s1984_s23 }
  0x14   : > { %s2441_s16 = scalar_lea.vmem %s3271_s1, %s1972_s24  ;;  %s476_s28 = sadd.s32 8, %s2413_s12 }
  0x15   : > { %v530_v2 = vld [vmem:[%s2441_s16 + $0x70] sm:$0xff]  ;;  %v531_v3 = vld [vmem:[%s2441_s16 + $0x78] sm:$0xff]  ;;  %v520_v9 = vld [vmem:[%s2441_s16 + $0x20] sm:$0xff]  ;;  %p2455_p7 = scmp.lt.s32.totalorder %s476_s28, 15  ;;  %s2494_s18 = sadd.s32 4294967295, %s2413_s12 }
  0x16   : > { %v518_v4 = vld [vmem:[%s2441_s16 + $0x10] sm:$0xff]  ;;  %v558_v5 = vmul.f32 %v2428_v0, %v530_v2  ;;  %v559_v6 = vmul.f32 %v2428_v0, %v531_v3  ;;  %v519_v7 = vld [vmem:[%s2441_s16 + $0x18] sm:$0xff]  ;;  %v521_v10 = vld [vmem:[%s2441_s16 + $0x28] sm:$0xff]  ;;  %v548_v12 = vmul.f32 %v2428_v0, %v520_v9  ;;  %p449_p8 = scmp.gt.s32.totalorder %s2494_s18, 0  ;;  %p1961_p9 = scmp.lt.s32.totalorder %s2494_s18, 15 }
  0x17   : > { %v546_v8 = vmul.f32 %v2428_v0, %v518_v4  ;;  %v547_v11 = vmul.f32 %v2428_v0, %v519_v7  ;;  %v549_v13 = vmul.f32 %v2428_v0, %v521_v10  ;;  %v516_v14 = vld [vmem:[%s2441_s16] sm:$0xff]  ;;  %v517_v15 = vld [vmem:[%s2441_s16 + $0x8] sm:$0xff]  ;;  %v522_v20 = vld [vmem:[%s2441_s16 + $0x30] sm:$0xff]  ;;  %s3299_s28 = smov (!%p2455_p7, %s476_s28), 15  ;;  %s2333_s21 = smov 32  }
  0x18   : > { %v2465_v16 = vadd.f32 %v2443_v1, %v558_v5  ;;  %v2468_v17 = vadd.f32 %v2443_v1, %v559_v6  ;;  %v544_v19 = vmul.f32 %v2428_v0, %v516_v14  ;;  %v523_v21 = vld [vmem:[%s2441_s16 + $0x38] sm:$0xff]  ;;  %v2484_v23 = vadd.f32 %v2443_v1, %v548_v12  ;;  %v528_v26 = vld [vmem:[%s2441_s16 + $0x60] sm:$0xff]  ;;  %v529_v27 = vld [vmem:[%s2441_s16 + $0x68] sm:$0xff]  ;;  %s3301_s28 = smov (!%p2455_p7, %s3299_s28), 15 }
  0x19   : > { %v2471_v18 = vadd.f32 %v2443_v1, %v546_v8  ;;  %v2481_v22 = vadd.f32 %v2443_v1, %v547_v11  ;;  %v2487_v24 = vadd.f32 %v2443_v1, %v549_v13  ;;  %v545_v25 = vmul.f32 %v2428_v0, %v517_v15  ;;  %v526_v28 = vld [vmem:[%s2441_s16 + $0x50] sm:$0xff]  ;;  %v527_v40 = vld [vmem:[%s2441_s16 + $0x58] sm:$0xff]  ;;  %v524_v44 = vld [vmem:[%s2441_s16 + $0x40] sm:$0xff]  ;;  %s1977_s12 = sshll.u32 %s3301_s28, 1  ;;  %s2332_s28 = smov 96  }
  0x1a   : > { %v2003_v29 = vmul.f32 -1.442695, %v2465_v16  ;;  %v2004_v30 = vmul.f32 -1.442695, %v2468_v17  ;;  %v2500_v32 = vadd.f32 %v2443_v1, %v544_v19  ;;  %v1993_v34 = vmul.f32 -1.442695, %v2484_v23  ;;  %s485_s19 = sadd.s32 %s1977_s12, %s2417_s14 }
  0x1b   : > { %v1991_v31 = vmul.f32 -1.442695, %v2471_v18  ;;  %v1992_v33 = vmul.f32 -1.442695, %v2481_v22  ;;  %v1994_v35 = vmul.f32 -1.442695, %v2487_v24  ;;  %v2506_v36 = vadd.f32 %v2443_v1, %v545_v25 }
  0x1c   : > { %2211 = vpow2.f32 %v2003_v29  ;;  %v1989_v37 = vmul.f32 -1.442695, %v2500_v32  ;;  %v550_v38 = vmul.f32 %v2428_v0, %v522_v20  ;;  %v551_v39 = vmul.f32 %v2428_v0, %v523_v21  ;;  %v525_v51 = vld [vmem:[%s2441_s16 + $0x48] sm:$0xff]  ;;  %s1979_s20 = sshll.u32 %s485_s19, 3  ;;  %s2331_s19 = smov 64  }
  0x1d   : > { %2213 = vpow2.f32 %v2004_v30  ;;  %v1990_v41 = vmul.f32 -1.442695, %v2506_v36  ;;  %v556_v42 = vmul.f32 %v2428_v0, %v528_v26  ;;  %v557_v43 = vmul.f32 %v2428_v0, %v529_v27  ;;  %s487_s25 = scalar_lea.vmem %s3272_s2, %s1979_s20 }
  0x1e   : > { %2215 = vpow2.f32 %v1991_v31  ;;  %v2520_v45 = vadd.f32 %v2443_v1, %v550_v38  ;;  %v2523_v46 = vadd.f32 %v2443_v1, %v551_v39  ;;  %v554_v47 = vmul.f32 %v2428_v0, %v526_v28  ;;  %v532_v59 = vld [vmem:[%s487_s25] sm:$0xff]  ;;  %v533_v60 = vld [vmem:[%s487_s25 + $0x8] sm:$0xff]  ;;  %s450_s26 = scalar_select %p449_p8, %s2494_s18, 0 }
  0x1f   : > { %2217 = vpow2.f32 %v1992_v33  ;;  %v2528_v48 = vadd.f32 %v2443_v1, %v556_v42  ;;  %v2531_v49 = vadd.f32 %v2443_v1, %v557_v43  ;;  %v555_v50 = vmul.f32 %v2428_v0, %v527_v40  ;;  %s2681_s17 = scalar_select %p732_p10, 1, 0 }
  0x20   : > { %2219 = vpow2.f32 %v1993_v34  ;;  %v1995_v52 = vmul.f32 -1.442695, %v2520_v45  ;;  %v1996_v53 = vmul.f32 -1.442695, %v2523_v46  ;;  %v2539_v54 = vadd.f32 %v2443_v1, %v554_v47  ;;  %s3303_s26 = smov (!%p1961_p9, %s450_s26), 15 }
  0x21   : > { %2221 = vpow2.f32 %v1994_v35  ;;  %v2001_v55 = vmul.f32 -1.442695, %v2528_v48  ;;  %v2002_v56 = vmul.f32 -1.442695, %v2531_v49  ;;  %v2545_v57 = vadd.f32 %v2443_v1, %v555_v50  ;;  %s1966_s15 = sshll.u32 %s3303_s26, 1  ;;  %s3074_s26 = scalar_lea.vmem %s3277_s7, %s1972_s24 }
  0x22   : > { %2223 = vpow2.f32 %v1989_v37  ;;  %v1999_v58 = vmul.f32 -1.442695, %v2539_v54  ;;  %v552_v61 = vmul.f32 %v2428_v0, %v524_v44  ;;  %v560_v63 = vmul.f32 %v2428_v0, %v532_v59  ;;  %s457_s13 = sadd.s32 %s2417_s14, %s1966_s15 }
  0x23   : > { %2225 = vpow2.f32 %v1990_v41  ;;  %v2000_v62 = vmul.f32 -1.442695, %v2545_v57  ;;  %v561_v2 = vmul.f32 %v2428_v0, %v533_v60  ;;  %v553_v3 = vmul.f32 %v2428_v0, %v525_v51  ;;  %s1968_s16 = sshll.u32 %s457_s13, 3 }
  0x24   : > { %2227 = vpow2.f32 %v1995_v52  ;;  %v2562_v4 = vadd.f32 %v2443_v1, %v552_v61  ;;  %v2565_v5 = vadd.f32 %v2443_v1, %v560_v63  ;;  %s459_s14 = scalar_lea.vmem %s3270_s0, %s1968_s16 }
  0x25   : > { %2229 = vpow2.f32 %v1996_v53  ;;  %v2568_v6 = vadd.f32 %v2443_v1, %v561_v2  ;;  %v2571_v7 = vadd.f32 %v2443_v1, %v553_v3  ;;  %v514_v31 = vld [vmem:[%s459_s14] sm:$0xff]  ;;  %v515_v38 = vld [vmem:[%s459_s14 + $0x8] sm:$0xff]  ;;  %s729_s25 = scalar_select %p728_p11, 1, 0 }
  0x26   : > { %2231 = vpow2.f32 %v2001_v55  ;;  %v2005_v8 = vmul.f32 -1.442695, %v2565_v5  ;;  %v542_v41 = vmul.f32 %v2428_v0, %v514_v31  ;;  %v543_v50 = vmul.f32 %v2428_v0, %v515_v38 }
  0x27   : > { %2233 = vpow2.f32 %v2002_v56  ;;  %v2006_v9 = vmul.f32 -1.442695, %v2568_v6 }
  0x28   : > { %2235 = vpow2.f32 %v1999_v58  ;;  %v2582_v56 = vadd.f32 %v2443_v1, %v542_v41  ;;  %v2585_v61 = vadd.f32 %v2443_v1, %v543_v50 }
  0x29   : > { %v2212_v10 = vpop.eup %2211  ;;  %2237 = vpow2.f32 %v2000_v62 }
  0x2a   : > { %v2214_v11 = vpop.eup %2213  ;;  %v664_v12 = vadd.f32 1.0, %v2212_v10  ;;  %2239 = vpow2.f32 %v2005_v8  ;;  %v1987_v8 = vmul.f32 -1.442695, %v2582_v56 }
  0x2b   : > { %v2216_v13 = vpop.eup %2215  ;;  %v665_v14 = vadd.f32 1.0, %v2214_v11  ;;  %2241 = vpow2.f32 %v2006_v9 }
  0x2c   : > { %v2218_v15 = vpop.eup %2217  ;;  %2243 = vrcp.f32 %v664_v12  ;;  %v652_v19 = vadd.f32 1.0, %v2216_v13 }
  0x2d   : > { %v2220_v20 = vpop.eup %2219  ;;  %2245 = vrcp.f32 %v665_v14  ;;  %v653_v21 = vadd.f32 1.0, %v2218_v15 }
  0x2e   : > { %v2222_v25 = vpop.eup %2221  ;;  %2247 = vrcp.f32 %v652_v19  ;;  %v654_v26 = vadd.f32 1.0, %v2220_v20  ;;  %v2193_v20 = vld [vmem:[%s3275_s5 + $0x78] sm:$0xff]  }
  0x2f   : > { %v2224_v27 = vpop.eup %2223  ;;  %2249 = vrcp.f32 %v653_v21  ;;  %v655_v28 = vadd.f32 1.0, %v2222_v25  ;;  %2133 = vmatprep.subr.bf16.mxu1 %v2193_v20  ;;  %2039 = vmatprep.subr.bf16.mxu0 %v2193_v20 }
  0x30   : > { %v2226_v29 = vpop.eup %2225  ;;  %2251 = vrcp.f32 %v654_v26  ;;  %v650_v30 = vadd.f32 1.0, %v2224_v27 }
  0x31   : > { %v2228_v33 = vpop.eup %2227  ;;  %2253 = vrcp.f32 %v655_v28  ;;  %v651_v34 = vadd.f32 1.0, %v2226_v29 }
  0x32   : > { %v2230_v35 = vpop.eup %2229  ;;  %2255 = vrcp.f32 %v650_v30  ;;  %v656_v37 = vadd.f32 1.0, %v2228_v33 }
  0x33   : > { %v2232_v39 = vpop.eup %2231  ;;  %2257 = vrcp.f32 %v651_v34  ;;  %v657_v40 = vadd.f32 1.0, %v2230_v35 }
  0x34   : > { %v2234_v42 = vpop.eup %2233  ;;  %2259 = vrcp.f32 %v656_v37  ;;  %v662_v43 = vadd.f32 1.0, %v2232_v39  ;;  %v2194_v39 = vld [vmem:[%s3275_s5 + $0x38] sm:$0xff]  }
  0x35   : > { %v2236_v44 = vpop.eup %2235  ;;  %2261 = vrcp.f32 %v657_v40  ;;  %v663_v47 = vadd.f32 1.0, %v2234_v42  ;;  %2141 = vmatpush3.bf16.msra.mxu1 %v2194_v39  ;;  %2040 = vmatpush3.bf16.msra.mxu0 %v2194_v39 }
  0x36   : > { %v2238_v51 = vpop.eup %2237  ;;  %2263 = vrcp.f32 %v662_v43  ;;  %v660_v52 = vadd.f32 1.0, %v2236_v44 }
  0x37   : > { %v2240_v53 = vpop.eup %2239  ;;  %2265 = vrcp.f32 %v663_v47  ;;  %v661_v55 = vadd.f32 1.0, %v2238_v51 }
  0x38   : > { %v2242_v58 = vpop.eup %2241  ;;  %2267 = vrcp.f32 %v660_v52  ;;  %v666_v60 = vadd.f32 1.0, %v2240_v53 }
  0x39   : > { %v2244_v59 = vpop.eup %2243  ;;  %2269 = vrcp.f32 %v661_v55  ;;  %v667_v63 = vadd.f32 1.0, %v2242_v58 }
  0x3a   : > { %v2246_v62 = vpop.eup %2245  ;;  %v724_v0 = vmul.f32 %v2244_v59, %v2465_v16  ;;  %2271 = vrcp.f32 %v666_v60  ;;  %v1988_v16 = vmul.f32 -1.442695, %v2585_v61 }
  0x3b   : > { %v2248_v2 = vpop.eup %2247  ;;  %v2589_v3 = vmul.f32 %v2246_v62, %v2468_v17  ;;  %2273 = vrcp.f32 %v667_v63 }
  0x3c   : > { %v2250_v9 = vpop.eup %2249  ;;  %v805_v10 = vrot.slane %v724_v0, 7  ;;  %v712_v11 = vmul.f32 %v2248_v2, %v2471_v18  ;;  %2275 = vpow2.f32 %v1987_v8  ;;  %v2197_v2 = vld [vmem:[%s3275_s5 + $0x68] sm:$0xff]  }
  0x3d   : > { %v2252_v12 = vpop.eup %2251  ;;  %v806_v13 = vrot.slane %v2589_v3, 7  ;;  %v713_v1 = vmul.f32 %v2250_v9, %v2481_v22  ;;  %2277 = vpow2.f32 %v1988_v16  ;;  %v1997_v3 = vmul.f32 -1.442695, %v2562_v4 }
  0x3e   : > { %v2254_v14 = vpop.eup %2253  ;;  %v849_v15 = vsel %vm780_vm0, 0.0, %v805_v10  ;;  %v787_v17 = vrot.slane %v712_v11, 7  ;;  %v714_v19 = vmul.f32 %v2252_v12, %v2484_v23 }
  0x3f   : > { %v2256_v18 = vpop.eup %2255  ;;  %v807_v21 = vsel %vm780_vm0, %v805_v10, %v806_v13  ;;  %v788_v22 = vrot.slane %v713_v1, 7  ;;  %v2605_v25 = vmul.f32 %v2254_v14, %v2487_v24  ;;  %2279 = vpow2.f32 %v1997_v3 }
  0x40   : > { %v2258_v26 = vpop.eup %2257  ;;  %v2607_v27 = vpack.c.bf16 %v807_v21, %v849_v15  ;;  %v843_v23 = vsel %vm780_vm0, 0.0, %v787_v17  ;;  %v790_v28 = vrot.slane %v714_v19, 7  ;;  %v710_v29 = vmul.f32 %v2256_v18, %v2500_v32 }
  0x41   : > { %v2260_v30 = vpop.eup %2259  ;;  %v789_v31 = vsel %vm780_vm0, %v787_v17, %v788_v22  ;;  %v791_v33 = vrot.slane %v2605_v25, 7  ;;  %v711_v24 = vmul.f32 %v2258_v26, %v2506_v36  ;;  %v2195_v36 = vld [vmem:[%s3275_s5 + $0x70] sm:$0xff]   ;;  %v853_v44 = vsel %vm780_vm0, %v788_v22, 0.0  ;;  %v2198_v22 = vld [vmem:[%s3275_s5 + $0x28] sm:$0xff]   ;;  %v2199_v26 = vld [vmem:[%s3275_s5 + $0x60] sm:$0xff]  }
  0x42   : > { %v2262_v34 = vpop.eup %2261  ;;  %1113 = vrot.lane.b32.xlu0 %v2607_v27, %s2331_s19  ;;  %v2616_v35 = vpack.c.bf16 %v789_v31, %v843_v23  ;;  %v844_v32 = vsel %vm780_vm0, 0.0, %v790_v28  ;;  %v784_v37 = vrot.slane %v710_v29, 7  ;;  %v716_v38 = vmul.f32 %v2260_v30, %v2520_v45  ;;  %2134 = vmatprep.subr.bf16.mxu1 %v2195_v36 }
  0x43   : > { %v2264_v40 = vpop.eup %2263  ;;  %v792_v41 = vsel %vm780_vm0, %v790_v28, %v791_v33  ;;  %v785_v42 = vrot.slane %v711_v24, 7  ;;  %v2630_v43 = vmul.f32 %v2262_v34, %v2523_v46  ;;  %2041 = vmatprep.subr.bf16.mxu0 %v2195_v36  ;;  %v2677_v21 = vpack.c.bf16 %v853_v44, %v853_v44  ;;  %v2201_v44 = vld [vmem:[%s3275_s5 + $0x58] sm:$0xff]  }
  0x44   : > { %v2266_v45 = vpop.eup %2265  ;;  %1101 = vrot.lane.b32.xlu1 %v2616_v35, %s2331_s19  ;;  %v2635_v47 = vpack.c.bf16 %v792_v41, %v844_v32  ;;  %v842_v50 = vsel %vm780_vm0, 0.0, %v784_v37  ;;  %v793_v51 = vrot.slane %v716_v38, 7  ;;  %v722_v52 = vmul.f32 %v2264_v40, %v2528_v48 }
  0x45   : > { %v2268_v53 = vpop.eup %2267  ;;  %v786_v55 = vsel %vm780_vm0, %v784_v37, %v785_v42  ;;  %v794_v46 = vrot.slane %v2630_v43, 7  ;;  %v723_v58 = vmul.f32 %v2266_v45, %v2531_v49  ;;  %v852_v59 = vsel %vm780_vm0, %v785_v42, 0.0  ;;  %v2196_v49 = vld [vmem:[%s3275_s5 + $0x30] sm:$0xff]  }
  0x46   : > { %v2270_v60 = vpop.eup %2269  ;;  %1103 = vrot.lane.b32.xlu0 %v2635_v47, %s2331_s19  ;;  %v2645_v62 = vpack.c.bf16 %v786_v55, %v842_v50  ;;  %v845_v48 = vsel %vm780_vm0, 0.0, %v793_v51  ;;  %v802_v0 = vrot.slane %v722_v52, 7  ;;  %v2648_v63 = vpack.c.bf16 %v852_v59, %v852_v59  ;;  %2142 = vmatpush3.bf16.msra.mxu1 %v2196_v49 }
  0x47   : > { %v795_v8 = vsel %vm780_vm0, %v793_v51, %v794_v46  ;;  %v803_v9 = vrot.slane %v723_v58, 7  ;;  %v720_v10 = vmul.f32 %v2268_v53, %v2539_v54  ;;  %v721_v11 = vmul.f32 %v2270_v60, %v2545_v57  ;;  %2135 = vmatprep.subr.bf16.mxu1 %v2197_v2  ;;  %2042 = vmatpush3.bf16.msra.mxu0 %v2196_v49  ;;  %v2272_v19 = vpop.eup %2271 }
  0x48   : > { %1052 = vrot.lane.b32.xlu1 %v2645_v62, %s2332_s28  ;;  %v2664_v12 = vpack.c.bf16 %v795_v8, %v845_v48  ;;  %v848_v1 = vsel %vm780_vm0, 0.0, %v802_v0  ;;  %v1014_v16 = vrot.slane %v2645_v62, 1  ;;  %v1015_v14 = vrot.slane %v2648_v63, 1  ;;  %2043 = vmatprep.subr.bf16.mxu0 %v2197_v2  ;;  %v2274_v23 = vpop.eup %2273 }
  0x49   : > { %v804_v15 = vsel %vm780_vm0, %v802_v0, %v803_v9  ;;  %v858_v54 = vsel %vm780_vm0, %v803_v9, 0.0  ;;  %v799_v17 = vrot.slane %v720_v10, 7  ;;  %v800_v57 = vrot.slane %v721_v11, 7  ;;  %v2276_v24 = vpop.eup %2275 }
  0x4a   : > { %1105 = vrot.lane.b32.xlu0 %v2664_v12, %s2331_s19  ;;  %v2673_v20 = vpack.c.bf16 %v804_v15, %v848_v1  ;;  %v2675_v18 = vpack.c.bf16 %v858_v54, %v858_v54  ;;  %v2690_v28 = vsel %vm1010_vm1, %v1014_v16, %v1015_v14  ;;  %v859_v37 = vsel %vm780_vm0, %v806_v13, 0.0  ;;  %2143 = vmatpush3.bf16.msra.mxu1 %v2198_v22  ;;  %v2278_v36 = vpop.eup %2277  ;;  %v2200_v13 = vld [vmem:[%s3275_s5 + $0x20] sm:$0xff]   ;;  %v2204_v1 = vld [vmem:[%s3275_s5 + $0x10] sm:$0xff]   ;;  %v2205_v16 = vld [vmem:[%s3275_s5 + $0x48] sm:$0xff]  }
  0x4b   : > { %v801_v29 = vsel %vm780_vm0, %v799_v17, %v800_v57  ;;  %v847_v30 = vsel %vm780_vm0, 0.0, %v799_v17  ;;  %v857_v31 = vsel %vm780_vm0, %v800_v57, 0.0  ;;  %2136 = vmatprep.subr.bf16.mxu1 %v2199_v26  ;;  %2044 = vmatpush3.bf16.msra.mxu0 %v2198_v22  ;;  %v1017_v40 = vrot.slane %v2616_v35, 1 }
  0x4c   : > { %1064 = vrot.lane.b32.xlu1 %v2673_v20, %s2332_s28  ;;  %v1032_v34 = vrot.slane %v2673_v20, 1  ;;  %v1033_v32 = vrot.slane %v2675_v18, 1  ;;  %v2702_v38 = vpack.c.bf16 %v801_v29, %v847_v30  ;;  %v2704_v39 = vpack.c.bf16 %v857_v31, %v857_v31  ;;  %2045 = vmatprep.subr.bf16.mxu0 %v2199_v26 }
  0x4d   : > { %v1018_v41 = vrot.slane %v2677_v21, 1  ;;  %v734_v42 = vstv %s2681_s17  ;;  %v2721_v50 = vpack.c.bf16 %v859_v37, %v859_v37  ;;  %v854_v51 = vsel %vm780_vm0, %v791_v33, 0.0  ;;  %v2203_v33 = vld [vmem:[%s3275_s5 + $0x50] sm:$0xff]  }
  0x4e   : > { %1084 = vrot.lane.b32.xlu0 %v2690_v28, %s2333_s21  ;;  %v2719_v45 = vsel %vm1010_vm1, %v1032_v34, %v1033_v32  ;;  %v726_v52 = vmul.f32 %v2272_v19, %v2565_v5  ;;  %v727_v53 = vmul.f32 %v2274_v23, %v2568_v6  ;;  %2144 = vmatpush3.bf16.msra.mxu1 %v2200_v13  ;;  %v1029_v55 = vrot.slane %v2702_v38, 1  ;;  %v2202_v6 = vld [vmem:[%s3275_s5 + $0x18] sm:$0xff]  }
  0x4f   : > { %v1030_v58 = vrot.slane %v2704_v39, 1  ;;  %vm2732_vm2 = vcmp.eq.s32.totalorder %v734_v42, 1  ;;  %2137 = vmatprep.subr.bf16.mxu1 %v2201_v44  ;;  %2046 = vmatpush3.bf16.msra.mxu0 %v2200_v13  ;;  %v2739_v25 = vsel %vm1010_vm1, %v1017_v40, %v1018_v41  ;;  %v2741_v5 = vpack.c.bf16 %v854_v51, %v854_v51 }
  0x50   : > { %1054 = vrot.lane.b32.xlu1 %v2616_v35, %s2332_s28  ;;  %2047 = vmatprep.subr.bf16.mxu0 %v2201_v44  ;;  %v1081_v60 = vrot.slane %v2607_v27, 1  ;;  %v1082_v48 = vrot.slane %v2721_v50, 1  ;;  %v648_v0 = vadd.f32 1.0, %v2276_v24  ;;  %v649_v49 = vadd.f32 1.0, %v2278_v36  ;;  %v2280_v36 = vpop.eup %2279  ;;  %v2207_v44 = vld [vmem:[%s3275_s5 + $0x40] sm:$0xff]  }
  0x51   : > { %v758_v2 = vsel %vm2732_vm2, %v726_v52, 0.0  ;;  %v759_v8 = vsel %vm2732_vm2, %v727_v53, 0.0  ;;  %v2758_v9 = vsel %vm1010_vm1, %v1029_v55, %v1030_v58  ;;  %v1020_v10 = vrot.slane %v2635_v47, 1 }
  0x52   : > { %1096 = vrot.lane.b32.xlu0 %v2719_v45, %s2333_s21  ;;  %2145 = vmatpush3.bf16.msra.mxu1 %v2202_v6  ;;  %2281 = vrcp.f32 %v648_v0  ;;  %v1021_v11 = vrot.slane %v2741_v5, 1  ;;  %v2771_v14 = vsel %vm1010_vm1, %v1081_v60, %v1082_v48  ;;  %v808_v15 = vrot.slane %v758_v2, 7 }
  0x53   : > { %2138 = vmatprep.subr.bf16.mxu1 %v2203_v33  ;;  %2048 = vmatpush3.bf16.msra.mxu0 %v2202_v6  ;;  %2283 = vrcp.f32 %v649_v49  ;;  %v2773_v54 = vrot.slane %v759_v8, 7  ;;  %v909_v17 = vshll.u32 %v2616_v35, 16  ;;  %v1071_v57 = vshll.u32 %v2607_v27, 16 }
  0x54   : > { %1066 = vrot.lane.b32.xlu1 %v2607_v27, %s2332_s28  ;;  %2049 = vmatprep.subr.bf16.mxu0 %v2203_v33  ;;  %v907_v19 = vshrl.u32 %v2616_v35, 16  ;;  %v914_v22 = vshll.u32 %v2677_v21, 16  ;;  %v1998_v26 = vmul.f32 -1.442695, %v2571_v7  ;;  %v2786_v23 = vsel %vm1010_vm1, %v1020_v10, %v1021_v11 }
  0x55   : > { %v810_v29 = vsel %vm780_vm0, %v808_v15, %v2773_v54  ;;  %v850_v30 = vsel %vm780_vm0, 0.0, %v808_v15  ;;  %v911_v31 = vrot.slane %v909_v17, 1  ;;  %v1069_v24 = vshrl.u32 %v2607_v27, 16  ;;  %v2206_v27 = vld [vmem:[%s3275_s5 + $0x8] sm:$0xff]  }
  0x56   : > { %1086 = vrot.lane.b32.xlu0 %v2739_v25, %s2333_s21  ;;  %2146 = vmatpush3.bf16.msra.mxu1 %v2204_v1  ;;  %v1073_v21 = vrot.slane %v1071_v57, 1  ;;  %v1076_v34 = vshll.u32 %v2721_v50, 16  ;;  %v2799_v32 = vpack.c.bf16 %v810_v29, %v850_v30  ;;  %v921_v37 = vshll.u32 %v2635_v47, 16 }
  0x57   : > { %2139 = vmatprep.subr.bf16.mxu1 %v2205_v16  ;;  %2050 = vmatpush3.bf16.msra.mxu0 %v2204_v1  ;;  %2285 = vpow2.f32 %v1998_v26  ;;  %v912_v40 = vor.u32 %v911_v31, %v907_v19  ;;  %v916_v41 = vrot.slane %v914_v22, 1  ;;  %v730_v42 = vstv %s729_s25 }
  0x58   : > { %1047 = vrot.lane.b32.xlu1 %v2758_v9, %s2331_s19  ;;  %2051 = vmatprep.subr.bf16.mxu0 %v2205_v16  ;;  %v1078_v3 = vrot.slane %v1076_v34, 1  ;;  %v957_v13 = vshll.u32 %v2702_v38, 16  ;;  %vm2813_vm4 = vcmp.eq.s32.totalorder %v730_v42, 1  ;;  %v919_v52 = vshrl.u32 %v2635_v47, 16 }
  0x59   : > { %v923_v53 = vrot.slane %v921_v37, 1  ;;  %v926_v55 = vshll.u32 %v2741_v5, 16  ;;  %v2820_v59 = vsel %vm881_vm3, %v912_v40, %v916_v41  ;;  %v658_v33 = vadd.f32 1.0, %v2280_v36 }
  0x5a   : > { %1098 = vrot.lane.b32.xlu0 %v2771_v14, %s2333_s21  ;;  %2147 = vmatpush3.bf16.msra.mxu1 %v2206_v27  ;;  %v955_v48 = vshrl.u32 %v2702_v38, 16  ;;  %v962_v0 = vshll.u32 %v2704_v39, 16  ;;  %v855_v5 = vsel %vm780_vm0, %v794_v46, 0.0  ;;  %v897_v8 = vshll.u32 %v2645_v62, 16 }
  0x5b   : > { %2140 = vmatprep.subr.bf16.mxu1 %v2207_v44  ;;  %2052 = vmatpush3.bf16.msra.mxu0 %v2206_v27  ;;  %v924_v39 = vor.u32 %v923_v53, %v919_v52  ;;  %v928_v10 = vrot.slane %v926_v55, 1  ;;  %v870_v1 = vpack.c.bf16 %v855_v5, %v855_v5  ;;  %v933_v16 = vshll.u32 %v2664_v12, 16 }
  0x5c   : > { %1037 = vrot.lane.b32.xlu1 %v2690_v28, %s2331_s19  ;;  %v1074_v28 = vor.u32 %v1073_v21, %v1069_v24  ;;  %2053 = vmatprep.subr.bf16.mxu0 %v2207_v44  ;;  %2287 = vrcp.f32 %v658_v33  ;;  %v964_v17 = vrot.slane %v962_v0, 1  ;;  %v895_v57 = vshrl.u32 %v2645_v62, 16 }
  0x5d   : > { %v902_v29 = vshll.u32 %v2648_v63, 16  ;;  %v899_v24 = vrot.slane %v897_v8, 1  ;;  %v969_v21 = vshll.u32 %v2673_v20, 16  ;;  %v2856_v37 = vsel %vm881_vm3, %v924_v39, %v928_v10  ;;  %v2885_v39 = vld [vmem:[%s3275_s5 + $0x88] sm:$0xff]  }
  0x5e   : > { %1088 = vrot.lane.b32.xlu0 %v2786_v23, %s2333_s21  ;;  %v2837_v2 = vsel %vm881_vm3, %v1074_v28, %v1078_v3  ;;  %v931_v36 = vshrl.u32 %v2664_v12, 16  ;;  %v935_v40 = vrot.slane %v933_v16, 1  ;;  %v938_v41 = vshll.u32 %v870_v1, 16 }
  0x5f   : > { %v2282_v50 = vpop.eup %2281  ;;  %v967_v3 = vshrl.u32 %v2673_v20, 16  ;;  %v904_v52 = vrot.slane %v902_v29, 1  ;;  %v900_v55 = vor.u32 %v899_v24, %v895_v57  ;;  %v971_v33 = vrot.slane %v969_v21, 1 }
  0x60   : > { %1049 = vrot.lane.b32.xlu1 %v2719_v45, %s2331_s19  ;;  %v2284_v58 = vpop.eup %2283  ;;  %v708_v6 = vmul.f32 %v2282_v50, %v2582_v56  ;;  %v2208_v56 = vld [vmem:[%s3275_s5] sm:$0xff]   ;;  %v940_v0 = vrot.slane %v938_v41, 1  ;;  %v860_v10 = vsel %vm780_vm0, %v2773_v54, 0.0 }
  0x61   : > { %v709_v60 = vmul.f32 %v2284_v58, %v2585_v61  ;;  %v959_v61 = vrot.slane %v957_v13, 1  ;;  %2148 = vmatpush3.bf16.msra.mxu1 %v2208_v56  ;;  %2054 = vmatpush3.bf16.msra.mxu0 %v2208_v56  ;;  %v974_v58 = vshll.u32 %v2675_v18, 16  ;;  %v2877_v8 = vsel %vm881_vm3, %v900_v55, %v904_v52 }
  0x62   : > { %1115 = vrot.lane.b32.xlu0 %v2799_v32, %s2331_s19  ;;  %v740_v49 = vsel %vm2813_vm4, %v708_v6, 0.0  ;;  %v972_v18 = vor.u32 %v971_v33, %v967_v3  ;;  %2113 = vmatprep.subr.bf16.mxu1 %v2885_v39  ;;  %v1146_v55 = vrot.slane %v2799_v32, 1 }
  0x63   : > { %v741_v43 = vsel %vm2813_vm4, %v709_v60, 0.0  ;;  %v781_v46 = vrot.slane %v740_v49, 7  ;;  %v960_v26 = vor.u32 %v959_v61, %v955_v48  ;;  %v936_v48 = vor.u32 %v935_v40, %v931_v36 }
  0x64   : > { %1039 = vrot.lane.b32.xlu1 %v2739_v25, %s2331_s19  ;;  %v782_v11 = vrot.slane %v741_v43, 7  ;;  %v2286_v34 = vpop.eup %2285  ;;  %v976_v56 = vrot.slane %v974_v58, 1  ;;  %v1023_v49 = vrot.slane %v2664_v12, 1 }
  0x65   : > { %v841_v15 = vsel %vm780_vm0, 0.0, %v781_v46  ;;  %v659_v44 = vadd.f32 1.0, %v2286_v34  ;;  %v2865_v51 = vsel %vm881_vm3, %v960_v26, %v964_v17  ;;  %v2880_v43 = vsel %vm881_vm3, %v936_v48, %v940_v0 }
  0x66   : > { %1129 = vrot.lane.b32.xlu0 %v2820_v59, %s2332_s28  ;;  %v783_v19 = vsel %vm780_vm0, %v781_v46, %v782_v11  ;;  %v851_v22 = vsel %vm780_vm0, %v782_v11, 0.0  ;;  %v1024_v46 = vrot.slane %v870_v1, 1  ;;  %v2895_v16 = vsel %vm881_vm3, %v972_v18, %v976_v56 }
  0x67   : > { %v2850_v30 = vpack.c.bf16 %v783_v19, %v841_v15  ;;  %v862_v31 = vpack.c.bf16 %v851_v22, %v851_v22  ;;  %2289 = vrcp.f32 %v659_v44  ;;  %v880_v15 = vpack.c.bf16 %v860_v10, %v860_v10 }
  0x68   : > { %v2898_v1 = vsel %vm1010_vm1, %v1023_v49, %v1024_v46  ;;  %v1120_v17 = vshll.u32 %v2799_v32, 16  ;;  %v1118_v19 = vshrl.u32 %v2799_v32, 16 }
  0x69   : > { %v1011_v42 = vrot.slane %v2850_v30, 1  ;;  %v1012_v63 = vrot.slane %v862_v31, 1  ;;  %v883_v27 = vshrl.u32 %v2850_v30, 16  ;;  %v885_v28 = vshll.u32 %v2850_v30, 16  ;;  %v2288_v61 = vpop.eup %2287 }
  0x6a   : > { %1141 = vrot.lane.b32.xlu0 %v2837_v2, %s2332_s28  ;;  %v890_v13 = vshll.u32 %v862_v31, 16  ;;  %v718_v11 = vmul.f32 %v2288_v61, %v2562_v4  ;;  %v1122_v22 = vrot.slane %v1120_v17, 1  ;;  %v1125_v26 = vshll.u32 %v880_v15, 16 }
  0x6b   : > { %v1013_v50 = vsel %vm1010_vm1, %v1011_v42, %v1012_v63  ;;  %v887_v53 = vrot.slane %v885_v28, 1  ;;  %v1147_v58 = vrot.slane %v880_v15, 1 }
  0x6c   : > { %1035 = vrot.lane.b32.xlu1 %v1013_v50, %s2331_s19  ;;  %v892_v6 = vrot.slane %v890_v13, 1  ;;  %v796_v54 = vrot.slane %v718_v11, 7  ;;  %v1123_v21 = vor.u32 %v1122_v22, %v1118_v19  ;;  %v1127_v34 = vrot.slane %v1125_v26, 1 }
  0x6d   : > { %v888_v60 = vor.u32 %v887_v53, %v883_v27 }
  0x6e   : > { %1131 = vrot.lane.b32.xlu0 %v2856_v37, %s2332_s28  ;;  %v846_v31 = vsel %vm780_vm0, 0.0, %v796_v54  ;;  %v1128_v27 = vsel %vm881_vm3, %v1123_v21, %v1127_v34 }
  0x6f   : > { %v893_v5 = vsel %vm881_vm3, %v888_v60, %v892_v6  ;;  %v2954_v6 = vsel %vm1010_vm1, %v1146_v55, %v1147_v58 }
  0x70   : > { %990 = vrot.lane.b32.xlu1 %v2865_v51, %s2333_s21 }
  0x72   : > { %978 = vrot.lane.b32.xlu0 %v893_v5, %s2333_s21 }
  0x74   : > { %980 = vrot.lane.b32.xlu1 %v2877_v8, %s2333_s21  ;;  %v2290_v57 = vpop.eup %2289 }
  0x75   : > { %v719_v4 = vmul.f32 %v2290_v57, %v2571_v7 }
  0x76   : > { %1133 = vrot.lane.b32.xlu0 %v2880_v43, %s2332_s28 }
  0x77   : > { %v797_v29 = vrot.slane %v719_v4, 7 }
  0x78   : > { %992 = vrot.lane.b32.xlu1 %v2895_v16, %s2333_s21 }
  0x79   : > { %v798_v24 = vsel %vm780_vm0, %v796_v54, %v797_v29  ;;  %v856_v36 = vsel %vm780_vm0, %v797_v29, 0.0 }
  0x7a   : > { %1090 = vrot.lane.b32.xlu0 %v2898_v1, %s2333_s21  ;;  %v2913_v40 = vpack.c.bf16 %v798_v24, %v846_v31  ;;  %v872_v41 = vpack.c.bf16 %v856_v36, %v856_v36 }
  0x7c   : > { %982 = vrot.lane.b32.xlu1 %v2820_v59, %s2333_s21  ;;  %v943_v7 = vshrl.u32 %v2913_v40, 16  ;;  %v945_v42 = vshll.u32 %v2913_v40, 16  ;;  %v950_v63 = vshll.u32 %v872_v41, 16  ;;  %v1026_v44 = vrot.slane %v2913_v40, 1 }
  0x7d   : > { %v1027_v50 = vrot.slane %v872_v41, 1 }
  0x7e   : > { %1107 = vrot.lane.b32.xlu0 %v2913_v40, %s2331_s19  ;;  %v947_v28 = vrot.slane %v945_v42, 1  ;;  %v952_v3 = vrot.slane %v950_v63, 1 }
  0x7f   : > { %v2934_v53 = vsel %vm1010_vm1, %v1026_v44, %v1027_v50 }
  0x80   : > { %1056 = vrot.lane.b32.xlu1 %v2635_v47, %s2332_s28  ;;  %v948_v13 = vor.u32 %v947_v28, %v943_v7 }
  0x82   : > { %1143 = vrot.lane.b32.xlu0 %v1128_v27, %s2332_s28  ;;  %v2927_v52 = vsel %vm881_vm3, %v948_v13, %v952_v3  ;;  %v2210_v3 = vld [vmem:[%s3275_s5 + $0x80] sm:$0xff]  }
  0x84   : > { %984 = vrot.lane.b32.xlu1 %v2856_v37, %s2333_s21 }
  0x86   : > { %1135 = vrot.lane.b32.xlu0 %v2927_v52, %s2332_s28 }
  0x88   : > { %1041 = vrot.lane.b32.xlu1 %v2786_v23, %s2331_s19 }
  0x8a   : > { %1092 = vrot.lane.b32.xlu0 %v2934_v53, %s2333_s21 }
  0x8c   : > { %1058 = vrot.lane.b32.xlu1 %v2664_v12, %s2332_s28 }
  0x8e   : > { %1109 = vrot.lane.b32.xlu0 %v2702_v38, %s2331_s19 }
  0x90   : > { %986 = vrot.lane.b32.xlu1 %v2880_v43, %s2333_s21 }
  0x92   : > { %1137 = vrot.lane.b32.xlu0 %v2865_v51, %s2332_s28 }
  0x94   : > { %1043 = vrot.lane.b32.xlu1 %v2898_v1, %s2331_s19 }
  0x96   : > { %1094 = vrot.lane.b32.xlu0 %v2758_v9, %s2333_s21 }
  0x98   : > { %1060 = vrot.lane.b32.xlu1 %v2913_v40, %s2332_s28 }
  0x9a   : > { %1111 = vrot.lane.b32.xlu0 %v2673_v20, %s2331_s19 }
  0x9c   : > { %988 = vrot.lane.b32.xlu1 %v2927_v52, %s2333_s21 }
  0x9e   : > { %1139 = vrot.lane.b32.xlu0 %v2895_v16, %s2332_s28 }
  0xa0   : > { %1045 = vrot.lane.b32.xlu1 %v2934_v53, %s2331_s19 }
  0xa4   : > { %1062 = vrot.lane.b32.xlu1 %v2702_v38, %s2332_s28 }
  0xb4   : > { %v1114_v32 = vpop.permute.xlu0 %1113 }
  0xb6   : > { %v1102_v33 = vpop.permute.xlu1 %1101 }
  0xb8   : > { %v1104_v60 = vpop.permute.xlu0 %1103 }
  0xba   : > { %v1053_v48 = vpop.permute.xlu1 %1052 }
  0xbc   : > { %v1106_v0 = vpop.permute.xlu0 %1105 }
  0xbe   : > { %v1065_v5 = vpop.permute.xlu1 %1064 }
  0xc0   : > { %v1085_v56 = vpop.permute.xlu0 %1084 }
  0xc1   : > { %v1210_v57 = vsel %vm1149_vm5, %v2877_v8, %v1085_v56 }
  0xc2   : > { %v1055_v49 = vpop.permute.xlu1 %1054  ;;  %v1233_v22 = vsel %vm1166_vm6, %v1210_v57, %v1102_v33 }
  0xc4   : > { %v1097_v61 = vpop.permute.xlu0 %1096 }
  0xc5   : > { %v1228_v26 = vsel %vm1149_vm5, %v2895_v16, %v1097_v61 }
  0xc6   : > { %v2966_v18 = vpop.permute.xlu1 %1066  ;;  %v1245_v21 = vsel %vm1166_vm6, %v1228_v26, %v1114_v32 }
  0xc8   : > { %v1087_v46 = vpop.permute.xlu0 %1086 }
  0xc9   : > { %v1213_v41 = vsel %vm1149_vm5, %v2820_v59, %v1087_v46 }
  0xca   : > { %v1048_v10 = vpop.permute.xlu1 %1047  ;;  %v1235_v44 = vsel %vm1166_vm6, %v1213_v41, %v1104_v60 }
  0xcc   : > { %v1099_v11 = vpop.permute.xlu0 %1098 }
  0xce   : > { %v1038_v15 = vpop.permute.xlu1 %1037 }
  0xd0   : > { %v1089_v17 = vpop.permute.xlu0 %1088 }
  0xd1   : > { %v1216_v58 = vsel %vm1149_vm5, %v2856_v37, %v1089_v17 }
  0xd2   : > { %v1050_v4 = vpop.permute.xlu1 %1049 }
  0xd4   : > { %v1116_v54 = vpop.permute.xlu0 %1115 }
  0xd6   : > { %v1040_v31 = vpop.permute.xlu1 %1039 }
  0xd8   : > { %v1130_v19 = vpop.permute.xlu0 %1129 }
  0xd9   : > { %v1249_v29 = vsel %vm1183_vm7, %v1233_v22, %v1130_v19 }
  0xda   : > { %1479 = vmatprep.mubr.bf16.mxu0 %v1249_v29 }
  0xdc   : > { %v1142_v24 = vpop.permute.xlu0 %1141 }
  0xdd   : > { %v1267_v34 = vsel %vm1183_vm7, %v1245_v21, %v1142_v24 }
  0xde   : > { %1527 = vmatprep.mubr.bf16.mxu1 %v1267_v34  ;;  %v1036_v36 = vpop.permute.xlu1 %1035 }
  0xe0   : > { %v1132_v8 = vpop.permute.xlu0 %1131 }
  0xe2   : > { %v991_v7 = vpop.permute.xlu1 %990 }
  0xe3   : > { %v1163_v16 = vsel %vm1149_vm5, %v2702_v38, %v991_v7  ;;  %v1252_v38 = vsel %vm1183_vm7, %v1235_v44, %v1132_v8 }
  0xe4   : > { %v979_v42 = vpop.permute.xlu0 %978  ;;  %v1180_v27 = vsel %vm1166_vm6, %v1163_v16, %v1048_v10 }
  0xe5   : > { %v1151_v63 = vsel %vm1149_vm5, %v2850_v30, %v979_v42  ;;  %v1203_v13 = vsel %vm1183_vm7, %v1180_v27, %v1065_v5  ;;  %v1237_v5 = vsel %vm1166_vm6, %v1216_v58, %v1106_v0  ;;  %v1231_v0 = vsel %vm1149_vm5, %v2837_v2, %v1099_v11 }
  0xe6   : > { %v1168_v28 = vsel %vm1166_vm6, %v1151_v63, %v1036_v36  ;;  %1528 = vmatmul.mubr.bf16.vlgmr.msra.gmra.mxu1 %v1203_v13  ;;  %v981_v50 = vpop.permute.xlu1 %980  ;;  %v1247_v57 = vsel %vm1166_vm6, %v1231_v0, %v1116_v54 }
  0xe7   : > { %v1185_v59 = vsel %vm1183_vm7, %v1168_v28, %v1053_v48  ;;  %v1153_v30 = vsel %vm1149_vm5, %v2645_v62, %v981_v50  ;;  %2114 = vmatpush3.bf16.msra.mxu1 %v2885_v39 }
  0xe8   : > { %1480 = vmatmul.mubr.bf16.vlgmr.msra.gmra.mxu0 %v1185_v59  ;;  %v1134_v55 = vpop.permute.xlu0 %1133  ;;  %2115 = vmatprep.subr.bf16.mxu1 %v2210_v3  ;;  %v1170_v33 = vsel %vm1166_vm6, %v1153_v30, %v1038_v15 }
  0xe9   : > { %1487 = vmatprep.mubr.bf16.mxu0 %v1252_v38  ;;  %v1188_v48 = vsel %vm1183_vm7, %v1170_v33, %v1055_v49  ;;  %v1255_v62 = vsel %vm1183_vm7, %v1237_v5, %v1134_v55 }
  0xea   : > { %v993_v32 = vpop.permute.xlu1 %992 }
  0xeb   : > { %2116 = vmatpush3.bf16.msra.mxu1 %v2210_v3  ;;  %v1165_v37 = vsel %vm1149_vm5, %v2673_v20, %v993_v32 }
  0xec   : > { %v1091_v60 = vpop.permute.xlu0 %1090  ;;  %v1182_v17 = vsel %vm1166_vm6, %v1165_v37, %v1050_v4 }
  0xed   : > { %v1206_v20 = vsel %vm1183_vm7, %v1182_v17, %v2966_v18  ;;  %v1219_v22 = vsel %vm1149_vm5, %v2880_v43, %v1091_v60 }
  0xee   : > { %v983_v56 = vpop.permute.xlu1 %982 }
  0xef   : > { %v1155_v39 = vsel %vm1149_vm5, %v2616_v35, %v983_v56 }
  0xf0   : > { %1488 = vmatmul.mubr.bf16.gmra.mxu0 %v1188_v48  ;;  %v1108_v46 = vpop.permute.xlu0 %1107  ;;  %v1172_v10 = vsel %vm1166_vm6, %v1155_v39, %v1040_v31 }
  0xf1   : > { %1495 = vmatprep.mubr.bf16.mxu0 %v1255_v62  ;;  %v1239_v2 = vsel %vm1166_vm6, %v1219_v22, %v1108_v46 }
  0xf2   : > { %v1057_v61 = vpop.permute.xlu1 %1056 }
  0xf3   : > { %v1191_v15 = vsel %vm1183_vm7, %v1172_v10, %v1057_v61  ;;  %v3066_v10 = vld [vmem:[%s3276_s6] ss:$0 sm:$0xff] }
  0xf4   : > { %v1144_v19 = vpop.permute.xlu0 %1143 }
  0xf5   : > { %v1270_v35 = vsel %vm1183_vm7, %v1247_v57, %v1144_v19 }
  0xf6   : > { %v985_v49 = vpop.permute.xlu1 %984  ;;  %1535 = vmatprep.mubr.bf16.mxu1 %v1270_v35 }
  0xf7   : > { %1536 = vmatmul.mubr.bf16.gmra.mxu1 %v1206_v20  ;;  %v1157_v4 = vsel %vm1149_vm5, %v2635_v47, %v985_v49 }
  0xf8   : > { %1496 = vmatmul.mubr.bf16.gmra.mxu0 %v1191_v15  ;;  %v1136_v11 = vpop.permute.xlu0 %1135  ;;  %2117 = vmatprep.mubr.msk.bf16.mxu1 %vm1149_vm5, %v2739_v25 }
  0xf9   : > { %v1258_v54 = vsel %vm1183_vm7, %v1239_v2, %v1136_v11 }
  0xfa   : > { %v1042_v26 = vpop.permute.xlu1 %1041  ;;  %1503 = vmatprep.mubr.bf16.mxu0 %v1258_v54 }
  0xfb   : > { %v1174_v29 = vsel %vm1166_vm6, %v1157_v4, %v1042_v26 }
  0xfc   : > { %v1093_v31 = vpop.permute.xlu0 %1092 }
  0xfd   : > { %v1222_v25 = vsel %vm1149_vm5, %v2927_v52, %v1093_v31 }
  0xfe   : > { %v1059_v18 = vpop.permute.xlu1 %1058 }
  0xff   : > { %v1194_v43 = vsel %vm1183_vm7, %v1174_v29, %v1059_v18  ;;  %2118 = vmatmul.mubr.msk.bf16.vlgmr.msra.gmra.mxu1 %vm1149_vm5, %v2786_v23 }
 0x100   : > { %1504 = vmatmul.mubr.bf16.gmra.mxu0 %v1194_v43  ;;  %v1110_v21 = vpop.permute.xlu0 %1109  ;;  %2121 = vmatprep.mubr.msk.bf16.mxu1 %vm1149_vm5, %v2898_v1 }
 0x101   : > { %v1241_v34 = vsel %vm1166_vm6, %v1222_v25, %v1110_v21 }
 0x102   : > { %v987_v24 = vpop.permute.xlu1 %986 }
 0x103   : > { %v1159_v41 = vsel %vm1149_vm5, %v2664_v12, %v987_v24 }
 0x104   : > { %v1138_v8 = vpop.permute.xlu0 %1137 }
 0x105   : > { %v1261_v36 = vsel %vm1183_vm7, %v1241_v34, %v1138_v8 }
 0x106   : > { %v1044_v47 = vpop.permute.xlu1 %1043  ;;  %1511 = vmatprep.mubr.bf16.mxu0 %v1261_v36 }
 0x107   : > { %v1176_v7 = vsel %vm1166_vm6, %v1159_v41, %v1044_v47  ;;  %2122 = vmatmul.mubr.msk.bf16.gmra.mxu1 %vm1149_vm5, %v2934_v53 }
 0x108   : > { %v1095_v42 = vpop.permute.xlu0 %1094  ;;  %2125 = vmatprep.mubr.msk.bf16.mxu1 %vm1149_vm5, %v2758_v9 }
 0x109   : > { %v1225_v63 = vsel %vm1149_vm5, %v2865_v51, %v1095_v42 }
 0x10a   : > { %v1061_v23 = vpop.permute.xlu1 %1060 }
 0x10b   : > { %v1197_v1 = vsel %vm1183_vm7, %v1176_v7, %v1061_v23 }
 0x10c   : > { %1512 = vmatmul.mubr.bf16.gmra.mxu0 %v1197_v1  ;;  %v1112_v16 = vpop.permute.xlu0 %1111 }
 0x10d   : > { %v1243_v27 = vsel %vm1166_vm6, %v1225_v63, %v1112_v16 }
 0x10e   : > { %v989_v52 = vpop.permute.xlu1 %988 }
 0x10f   : > { %2126 = vmatmul.mubr.msk.bf16.gmra.mxu1 %vm1149_vm5, %v2719_v45  ;;  %v1161_v9 = vsel %vm1149_vm5, %v2913_v40, %v989_v52 }
 0x110   : > { %v1140_v28 = vpop.permute.xlu0 %1139  ;;  %2129 = vmatprep.mubr.msk.bf16.mxu1 %vm1149_vm5, %v2771_v14 }
 0x111   : > { %v1264_v53 = vsel %vm1183_vm7, %v1243_v27, %v1140_v28 }
 0x112   : > { %v1046_v12 = vpop.permute.xlu1 %1045  ;;  %1519 = vmatprep.mubr.bf16.mxu0 %v1264_v53 }
 0x113   : > { %v1178_v3 = vsel %vm1166_vm6, %v1161_v9, %v1046_v12 }
 0x116   : > { %v1063_v13 = vpop.permute.xlu1 %1062 }
 0x117   : > { %v1200_v51 = vsel %vm1183_vm7, %v1178_v3, %v1063_v13  ;;  %2130 = vmatmul.mubr.msk.bf16.gmra.mxu1 %vm1149_vm5, %v2954_v6 }
 0x118   : > { %1520 = vmatmul.mubr.bf16.gmra.mxu0 %v1200_v51 }
 0x1a6   : > { %v3053_v50 = vpop.f32.mrf.mxu1 }
 0x1a8   : > { %v2055_v45 = vpop.f32.mrf.mxu0  ;;  %v3055_v30 = vpop.f32.mrf.mxu1 }
 0x1aa   : > { %v2056_v59 = vpop.f32.mrf.mxu0  ;;  %v3057_v58 = vpop.f32.mrf.mxu1 }
 0x1ab   : > { %v2057_v37 = vadd.f32 %v2056_v59, %v2055_v45 }
 0x1ac   : > { %v2058_v44 = vpop.f32.mrf.mxu0  ;;  %v3059_v60 = vpop.f32.mrf.mxu1 }
 0x1ad   : > { %v1482_v20 = vadd.f32 %v2057_v37, %v3066_v10 }
 0x1ae   : > { %v2059_v14 = vpop.f32.mrf.mxu0 }
 0x1af   : > { %v2060_v17 = vadd.f32 %v2059_v14, %v2058_v44 }
 0x1b0   : > { %v2061_v38 = vpop.f32.mrf.mxu0 }
 0x1b1   : > { %v1485_v29 = vadd.f32 %v2060_v17, %v3066_v10 }
 0x1b2   : > { %v2062_v40 = vpop.f32.mrf.mxu0 }
 0x1b3   : > { %v2063_v39 = vadd.f32 %v2062_v40, %v2061_v38  ;;  %v2093_v40 = vadd.f32 %v3055_v30, %v3053_v50  ;;  %v2096_v50 = vadd.f32 %v3059_v60, %v3057_v58 }
 0x1b4   : > { %v2064_v55 = vpop.f32.mrf.mxu0 }
 0x1b5   : > { %v1490_v49 = vadd.f32 %v2063_v39, %v3066_v10  ;;  %v1530_v37 = vadd.f32 %v2093_v40, %v3066_v10 }
 0x1b6   : > { %v2065_v32 = vpop.f32.mrf.mxu0 }
 0x1b7   : > { %v2097_v6 = vpop.f32.mrf.mxu1  ;;  %v2066_v0 = vadd.f32 %v2065_v32, %v2064_v55 }
 0x1b8   : > { %v2067_v33 = vpop.f32.mrf.mxu0 }
 0x1b9   : > { %v2098_v56 = vpop.f32.mrf.mxu1  ;;  %v1493_v54 = vadd.f32 %v2066_v0, %v3066_v10 }
 0x1ba   : > { %v2068_v48 = vpop.f32.mrf.mxu0  ;;  %v2099_v44 = vadd.f32 %v2098_v56, %v2097_v6 }
 0x1bb   : > { %v3061_v61 = vpop.f32.mrf.mxu1  ;;  %v2069_v31 = vadd.f32 %v2068_v48, %v2067_v33 }
 0x1bc   : > { %v2070_v5 = vpop.f32.mrf.mxu0  ;;  %v1538_v6 = vadd.f32 %v2099_v44, %v3066_v10 }
 0x1bd   : > { %v2101_v46 = vpop.f32.mrf.mxu1  ;;  %v1498_v41 = vadd.f32 %v2069_v31, %v3066_v10 }
 0x1be   : > { %v2071_v62 = vpop.f32.mrf.mxu0  ;;  %v2102_v48 = vadd.f32 %v2101_v46, %v3061_v61 }
 0x1bf   : > { %v2119_v57 = vpop.f32.mrf.mxu1  ;;  %v2072_v8 = vadd.f32 %v2071_v62, %v2070_v5 }
 0x1c0   : > { %v2073_v15 = vpop.f32.mrf.mxu0  ;;  %v3076_v35 = vadd.f32 %v2119_v57, %v1490_v49  ;;  %v1541_v58 = vadd.f32 %v2102_v48, %v3066_v10 }
 0x1c1   : > { %v1578_v26 = vpop.f32.mrf.mxu1  ;;  %v1501_v27 = vadd.f32 %v2072_v8, %v3066_v10 }
 0x1c2   : > { %v2074_v19 = vpop.f32.mrf.mxu0  ;;  %1643 = vst.msk [vmem:[%s3074_s26 + $0x10] sm:$0xff] %vm1166_vm6, %v3076_v35  ;;  %v3082_v11 = vadd.f32 %v1578_v26, %v1482_v20  ;;  %v1533_v20 = vadd.f32 %v2096_v50, %v3066_v10 }
 0x1c3   : > { %v2075_v22 = vadd.f32 %v2074_v19, %v2073_v15  ;;  %v2120_v4 = vpop.f32.mrf.mxu1 }
 0x1c4   : > { %v2076_v2 = vpop.f32.mrf.mxu0  ;;  %1641 = vst.msk [vmem:[%s3074_s26] sm:$0xff] %vm1166_vm6, %v3082_v11  ;;  %v3089_v43 = vadd.f32 %v2120_v4, %v1493_v54 }
 0x1c5   : > { %v1506_v21 = vadd.f32 %v2075_v22, %v3066_v10  ;;  %v1581_v25 = vpop.f32.mrf.mxu1 }
 0x1c6   : > { %v2077_v18 = vpop.f32.mrf.mxu0  ;;  %1644 = vst.msk [vmem:[%s3074_s26 + $0x18] sm:$0xff] %vm1166_vm6, %v3089_v43  ;;  %v3095_v47 = vadd.f32 %v1581_v25, %v1485_v29 }
 0x1c7   : > { %v2078_v24 = vadd.f32 %v2077_v18, %v2076_v2  ;;  %v2123_v34 = vpop.f32.mrf.mxu1 }
 0x1c8   : > { %1642 = vst.msk [vmem:[%s3074_s26 + $0x8] sm:$0xff] %vm1166_vm6, %v3095_v47  ;;  %v3100_v36 = vadd.f32 %v2123_v34, %v1506_v21 }
 0x1c9   : > { %v1509_v7 = vadd.f32 %v2078_v24, %v3066_v10  ;;  %v1594_v1 = vpop.f32.mrf.mxu1 }
 0x1ca   : > { %1647 = vst.msk [vmem:[%s3074_s26 + $0x30] sm:$0xff] %vm1166_vm6, %v3100_v36  ;;  %v3107_v42 = vadd.f32 %v1594_v1, %v1498_v41 }
 0x1cb   : > { %v2124_v16 = vpop.f32.mrf.mxu1 }
 0x1cc   : > { %v2079_v23 = vpop.f32.mrf.mxu0  ;;  %1645 = vst.msk [vmem:[%s3074_s26 + $0x20] sm:$0xff] %vm1166_vm6, %v3107_v42  ;;  %v3112_v12 = vadd.f32 %v2124_v16, %v1509_v7 }
 0x1cd   : > { %v1597_v53 = vpop.f32.mrf.mxu1 }
 0x1ce   : > { %v2080_v52 = vpop.f32.mrf.mxu0  ;;  %1648 = vst.msk [vmem:[%s3074_s26 + $0x38] sm:$0xff] %vm1166_vm6, %v3112_v12  ;;  %v3118_v9 = vadd.f32 %v1597_v53, %v1501_v27 }
 0x1cf   : > { %v2081_v63 = vadd.f32 %v2080_v52, %v2079_v23  ;;  %v2127_v13 = vpop.f32.mrf.mxu1 }
 0x1d0   : > { %v2082_v28 = vpop.f32.mrf.mxu0  ;;  %1646 = vst.msk [vmem:[%s3074_s26 + $0x28] sm:$0xff] %vm1166_vm6, %v3118_v9 }
 0x1d1   : > { %v1514_v45 = vadd.f32 %v2081_v63, %v3066_v10  ;;  %v1610_v59 = vpop.f32.mrf.mxu1 }
 0x1d2   : > { %v2083_v3 = vpop.f32.mrf.mxu0 }
 0x1d3   : > { %v2084_v51 = vadd.f32 %v2083_v3, %v2082_v28  ;;  %v3124_v14 = vadd.f32 %v1610_v59, %v1514_v45  ;;  %v2128_v38 = vpop.f32.mrf.mxu1 }
 0x1d5   : > { %1649 = vst.msk [vmem:[%s3074_s26 + $0x40] sm:$0xff] %vm1166_vm6, %v3124_v14  ;;  %v1517_v55 = vadd.f32 %v2084_v51, %v3066_v10  ;;  %v1613_v33 = vpop.f32.mrf.mxu1 }
 0x1d7   : > { %v3133_v5 = vadd.f32 %v1613_v33, %v1517_v55  ;;  %v2131_v62 = vpop.f32.mrf.mxu1 }
 0x1d8   : > { %v2085_v32 = vpop.f32.mrf.mxu0  ;;  %v3141_v39 = vadd.f32 %v2131_v62, %v1538_v6 }
 0x1d9   : > { %1650 = vst.msk [vmem:[%s3074_s26 + $0x48] sm:$0xff] %vm1166_vm6, %v3133_v5  ;;  %v1626_v46 = vpop.f32.mrf.mxu1 }
 0x1da   : > { %v2086_v56 = vpop.f32.mrf.mxu0  ;;  %1655 = vst.msk [vmem:[%s3074_s26 + $0x70] sm:$0xff] %vm1166_vm6, %v3141_v39  ;;  %v3148_v0 = vadd.f32 %v1626_v46, %v1530_v37 }
 0x1db   : > { %v2087_v30 = vadd.f32 %v2086_v56, %v2085_v32  ;;  %v2132_v49 = vpop.f32.mrf.mxu1 }
 0x1dc   : > { %v2088_v61 = vpop.f32.mrf.mxu0  ;;  %1653 = vst.msk [vmem:[%s3074_s26 + $0x60] sm:$0xff] %vm1166_vm6, %v3148_v0  ;;  %v3156_v19 = vadd.f32 %v2132_v49, %v1541_v58 }
 0x1dd   : > { %v1522_v15 = vadd.f32 %v2087_v30, %v3066_v10  ;;  %v1629_v22 = vpop.f32.mrf.mxu1 }
 0x1de   : > { %v2089_v60 = vpop.f32.mrf.mxu0  ;;  %1656 = vst.msk [vmem:[%s3074_s26 + $0x78] sm:$0xff] %vm1166_vm6, %v3156_v19  ;;  %v3166_v2 = vadd.f32 %v1629_v22, %v1533_v20 }
 0x1df   : > { %v3151_v17 = vadd.f32 %v2127_v13, %v1522_v15  ;;  %v2090_v57 = vadd.f32 %v2089_v60, %v2088_v61 }
 0x1e0   : > { %1654 = vst.msk [vmem:[%s3074_s26 + $0x68] sm:$0xff] %vm1166_vm6, %v3166_v2 }
 0x1e1   : > { %1651 = vst.msk [vmem:[%s3074_s26 + $0x50] sm:$0xff] %vm1166_vm6, %v3151_v17  ;;  %v1525_v26 = vadd.f32 %v2090_v57, %v3066_v10  ;;  %1660 = sbr.rel (%p2034_p12) target bundleno = 488 (0x1e8), region = 52 }
 0x1e3   : > { %v1622_v54 = vadd.f32 %v2128_v38, %v1525_v26 }
 0x1e5   : > { %1652 = vst.msk [vmem:[%s3074_s26 + $0x58] sm:$0xff] %vm1166_vm6, %v1622_v54 }
 0x1e6   : > { %vm1661_vm8 = vcmask 517120   ;;  %v2334_v4 = vmov 0.0  }
 0x1e7   : > { %1662 = vst.msk [vmem:[%s2434_s11] sm:$0x3] %vm1661_vm8, %v2334_v4 }
 0x1e8 PF: > { %v1664_v10 = vsel %vm1166_vm6, %v3082_v11, 0.0  ;;  %v1665_v29 = vsel %vm1166_vm6, %v3095_v47, 0.0  ;;  %v1667_v18 = vsel %vm1166_vm6, %v3076_v35, 0.0  ;;  %v1669_v24 = vsel %vm1166_vm6, %v3089_v43, 0.0 }
 0x1e9   : > { %v1666_v31 = vadd.f32 %v1665_v29, %v1664_v10  ;;  %v1671_v25 = vsel %vm1166_vm6, %v3107_v42, 0.0  ;;  %v1701_v8 = vmul.f32 %v3082_v11, %v3082_v11  ;;  %v1702_v41 = vmul.f32 %v3095_v47, %v3095_v47 }
 0x1ea   : > { %v1703_v7 = vmul.f32 %v3076_v35, %v3076_v35  ;;  %v1673_v23 = vsel %vm1166_vm6, %v3118_v9, 0.0  ;;  %v1704_v52 = vmul.f32 %v3089_v43, %v3089_v43  ;;  %v1675_v16 = vsel %vm1166_vm6, %v3100_v36, 0.0 }
 0x1eb   : > { %v1668_v21 = vadd.f32 %v1667_v18, %v1666_v31  ;;  %v1705_v63 = vmul.f32 %v3107_v42, %v3107_v42  ;;  %v1717_v27 = vsel %vm1166_vm6, %v1701_v8, 0.0  ;;  %v1718_v47 = vsel %vm1166_vm6, %v1702_v41, 0.0 }
 0x1ec   : > { %v1720_v35 = vsel %vm1166_vm6, %v1703_v7, 0.0  ;;  %v1677_v28 = vsel %vm1166_vm6, %v3112_v12, 0.0  ;;  %v1719_v53 = vadd.f32 %v1718_v47, %v1717_v27  ;;  %v1706_v43 = vmul.f32 %v3118_v9, %v3118_v9 }
 0x1ed   : > { %v1670_v34 = vadd.f32 %v1669_v24, %v1668_v21  ;;  %v1722_v13 = vsel %vm1166_vm6, %v1704_v52, 0.0  ;;  %v1679_v42 = vsel %vm1166_vm6, %v3124_v14, 0.0  ;;  %v1707_v59 = vmul.f32 %v3100_v36, %v3100_v36 }
 0x1ee   : > { %v1721_v51 = vadd.f32 %v1720_v35, %v1719_v53  ;;  %v1724_v44 = vsel %vm1166_vm6, %v1705_v63, 0.0  ;;  %v1681_v38 = vsel %vm1166_vm6, %v3133_v5, 0.0  ;;  %v1708_v9 = vmul.f32 %v3112_v12, %v3112_v12 }
 0x1ef   : > { %v1672_v1 = vadd.f32 %v1671_v25, %v1670_v34  ;;  %v1726_v32 = vsel %vm1166_vm6, %v1706_v43, 0.0  ;;  %v1683_v33 = vsel %vm1166_vm6, %v3151_v17, 0.0  ;;  %v1709_v36 = vmul.f32 %v3124_v14, %v3124_v14 }
 0x1f0   : > { %v1723_v40 = vadd.f32 %v1722_v13, %v1721_v51  ;;  %v1728_v56 = vsel %vm1166_vm6, %v1707_v59, 0.0  ;;  %v1685_v62 = vsel %vm1166_vm6, %v1622_v54, 0.0  ;;  %v1710_v37 = vmul.f32 %v3133_v5, %v3133_v5 }
 0x1f1   : > { %v1674_v11 = vadd.f32 %v1673_v23, %v1672_v1  ;;  %v1730_v12 = vsel %vm1166_vm6, %v1708_v9, 0.0  ;;  %v1687_v61 = vsel %vm1166_vm6, %v3148_v0, 0.0  ;;  %v1711_v58 = vmul.f32 %v3151_v17, %v3151_v17 }
 0x1f2   : > { %v1725_v48 = vadd.f32 %v1724_v44, %v1723_v40  ;;  %v1732_v14 = vsel %vm1166_vm6, %v1709_v36, 0.0  ;;  %v1689_v60 = vsel %vm1166_vm6, %v3166_v2, 0.0  ;;  %v1712_v20 = vmul.f32 %v1622_v54, %v1622_v54 }
 0x1f3   : > { %v1676_v3 = vadd.f32 %v1675_v16, %v1674_v11  ;;  %v1734_v5 = vsel %vm1166_vm6, %v1710_v37, 0.0  ;;  %v1691_v22 = vsel %vm1166_vm6, %v3141_v39, 0.0  ;;  %v1713_v10 = vmul.f32 %v3148_v0, %v3148_v0 }
 0x1f4   : > { %v1727_v50 = vadd.f32 %v1726_v32, %v1725_v48  ;;  %v1736_v17 = vsel %vm1166_vm6, %v1711_v58, 0.0  ;;  %v1693_v29 = vsel %vm1166_vm6, %v3156_v19, 0.0  ;;  %v1714_v54 = vmul.f32 %v3166_v2, %v3166_v2 }
 0x1f5   : > { %v1678_v45 = vadd.f32 %v1677_v28, %v1676_v3  ;;  %v1738_v24 = vsel %vm1166_vm6, %v1712_v20, 0.0  ;;  %v1715_v34 = vmul.f32 %v3141_v39, %v3141_v39  ;;  %v1740_v8 = vsel %vm1166_vm6, %v1713_v10, 0.0 }
 0x1f6   : > { %v1729_v46 = vadd.f32 %v1728_v56, %v1727_v50  ;;  %v1716_v7 = vmul.f32 %v3156_v19, %v3156_v19  ;;  %v1742_v23 = vsel %vm1166_vm6, %v1714_v54, 0.0  ;;  %vm1756_vm9 = vcmask 517120  }
 0x1f7   : > { %v1680_v55 = vadd.f32 %v1679_v42, %v1678_v45  ;;  %v1744_v2 = vsel %vm1166_vm6, %v1715_v34, 0.0  ;;  %v1663_v42 = vld [vmem:[%s2434_s11] sm:$0x3] }
 0x1f8   : > { %v1731_v49 = vadd.f32 %v1730_v12, %v1729_v46  ;;  %v1746_v63 = vsel %vm1166_vm6, %v1716_v7, 0.0 }
 0x1f9   : > { %v1682_v6 = vadd.f32 %v1681_v38, %v1680_v55 }
 0x1fa   : > { %v1733_v26 = vadd.f32 %v1732_v14, %v1731_v49 }
 0x1fb   : > { %v1684_v30 = vadd.f32 %v1683_v33, %v1682_v6 }
 0x1fc   : > { %v1735_v18 = vadd.f32 %v1734_v5, %v1733_v26 }
 0x1fd   : > { %v1686_v15 = vadd.f32 %v1685_v62, %v1684_v30 }
 0x1fe   : > { %v1737_v21 = vadd.f32 %v1736_v17, %v1735_v18 }
 0x1ff   : > { %v1688_v57 = vadd.f32 %v1687_v61, %v1686_v15 }
 0x200   : > { %v1739_v0 = vadd.f32 %v1738_v24, %v1737_v21 }
 0x201   : > { %v1690_v4 = vadd.f32 %v1689_v60, %v1688_v57 }
 0x202   : > { %v1741_v1 = vadd.f32 %v1740_v8, %v1739_v0 }
 0x203   : > { %v1692_v31 = vadd.f32 %v1691_v22, %v1690_v4 }
 0x204   : > { %v1743_v16 = vadd.f32 %v1742_v23, %v1741_v1 }
 0x205   : > { %v1694_v25 = vadd.f32 %v1693_v29, %v1692_v31 }
 0x206   : > { %v1745_v39 = vadd.f32 %v1744_v2, %v1743_v16 }
 0x207   : > { %v1695_v41 = vrot.slane %v1694_v25, 4 }
 0x208   : > { %v1747_v27 = vadd.f32 %v1746_v63, %v1745_v39 }
 0x209   : > { %v1696_v52 = vadd.f32 %v1695_v41, %v1694_v25 }
 0x20a   : > { %v1748_v35 = vrot.slane %v1747_v27, 4 }
 0x20b   : > { %v1697_v11 = vrot.slane %v1696_v52, 2 }
 0x20c   : > { %v1749_v28 = vadd.f32 %v1748_v35, %v1747_v27 }
 0x20d   : > { %v1698_v47 = vadd.f32 %v1697_v11, %v1696_v52 }
 0x20e   : > { %v1750_v3 = vrot.slane %v1749_v28, 2 }
 0x20f   : > { %v1699_v53 = vrot.slane %v1698_v47, 1 }
 0x210   : > { %v1751_v19 = vadd.f32 %v1750_v3, %v1749_v28 }
 0x211   : > { %v1700_v43 = vadd.f32 %v1699_v53, %v1698_v47 }
 0x212   : > { %v1752_v13 = vrot.slane %v1751_v19, 1 }
 0x214   : > { %v1753_v51 = vadd.f32 %v1752_v13, %v1751_v19 }
 0x216   : > { %v1754_v45 = vsel %vm780_vm0, %v1700_v43, %v1753_v51 }
 0x217   : > { %v1755_v59 = vadd.f32 %v1754_v45, %v1663_v42 }
 0x219   : > { %1757 = vst.msk [vmem:[%s2434_s11] sm:$0x3] %vm1756_vm9, %v1755_v59 }
 0x21a PF: > { %s19_s9 = sadd.s32 1, %s2329_s9   ;;  %s3285_s22 = sld [smem:[#allocation2_spill]] }
 0x21b   : > { %p16_p13 = scmp.ge.s32.totalorder %s19_s9, 6   ;;  %s3286_s27 = smov %s2321_s29 }
 0x21c   : > { %s3287_s28 = smov %s2325_s30  ;;  %s3288_s29 = smov %s3291_s10 }
 0x21d   :  { %18 = sbr.rel (!%p16_p13) target bundleno = 3 (0x3), region = 106 }
 0x220   : > { %s3289_s30 = smov %s3285_s22 }

// kernel: vae_residual_block.5
= control target key start
LH: loop header
LB: loop body
LE: loop exit
PB: predicated region body
PF: predicated region fallthrough
CT: control target
= control target key end

     0   :  { %s3923_s0 = inlined_call_operand.vmem [shape: f32[2,16,16,64], index: 0, kind: input, shape index: {}, may-alias: {0,1,2}]   ;;  %s3924_s1 = inlined_call_operand.vmem [shape: f32[2,16,16,64], index: 1, kind: input, shape index: {}, may-alias: {0,1,2}]   ;;  %s3925_s2 = inlined_call_operand.vmem [shape: f32[2,16,16,64], index: 2, kind: input, shape index: {}, may-alias: {0,1,2}]   ;;  %s3926_s3 = inlined_call_operand.vmem [shape: f32[2,1,64], index: 3, kind: input, shape index: {}]   ;;  %s3927_s4 = inlined_call_operand.vmem [shape: f32[2,1,64], index: 4, kind: input, shape index: {}]   ;;  %s3928_s5 = inlined_call_operand.vmem [shape: bf16[576,64], index: 5, kind: input, shape index: {}]   ;;  %s3929_s6 = inlined_call_operand.vmem [shape: f32[1,64], index: 6, kind: input, shape index: {}]   ;;  %s3930_s7 = inlined_call_operand.vmem [shape: f32[2,16,16,32], index: 7, kind: input, shape index: {}]   ;;  %s3931_s8 = inlined_call_operand.vmem [shape: bf16[32,64], index: 8, kind: input, shape index: {}]   ;;  %s3932_s9 = inlined_call_operand.vmem [shape: f32[1,64], index: 9, kind: input, shape index: {}]   ;;  %s3933_s10 = inlined_call_operand.hbm [shape: f32[2,16,16,64], index: 10, kind: output, shape index: {}]  }
   0x1   :  { %3944 = sst [smem:[#allocation22_spill]] %s3926_s3 }
   0x2   :  { %3945 = sst [smem:[#allocation23_spill]] %s3933_s10 }
   0x3   :  { %15 = vsyncpa [#allocation3], 0 }
   0x4   :  { %17 = vsyncpa [#allocation3 + $0x1], 0  ;;  %s2938_s13 = smov 0   ;;  %s2940_s14 = smov 0  }
   0x5   :  { %s2942_s15 = smov 0   ;;  %s2944_s16 = smov 0  }
   0x6   :  { %s2946_s17 = smov 0   ;;  %s2948_s18 = smov 0  }
   0x7   :  { %s2950_s19 = smov 0   ;;  %s2952_s20 = smov 0  }
   0x8 LB: > { %3946 = sst [smem:[#allocation5_spill]] %s2849_s13  ;;  %s2274_s21 = sadd.s32 4294967295, %s2877_s20   ;;  %s2877_s20 = sphi %s2952_s20, %s23_s20   ;;  %s2873_s19 = sphi %s2950_s19, %s3990_s19   ;;  %s2869_s18 = sphi %s2948_s18, %s3985_s18   ;;  %s2865_s17 = sphi %s2946_s17, %s3984_s17   ;;  %s2861_s16 = sphi %s2944_s16, %s3983_s16   ;;  %s2857_s15 = sphi %s2942_s15, %s3989_s15   ;;  %s2853_s14 = sphi %s2940_s14, %s3988_s14   ;;  %s2849_s13 = sphi %s2938_s13, %s3987_s13  }
   0x9   : > { %3947 = sst [smem:[#allocation6_spill]] %s2857_s15  ;;  %s2275_s22 = sadd.s32 4294967294, %s2877_s20  }
   0xa   : > { %3948 = sst [smem:[#allocation7_spill]] %s2869_s18  ;;  %s32_s23 = sadd.s32 1, %s2869_s18 }
   0xb   : > { %3949 = sst [smem:[#allocation8_spill]] %s2873_s19  ;;  %p33_p0 = scmp.ge.s32.totalorder %s32_s23, 2 }
   0xc   : > { %3950 = sst [smem:[#allocation9_spill]] %s2877_s20  ;;  %s35_s24 = sadd.s32 1, %s2873_s19 }
   0xd   : > { %p318_p1 = scmp.ne.s32.totalorder %s2857_s15, %s2853_s14  ;;  %p319_p2 = scmp.eq.s32.totalorder %s2274_s21, 3 }
   0xe   : > { %s3992_s23 = smov (%p33_p0, %s32_s23), 0  ;;  %s3994_s24 = smov (!%p33_p0, %s35_s24), %s2873_s19 }
   0xf   : > { %3951 = sst [smem:[#allocation10_spill]] %s3992_s23  ;;  %s304_s25 = ssub.s32 %s2869_s18, %s3992_s23 }
  0x10   : > { %p2989_p3 = por %p319_p2, %p318_p1  ;;  %p37_p4 = scmp.ge.s32.totalorder %s3994_s24, 2 }
  0x11   : > { %p324_p5 = scmp.ne.s32.totalorder %s2853_s14, %s2849_s13  ;;  %p325_p6 = scmp.eq.s32.totalorder %s2275_s22, 3 }
  0x12   : > { %p2284_p7 = scmp.ge.s32.totalorder %s2877_s20, 1  ;;  %s3996_s24 = smov (%p37_p4, %s3994_s24), 0 }
  0x13   : > { %3953 = sst [smem:[#allocation11_spill]] %s3996_s24  ;;  %p2998_p8 = por %p325_p6, %p324_p5 }
  0x14   : > { %p435_p9 = scmp.lt.s32.totalorder %s2877_s20, 5  ;;  %s303_s28 = ssub.s32 %s2873_s19, %s3996_s24 }
  0x15   : > { %s3954_s27 = scalar_select %p2998_p8, 1, 0 }
  0x16   : > { %s308_s29 = sadd.s32 1, %s2857_s15  ;;  %s305_s30 = sor.u32 %s304_s25, %s303_s28 }
  0x17   : > { %3955 = sst [smem:[#allocation12_spill]] %s3954_s27  ;;  %p436_p10 = pnand %p2284_p7, %p435_p9 }
  0x18   : > { %p306_p11 = scmp.eq.s32.totalorder %s305_s30, 0 }
  0x19   : > { %439 = sbr.rel (%p436_p10) target bundleno = 527 (0x20f), region = 60 }
  0x1a   : > { %s3007_s11 = scalar_select %p306_p11, %s2857_s15, %s308_s29  }
  0x1c   : > { %3956 = sst [smem:[#allocation13_spill]] %s3007_s11 }
  0x1e   : > { %s3010_s12 = sshll.u32 %s2861_s16, 3  ;;  %p524_p12 = scmp.lt.s32.totalorder %s2865_s17, 1  ;;  %v2667_v0 = vld [vmem:[%s3928_s5 + $0x78] sm:$0xff]   ;;  %v2671_v5 = vld [vmem:[%s3928_s5 + $0x70] sm:$0xff]   ;;  %v2675_v61 = vld [vmem:[%s3928_s5 + $0x68] sm:$0xff]   ;;  %vm850_vm0 = vcmask 1040384  }
  0x1f   : > { %p540_p13 = scmp.lt.s32.totalorder %s3010_s12, 15  ;;  %s3957_s3 = sld [smem:[#allocation22_spill]]  ;;  %v2668_v1 = vld [vmem:[%s3928_s5 + $0x38] sm:$0xff]   ;;  %2399 = vmatprep.subr.bf16.mxu0 %v2667_v0  ;;  %v2672_v7 = vld [vmem:[%s3928_s5 + $0x30] sm:$0xff]   ;;  %vm951_vm2 = vsmask.f32 7424 }
  0x20   : > { %s525_s21 = scalar_select %p524_p12, %s2865_s17, 1  ;;  %v2669_v2 = vld [vmem:[%s3928_s5 + $0xf8] sm:$0xff]   ;;  %2400 = vmatpush3.bf16.msra.mxu0 %v2668_v1  ;;  %v2673_v48 = vld [vmem:[%s3928_s5 + $0xf0] sm:$0xff]   ;;  %v2676_v1 = vld [vmem:[%s3928_s5 + $0x28] sm:$0xff]   ;;  %vm1080_vm3 = vcmask 1046528   ;;  %vm1175_vm5 = vcmask 523264  }
  0x21   : > { %s541_s22 = scalar_select %p540_p13, %s3010_s12, 15  ;;  %v2670_v3 = vld [vmem:[%s3928_s5 + $0xb8] sm:$0xff]   ;;  %2463 = vmatprep.subr.bf16.mxu1 %v2669_v2  ;;  %2401 = vmatprep.subr.bf16.mxu0 %v2671_v5  ;;  %v2674_v57 = vld [vmem:[%s3928_s5 + $0xb0] sm:$0xff]   ;;  %vm1914_vm6 = vcmask 261120  }
  0x22   : > { %s3016_s24 = sshll.u32 %s525_s21, 5  ;;  %s570_s10 = scalar_lea.vmem %s3927_s4, %s525_s21  ;;  %2464 = vmatpush3.bf16.msra.mxu1 %v2670_v3 }
  0x23   : > { %s2297_s27 = sshll.u32 %s541_s22, 1  ;;  %s2287_s18 = sadd.s32 4294967295, %s3010_s12  ;;  %v3046_v6 = vld [vmem:[%s570_s10] ss:$0 sm:$0xff]  ;;  %2465 = vmatprep.subr.bf16.mxu1 %v2673_v48  ;;  %v2684_v48 = vld [vmem:[%s3928_s5 + $0x18] sm:$0xff]  }
  0x24   : > { %p522_p0 = scmp.gt.s32.totalorder %s2287_s18, 0  ;;  %p2288_p1 = scmp.lt.s32.totalorder %s2287_s18, 15  ;;  %2402 = vmatpush3.bf16.msra.mxu0 %v2672_v7 }
  0x25   : > { %s567_s29 = scalar_lea.vmem %s3957_s3, %s525_s21  ;;  %s3037_s3 = sadd.s32 %s2297_s27, %s3016_s24  ;;  %2403 = vmatprep.subr.bf16.mxu0 %v2675_v61 }
  0x26   : > { %v3039_v4 = vld [vmem:[%s567_s29] ss:$0 sm:$0xff]  ;;  %s2299_s23 = sshll.u32 %s3037_s3, 3  ;;  %s549_s22 = sadd.s32 8, %s3010_s12  ;;  %2466 = vmatpush3.bf16.msra.mxu1 %v2674_v57  ;;  %v2686_v57 = vld [vmem:[%s3928_s5 + $0x98] sm:$0xff]  }
  0x27   : > { %s3053_s27 = scalar_lea.vmem %s3924_s1, %s2299_s23  ;;  %p3099_p2 = scmp.lt.s32.totalorder %s549_s22, 15 }
  0x28   : > { %v588_v8 = vld [vmem:[%s3053_s27 + $0x10] sm:$0xff]  ;;  %v589_v9 = vld [vmem:[%s3053_s27 + $0x18] sm:$0xff]  ;;  %v586_v10 = vld [vmem:[%s3053_s27] sm:$0xff]  ;;  %s523_s21 = scalar_select %p522_p0, %s2287_s18, 0  ;;  %2404 = vmatpush3.bf16.msra.mxu0 %v2676_v1 }
  0x29   : > { %v616_v11 = vmul.f32 %v3039_v4, %v588_v8  ;;  %v617_v12 = vmul.f32 %v3039_v4, %v589_v9  ;;  %v587_v13 = vld [vmem:[%s3053_s27 + $0x8] sm:$0xff]  ;;  %v614_v14 = vmul.f32 %v3039_v4, %v586_v10  ;;  %v590_v15 = vld [vmem:[%s3053_s27 + $0x20] sm:$0xff]  ;;  %v592_v20 = vld [vmem:[%s3053_s27 + $0x30] sm:$0xff]  ;;  %s4000_s22 = smov (!%p3099_p2, %s549_s22), 15  ;;  %p798_p4 = scmp.gt.s32.totalorder %s2861_s16, 0 }
  0x2a   : > { %v591_v16 = vld [vmem:[%s3053_s27 + $0x28] sm:$0xff]  ;;  %v615_v17 = vmul.f32 %v3039_v4, %v587_v13  ;;  %s3998_s21 = smov (!%p2288_p1, %s523_s21), 15  ;;  %v618_v18 = vmul.f32 %v3039_v4, %v590_v15  ;;  %v593_v21 = vld [vmem:[%s3053_s27 + $0x38] sm:$0xff]  ;;  %v620_v25 = vmul.f32 %v3039_v4, %v592_v20  ;;  %v594_v30 = vld [vmem:[%s3053_s27 + $0x40] sm:$0xff]  ;;  %s4002_s22 = smov (!%p3099_p2, %s4000_s22), 15 }
  0x2b   : > { %v619_v19 = vmul.f32 %v3039_v4, %v591_v16  ;;  %v3075_v22 = vadd.f32 %v3046_v6, %v616_v11  ;;  %v3078_v23 = vadd.f32 %v3046_v6, %v617_v12  ;;  %v3081_v24 = vadd.f32 %v3046_v6, %v614_v14  ;;  %s2293_s29 = sshll.u32 %s3998_s21, 1  ;;  %v595_v31 = vld [vmem:[%s3053_s27 + $0x48] sm:$0xff]  ;;  %v596_v32 = vld [vmem:[%s3053_s27 + $0x50] sm:$0xff]  ;;  %v597_v42 = vld [vmem:[%s3053_s27 + $0x58] sm:$0xff]  ;;  %p802_p5 = scmp.lt.s32.totalorder %s2861_s16, 1 }
  0x2c   : > { %v3085_v26 = vadd.f32 %v3046_v6, %v615_v17  ;;  %v3088_v27 = vadd.f32 %v3046_v6, %v618_v18  ;;  %v621_v29 = vmul.f32 %v3039_v4, %v593_v21  ;;  %s530_s25 = sadd.s32 %s3016_s24, %s2293_s29  ;;  %v3110_v38 = vadd.f32 %v3046_v6, %v620_v25  ;;  %v598_v52 = vld [vmem:[%s3053_s27 + $0x60] sm:$0xff]  ;;  %v599_v53 = vld [vmem:[%s3053_s27 + $0x68] sm:$0xff]  ;;  %v600_v0 = vld [vmem:[%s3053_s27 + $0x70] sm:$0xff]  ;;  %s2304_s29 = sshll.u32 %s4002_s22, 1 }
  0x2d   : > { %v3091_v28 = vadd.f32 %v3046_v6, %v619_v19  ;;  %v2317_v33 = vmul.f32 -1.442695, %v3075_v22  ;;  %v2318_v34 = vmul.f32 -1.442695, %v3078_v23  ;;  %v2315_v35 = vmul.f32 -1.442695, %v3081_v24 }
  0x2e   : > { %v2316_v36 = vmul.f32 -1.442695, %v3085_v26  ;;  %s2295_s28 = sshll.u32 %s530_s25, 3  ;;  %v2319_v37 = vmul.f32 -1.442695, %v3088_v27  ;;  %v3117_v40 = vadd.f32 %v3046_v6, %v621_v29  ;;  %v622_v41 = vmul.f32 %v3039_v4, %v594_v30  ;;  %v2677_v10 = vld [vmem:[%s3928_s5 + $0xe8] sm:$0xff]  }
  0x2f   : > { %2705 = vpow2.f32 %v2317_v33  ;;  %s532_s19 = scalar_lea.vmem %s3923_s0, %s2295_s28  ;;  %v2320_v39 = vmul.f32 -1.442695, %v3091_v28  ;;  %v2321_v45 = vmul.f32 -1.442695, %v3110_v38  ;;  %v623_v46 = vmul.f32 %v3039_v4, %v595_v31  ;;  %s558_s28 = sadd.s32 %s2304_s29, %s3016_s24  ;;  %2467 = vmatprep.subr.bf16.mxu1 %v2677_v10  ;;  %v2678_v19 = vld [vmem:[%s3928_s5 + $0xa8] sm:$0xff]   ;;  %v2679_v30 = vld [vmem:[%s3928_s5 + $0x60] sm:$0xff]  }
  0x30   : > { %2707 = vpow2.f32 %v2318_v34  ;;  %v584_v43 = vld [vmem:[%s532_s19] sm:$0xff]  ;;  %v585_v44 = vld [vmem:[%s532_s19 + $0x8] sm:$0xff]  ;;  %v624_v47 = vmul.f32 %v3039_v4, %v596_v32  ;;  %v2322_v51 = vmul.f32 -1.442695, %v3117_v40  ;;  %v3137_v54 = vadd.f32 %v3046_v6, %v622_v41  ;;  %s2306_s22 = sshll.u32 %s558_s28, 3  ;;  %2468 = vmatpush3.bf16.msra.mxu1 %v2678_v19  ;;  %2405 = vmatprep.subr.bf16.mxu0 %v2679_v30  ;;  %s2879_s19 = smov 64  }
  0x31   : > { %2709 = vpow2.f32 %v2315_v35  ;;  %v612_v49 = vmul.f32 %v3039_v4, %v584_v43  ;;  %v613_v50 = vmul.f32 %v3039_v4, %v585_v44  ;;  %v3140_v55 = vadd.f32 %v3046_v6, %v623_v46  ;;  %s560_s13 = scalar_lea.vmem %s3925_s2, %s2306_s22  ;;  %v2680_v31 = vld [vmem:[%s3928_s5 + $0x20] sm:$0xff]   ;;  %s517_s24 = sand.u32 1, %s2853_s14  }
  0x32   : > { %2711 = vpow2.f32 %v2316_v36  ;;  %v625_v56 = vmul.f32 %v3039_v4, %v597_v42  ;;  %v3155_v60 = vadd.f32 %v3046_v6, %v624_v47  ;;  %v2323_v62 = vmul.f32 -1.442695, %v3137_v54  ;;  %v602_v15 = vld [vmem:[%s560_s13] sm:$0xff]  ;;  %v603_v16 = vld [vmem:[%s560_s13 + $0x8] sm:$0xff]  ;;  %s3214_s30 = scalar_select %p798_p4, 1, 0  ;;  %2406 = vmatpush3.bf16.msra.mxu0 %v2680_v31 }
  0x33   : > { %v3149_v58 = vadd.f32 %v3046_v6, %v612_v49  ;;  %v3152_v59 = vadd.f32 %v3046_v6, %v613_v50  ;;  %2713 = vpow2.f32 %v2319_v37  ;;  %v2324_v5 = vmul.f32 -1.442695, %v3140_v55  ;;  %v2681_v36 = vld [vmem:[%s3928_s5 + $0xe0] sm:$0xff]   ;;  %s803_s10 = scalar_select %p802_p5, 1, 0 }
  0x34   : > { %2715 = vpow2.f32 %v2320_v39  ;;  %v3162_v63 = vadd.f32 %v3046_v6, %v625_v56  ;;  %v2325_v7 = vmul.f32 -1.442695, %v3155_v60  ;;  %v626_v8 = vmul.f32 %v3039_v4, %v598_v52  ;;  %v2682_v42 = vld [vmem:[%s3928_s5 + $0xa0] sm:$0xff]   ;;  %2469 = vmatprep.subr.bf16.mxu1 %v2681_v36  ;;  %v2685_v52 = vld [vmem:[%s3928_s5 + $0xd8] sm:$0xff]   ;;  %s2285_s13 = sshll.u32 %s517_s24, 7  ;;  %s2398_s11 = sshll.u32 %s2861_s16, 4 }
  0x35   : > { %v2313_v2 = vmul.f32 -1.442695, %v3149_v58  ;;  %v2314_v3 = vmul.f32 -1.442695, %v3152_v59  ;;  %2717 = vpow2.f32 %v2321_v45  ;;  %v627_v9 = vmul.f32 %v3039_v4, %v599_v53  ;;  %v2683_v45 = vld [vmem:[%s3928_s5 + $0x58] sm:$0xff]   ;;  %2470 = vmatpush3.bf16.msra.mxu1 %v2682_v42  ;;  %s2392_s21 = sshll.u32 %s2865_s17, 5 }
  0x36   : > { %2719 = vpow2.f32 %v2322_v51  ;;  %v628_v11 = vmul.f32 %v3039_v4, %v600_v0  ;;  %v2326_v12 = vmul.f32 -1.442695, %v3162_v63  ;;  %v3184_v13 = vadd.f32 %v3046_v6, %v626_v8  ;;  %v601_v51 = vld [vmem:[%s3053_s27 + $0x78] sm:$0xff]  ;;  %2407 = vmatprep.subr.bf16.mxu0 %v2683_v45  ;;  %2471 = vmatprep.subr.bf16.mxu1 %v2685_v52  ;;  %v2687_v0 = vld [vmem:[%s3928_s5 + $0x50] sm:$0xff]   ;;  %v2698_v52 = vld [vmem:[%s3928_s5 + $0x80] sm:$0xff]   ;;  %s3977_s25 = sld [smem:[#allocation23_spill]] }
  0x37   : > { %2721 = vpow2.f32 %v2313_v2  ;;  %v3187_v14 = vadd.f32 %v3046_v6, %v627_v9  ;;  %v630_v18 = vmul.f32 %v3039_v4, %v602_v15  ;;  %v631_v25 = vmul.f32 %v3039_v4, %v603_v16  ;;  %2408 = vmatpush3.bf16.msra.mxu0 %v2684_v48  ;;  %v2688_v2 = vld [vmem:[%s3928_s5 + $0x10] sm:$0xff]   ;;  %v2691_v15 = vld [vmem:[%s3928_s5 + $0x48] sm:$0xff]   ;;  %v2695_v48 = vld [vmem:[%s3928_s5 + $0x40] sm:$0xff]   ;;  %s3872_s22 = scalar_lea.sflag [#allocation3], %s517_s24  ;;  %s2880_s15 = smov [#allocation2]  }
  0x38   : > { %2723 = vpow2.f32 %v2314_v3  ;;  %v3191_v17 = vadd.f32 %v3046_v6, %v628_v11  ;;  %v2327_v20 = vmul.f32 -1.442695, %v3184_v13  ;;  %2409 = vmatprep.subr.bf16.mxu0 %v2687_v0  ;;  %v629_v10 = vmul.f32 %v3039_v4, %v601_v51  ;;  %v2690_v11 = vld [vmem:[%s3928_s5 + $0x90] sm:$0xff]   ;;  %v2692_v4 = vld [vmem:[%s3928_s5 + $0x8] sm:$0xff]  }
  0x39   : > { %2725 = vpow2.f32 %v2323_v62  ;;  %v2328_v21 = vmul.f32 -1.442695, %v3187_v14  ;;  %v3201_v29 = vadd.f32 %v3046_v6, %v630_v18  ;;  %v3210_v33 = vadd.f32 %v3046_v6, %v631_v25  ;;  %2472 = vmatpush3.bf16.msra.mxu1 %v2686_v57 }
  0x3a   : > { %2727 = vpow2.f32 %v2324_v5  ;;  %v3220_v41 = vmul.f32 -1.442695, %v3191_v17  ;;  %v800_v25 = vstv %s3214_s30  ;;  %v3262_v31 = vadd.f32 %v3046_v6, %v629_v10  ;;  %s2105_s30 = sadd.s32 %s2398_s11, %s2392_s21 }
  0x3b   : > { %2729 = vpow2.f32 %v2325_v7  ;;  %v2689_v7 = vld [vmem:[%s3928_s5 + $0xd0] sm:$0xff]   ;;  %2410 = vmatpush3.bf16.msra.mxu0 %v2688_v2  ;;  %vm3268_vm1 = vcmp.eq.s32.totalorder %v800_v25, 1  ;;  %s2393_s16 = sshll.u32 %s2105_s30, 7 }
  0x3c   : > { %v2706_v32 = vpop.eup %2705  ;;  %2731 = vpow2.f32 %v2326_v12  ;;  %2473 = vmatprep.subr.bf16.mxu1 %v2689_v7  ;;  %2411 = vmatprep.subr.bf16.mxu0 %v2691_v15  ;;  %s3861_s28 = scalar_lea.hbm %s3977_s25, %s2393_s16 }
  0x3d   : > { %v2708_v34 = vpop.eup %2707  ;;  %v722_v35 = vadd.f32 1.0, %v2706_v32  ;;  %2733 = vpow2.f32 %v2327_v20  ;;  %2474 = vmatpush3.bf16.msra.mxu1 %v2690_v11  ;;  %v2693_v20 = vld [vmem:[%s3928_s5 + $0xc8] sm:$0xff]  }
  0x3e   : > { %v2710_v37 = vpop.eup %2709  ;;  %v723_v39 = vadd.f32 1.0, %v2708_v34  ;;  %2735 = vpow2.f32 %v2328_v21  ;;  %v2694_v32 = vld [vmem:[%s3928_s5 + $0x88] sm:$0xff]   ;;  %2475 = vmatprep.subr.bf16.mxu1 %v2693_v20 }
  0x3f   : > { %v2712_v43 = vpop.eup %2711  ;;  %2737 = vrcp.f32 %v722_v35  ;;  %v720_v44 = vadd.f32 1.0, %v2710_v37  ;;  %2412 = vmatpush3.bf16.msra.mxu0 %v2692_v4 }
  0x40   : > { %v2714_v46 = vpop.eup %2713  ;;  %2739 = vrcp.f32 %v723_v39  ;;  %v721_v47 = vadd.f32 1.0, %v2712_v43  ;;  %2413 = vmatprep.subr.bf16.mxu0 %v2695_v48 }
  0x41   : > { %v2716_v49 = vpop.eup %2715  ;;  %2741 = vrcp.f32 %v720_v44  ;;  %v724_v50 = vadd.f32 1.0, %v2714_v46  ;;  %2476 = vmatpush3.bf16.msra.mxu1 %v2694_v32  ;;  %v3335_v44 = vld [vmem:[%s3931_s8 + $0x8] sm:$0xff]  }
  0x42   : > { %v2718_v53 = vpop.eup %2717  ;;  %2743 = vrcp.f32 %v721_v47  ;;  %v725_v56 = vadd.f32 1.0, %v2716_v49  ;;  %v3274_v47 = vmul.f32 -1.442695, %v3262_v31  ;;  %v2697_v49 = vld [vmem:[%s3928_s5 + $0xc0] sm:$0xff]  }
  0x43   : > { %v2720_v61 = vpop.eup %2719  ;;  %2745 = vrcp.f32 %v724_v50  ;;  %v726_v62 = vadd.f32 1.0, %v2718_v53  ;;  %2477 = vmatprep.subr.bf16.mxu1 %v2697_v49 }
  0x44   : > { %v2722_v1 = vpop.eup %2721  ;;  %2747 = vrcp.f32 %v725_v56  ;;  %v727_v19 = vadd.f32 1.0, %v2720_v61 }
  0x45   : > { %v2724_v3 = vpop.eup %2723  ;;  %v718_v5 = vadd.f32 1.0, %v2722_v1  ;;  %2749 = vrcp.f32 %v726_v62  ;;  %2478 = vmatpush3.bf16.msra.mxu1 %v2698_v52 }
  0x46   : > { %v2726_v8 = vpop.eup %2725  ;;  %v719_v9 = vadd.f32 1.0, %v2724_v3  ;;  %2573 = vmatprep.subr.bf16.mxu1 %v3335_v44 }
  0x47   : > { %v2728_v12 = vpop.eup %2727  ;;  %2751 = vrcp.f32 %v718_v5  ;;  %v728_v30 = vadd.f32 1.0, %v2726_v8 }
  0x48   : > { %v2730_v16 = vpop.eup %2729  ;;  %2753 = vrcp.f32 %v719_v9  ;;  %v729_v35 = vadd.f32 1.0, %v2728_v12 }
  0x49   : > { %v2732_v18 = vpop.eup %2731  ;;  %v730_v37 = vadd.f32 1.0, %v2730_v16  ;;  %2755 = vrcp.f32 %v727_v19 }
  0x4a   : > { %v2734_v21 = vpop.eup %2733  ;;  %v731_v39 = vadd.f32 1.0, %v2732_v18  ;;  %2757 = vrcp.f32 %v728_v30 }
  0x4b   : > { %v2736_v34 = vpop.eup %2735  ;;  %v732_v46 = vadd.f32 1.0, %v2734_v21  ;;  %2759 = vrcp.f32 %v729_v35 }
  0x4c   : > { %v2738_v36 = vpop.eup %2737  ;;  %2761 = vrcp.f32 %v730_v37  ;;  %v3290_v61 = vadd.f32 1.0, %v2736_v34 }
  0x4d   : > { %v2740_v42 = vpop.eup %2739  ;;  %v782_v43 = vmul.f32 %v2738_v36, %v3075_v22  ;;  %v2696_v22 = vld [vmem:[%s3928_s5] sm:$0xff]   ;;  %2763 = vrcp.f32 %v731_v39  ;;  %v3321_v39 = vld [vmem:[%s3928_s5 + $0x118] sm:$0xff]  }
  0x4e   : > { %v2742_v6 = vpop.eup %2741  ;;  %v783_v45 = vmul.f32 %v2740_v42, %v3078_v23  ;;  %2414 = vmatpush3.bf16.msra.mxu0 %v2696_v22  ;;  %2765 = vrcp.f32 %v732_v46 }
  0x4f   : > { %v2744_v50 = vpop.eup %2743  ;;  %v857_v51 = vrot.slane %v782_v43, 7  ;;  %v780_v23 = vmul.f32 %v2742_v6, %v3081_v24  ;;  %2549 = vmatprep.subr.bf16.mxu0 %v3321_v39  ;;  %2767 = vrcp.f32 %v3290_v61 }
  0x50   : > { %v2746_v53 = vpop.eup %2745  ;;  %v858_v56 = vrot.slane %v783_v45, 7  ;;  %v781_v57 = vmul.f32 %v2744_v50, %v3085_v26  ;;  %2769 = vpow2.f32 %v3220_v41 }
  0x51   : > { %v2748_v62 = vpop.eup %2747  ;;  %v913_v0 = vsel %vm850_vm0, 0.0, %v857_v51  ;;  %v854_v1 = vrot.slane %v780_v23, 7  ;;  %v784_v24 = vmul.f32 %v2746_v53, %v3088_v27  ;;  %2771 = vpow2.f32 %v3274_v47 }
  0x52   : > { %v859_v2 = vsel %vm850_vm0, %v857_v51, %v858_v56  ;;  %v923_v3 = vsel %vm850_vm0, %v858_v56, 0.0  ;;  %v855_v26 = vrot.slane %v781_v57, 7  ;;  %v785_v5 = vmul.f32 %v2748_v62, %v3091_v28  ;;  %v2750_v7 = vpop.eup %2749 }
  0x53   : > { %v3297_v8 = vpack.c.bf16 %v859_v2, %v913_v0  ;;  %v3299_v9 = vpack.c.bf16 %v923_v3, %v923_v3  ;;  %v912_v10 = vsel %vm850_vm0, 0.0, %v854_v1  ;;  %v860_v11 = vrot.slane %v784_v24, 7 }
  0x54   : > { %v2752_v12 = vpop.eup %2751  ;;  %v856_v27 = vsel %vm850_vm0, %v854_v1, %v855_v26  ;;  %v922_v15 = vsel %vm850_vm0, %v855_v26, 0.0  ;;  %v861_v16 = vrot.slane %v785_v5, 7  ;;  %v3312_v32 = vmul.f32 %v2750_v7, %v3110_v38 }
  0x55   : > { %v2754_v4 = vpop.eup %2753  ;;  %v977_v18 = vshrl.u32 %v3297_v8, 16  ;;  %v979_v28 = vshll.u32 %v3297_v8, 16  ;;  %v984_v19 = vshll.u32 %v3299_v9, 16  ;;  %v3307_v20 = vpack.c.bf16 %v856_v27, %v912_v10 }
  0x56   : > { %v934_v21 = vpack.c.bf16 %v922_v15, %v922_v15  ;;  %v778_v25 = vmul.f32 %v2752_v12, %v3149_v58  ;;  %v779_v30 = vmul.f32 %v2754_v4, %v3152_v59  ;;  %v2756_v48 = vpop.eup %2755  ;;  %v862_v49 = vsel %vm850_vm0, %v860_v11, %v861_v16 }
  0x57   : > { %v981_v34 = vrot.slane %v979_v28, 1  ;;  %v986_v35 = vrot.slane %v984_v19, 1  ;;  %1106 = vrot.lane.b32.xlu0 %v3307_v20, %s2879_s19  ;;  %v1084_v36 = vrot.slane %v3307_v20, 1  ;;  %v965_v37 = vshrl.u32 %v3307_v20, 16  ;;  %v2758_v23 = vpop.eup %2757 }
  0x58   : > { %v1085_v58 = vrot.slane %v934_v21, 1  ;;  %v810_v38 = vsel %vm3268_vm1, %v778_v25, 0.0  ;;  %v811_v59 = vsel %vm3268_vm1, %v779_v30, 0.0  ;;  %v967_v42 = vshll.u32 %v3307_v20, 16  ;;  %v2760_v62 = vpop.eup %2759 }
  0x59   : > { %v982_v43 = vor.u32 %v981_v34, %v977_v18  ;;  %v851_v6 = vrot.slane %v810_v38, 7  ;;  %v852_v45 = vrot.slane %v811_v59, 7  ;;  %v972_v46 = vshll.u32 %v934_v21, 16  ;;  %v2762_v2 = vpop.eup %2761 }
  0x5a   : > { %v969_v22 = vrot.slane %v967_v42, 1  ;;  %v914_v50 = vsel %vm850_vm0, 0.0, %v860_v11  ;;  %v924_v51 = vsel %vm850_vm0, %v861_v16, 0.0  ;;  %v3346_v0 = vsel %vm1080_vm3, %v1084_v36, %v1085_v58  ;;  %v2764_v10 = vpop.eup %2763 }
  0x5b   : > { %v3338_v52 = vsel %vm951_vm2, %v982_v43, %v986_v35  ;;  %v853_v53 = vsel %vm850_vm0, %v851_v6, %v852_v45  ;;  %v911_v56 = vsel %vm850_vm0, 0.0, %v851_v6  ;;  %v921_v57 = vsel %vm850_vm0, %v852_v45, 0.0  ;;  %v2766_v25 = vpop.eup %2765 }
  0x5c   : > { %1052 = vrot.lane.b32.xlu1 %v3338_v52, %s2879_s19  ;;  %v3348_v1 = vpack.c.bf16 %v853_v53, %v911_v56  ;;  %v3350_v24 = vpack.c.bf16 %v921_v57, %v921_v57  ;;  %v970_v3 = vor.u32 %v969_v22, %v965_v37  ;;  %v974_v26 = vrot.slane %v972_v46, 1  ;;  %v2768_v57 = vpop.eup %2767 }
  0x5d   : > { %v3354_v5 = vpack.c.bf16 %v862_v49, %v914_v50  ;;  %v3356_v7 = vpack.c.bf16 %v924_v51, %v924_v51  ;;  %v2331_v15 = vmul.f32 -1.442695, %v3201_v29  ;;  %v1087_v16 = vrot.slane %v3297_v8, 1 }
  0x5e   : > { %v953_v11 = vshrl.u32 %v3348_v1, 16  ;;  %v955_v12 = vshll.u32 %v3348_v1, 16  ;;  %v960_v27 = vshll.u32 %v3350_v24, 16  ;;  %v1088_v4 = vrot.slane %v3299_v9, 1 }
  0x5f   : > { %v991_v61 = vshll.u32 %v3354_v5, 16  ;;  %v787_v19 = vmul.f32 %v2756_v48, %v3117_v40  ;;  %v863_v21 = vrot.slane %v3312_v32, 7  ;;  %v3371_v30 = vsel %vm951_vm2, %v970_v3, %v974_v26 }
  0x60   : > { %1138 = vrot.lane.b32.xlu1 %v3346_v0, %s2879_s19  ;;  %v957_v18 = vrot.slane %v955_v12, 1  ;;  %v962_v28 = vrot.slane %v960_v27, 1  ;;  %v989_v34 = vshrl.u32 %v3354_v5, 16  ;;  %v996_v9 = vshll.u32 %v3356_v7, 16 }
  0x61   : > { %v993_v35 = vrot.slane %v991_v61, 1  ;;  %v864_v41 = vrot.slane %v787_v19, 7  ;;  %v915_v37 = vsel %vm850_vm0, 0.0, %v863_v21  ;;  %v788_v58 = vmul.f32 %v2758_v23, %v3137_v54 }
  0x62   : > { %v958_v36 = vor.u32 %v957_v18, %v953_v11  ;;  %v3378_v38 = vsel %vm1080_vm3, %v1087_v16, %v1088_v4  ;;  %v789_v40 = vmul.f32 %v2760_v62, %v3140_v55  ;;  %v790_v32 = vmul.f32 %v2762_v2, %v3155_v60  ;;  %v2770_v4 = vpop.eup %2769 }
  0x63   : > { %v865_v42 = vsel %vm850_vm0, %v863_v21, %v864_v41  ;;  %v925_v43 = vsel %vm850_vm0, %v864_v41, 0.0  ;;  %v866_v6 = vrot.slane %v788_v58, 7  ;;  %v998_v54 = vrot.slane %v996_v9, 1 }
  0x64   : > { %v963_v59 = vsel %vm951_vm2, %v958_v36, %v962_v28  ;;  %1050 = vrot.lane.b32.xlu1 %v3371_v30, %s2879_s19  ;;  %v3389_v45 = vpack.c.bf16 %v865_v42, %v915_v37  ;;  %v940_v55 = vpack.c.bf16 %v925_v43, %v925_v43  ;;  %v867_v46 = vrot.slane %v789_v40, 7 }
  0x65   : > { %1048 = vrot.lane.b32.xlu0 %v963_v59, %s2879_s19  ;;  %v994_v60 = vor.u32 %v993_v35, %v989_v34  ;;  %v916_v47 = vsel %vm850_vm0, 0.0, %v866_v6  ;;  %v791_v48 = vmul.f32 %v2764_v10, %v3162_v63  ;;  %v869_v22 = vrot.slane %v790_v32, 7  ;;  %v2772_v32 = vpop.eup %2771 }
  0x66   : > { %v1001_v49 = vshrl.u32 %v3389_v45, 16  ;;  %v1003_v50 = vshll.u32 %v3389_v45, 16  ;;  %v1008_v51 = vshll.u32 %v940_v55, 16  ;;  %v868_v23 = vsel %vm850_vm0, %v866_v6, %v867_v46 }
  0x67   : > { %v926_v53 = vsel %vm850_vm0, %v867_v46, 0.0  ;;  %v3399_v56 = vpack.c.bf16 %v868_v23, %v916_v47  ;;  %2773 = vpow2.f32 %v2331_v15  ;;  %v1090_v2 = vrot.slane %v3354_v5, 1 }
  0x68   : > { %1140 = vrot.lane.b32.xlu1 %v3378_v38, %s2879_s19  ;;  %v1005_v63 = vrot.slane %v1003_v50, 1  ;;  %v1010_v62 = vrot.slane %v1008_v51, 1  ;;  %v870_v3 = vrot.slane %v791_v48, 7  ;;  %v3405_v26 = vsel %vm951_vm2, %v994_v60, %v998_v54 }
  0x69   : > { %1108 = vrot.lane.b32.xlu0 %v3297_v8, %s2879_s19  ;;  %v3407_v10 = vpack.c.bf16 %v926_v53, %v926_v53  ;;  %v1015_v11 = vshll.u32 %v3399_v56, 16  ;;  %v917_v12 = vsel %vm850_vm0, 0.0, %v869_v22  ;;  %v792_v16 = vmul.f32 %v2766_v25, %v3184_v13 }
  0x6a   : > { %v1006_v27 = vor.u32 %v1005_v63, %v1001_v49  ;;  %v871_v15 = vsel %vm850_vm0, %v869_v22, %v870_v3  ;;  %v927_v61 = vsel %vm850_vm0, %v870_v3, 0.0  ;;  %v1091_v18 = vrot.slane %v3356_v7, 1 }
  0x6b   : > { %v1093_v28 = vrot.slane %v3389_v45, 1  ;;  %v3416_v19 = vpack.c.bf16 %v871_v15, %v917_v12  ;;  %v944_v21 = vpack.c.bf16 %v927_v61, %v927_v61  ;;  %v1013_v35 = vshrl.u32 %v3399_v56, 16 }
  0x6c   : > { %v3421_v34 = vsel %vm951_vm2, %v1006_v27, %v1010_v62  ;;  %v1094_v9 = vrot.slane %v940_v55, 1  ;;  %v793_v36 = vmul.f32 %v2768_v57, %v3187_v14  ;;  %v1017_v13 = vrot.slane %v1015_v11, 1 }
  0x6d   : > { %1054 = vrot.lane.b32.xlu0 %v3405_v26, %s2879_s19  ;;  %1056 = vrot.lane.b32.xlu1 %v3421_v34, %s2879_s19  ;;  %v1020_v7 = vshll.u32 %v3407_v10, 16  ;;  %v1027_v25 = vshll.u32 %v3416_v19, 16  ;;  %v1032_v41 = vshll.u32 %v944_v21, 16  ;;  %v1025_v37 = vshrl.u32 %v3416_v19, 16 }
  0x6e   : > { %v872_v58 = vrot.slane %v792_v16, 7  ;;  %v873_v40 = vrot.slane %v793_v36, 7  ;;  %v3431_v59 = vsel %vm1080_vm3, %v1090_v2, %v1091_v18  ;;  %v2332_v14 = vmul.f32 -1.442695, %v3210_v33 }
  0x6f   : > { %v1029_v42 = vrot.slane %v1027_v25, 1  ;;  %v3437_v43 = vsel %vm1080_vm3, %v1093_v28, %v1094_v9  ;;  %v734_v55 = vadd.f32 1.0, %v2770_v4  ;;  %v1018_v46 = vor.u32 %v1017_v13, %v1013_v35 }
  0x70   : > { %v874_v6 = vsel %vm850_vm0, %v872_v58, %v873_v40  ;;  %v918_v54 = vsel %vm850_vm0, 0.0, %v872_v58  ;;  %v1022_v60 = vrot.slane %v1020_v7, 1  ;;  %v1034_v47 = vrot.slane %v1032_v41, 1 }
  0x71   : > { %1110 = vrot.lane.b32.xlu0 %v3354_v5, %s2879_s19  ;;  %1112 = vrot.lane.b32.xlu1 %v3389_v45, %s2879_s19  ;;  %v3443_v48 = vpack.c.bf16 %v874_v6, %v918_v54  ;;  %v1030_v22 = vor.u32 %v1029_v42, %v1025_v37  ;;  %v928_v49 = vsel %vm850_vm0, %v873_v40, 0.0  ;;  %v735_v50 = vadd.f32 1.0, %v2772_v32 }
  0x72   : > { %2775 = vrcp.f32 %v734_v55  ;;  %v3449_v23 = vsel %vm951_vm2, %v1018_v46, %v1022_v60  ;;  %v946_v53 = vpack.c.bf16 %v928_v49, %v928_v49  ;;  %v1096_v2 = vrot.slane %v3399_v56, 1 }
  0x73   : > { %2777 = vrcp.f32 %v735_v50  ;;  %v1039_v57 = vshll.u32 %v3443_v48, 16  ;;  %v3455_v63 = vsel %vm951_vm2, %v1030_v22, %v1034_v47  ;;  %v1097_v3 = vrot.slane %v3407_v10, 1 }
  0x74   : > { %v2774_v51 = vpop.eup %2773  ;;  %2779 = vpow2.f32 %v2332_v14  ;;  %v1037_v11 = vshrl.u32 %v3443_v48, 16  ;;  %v1044_v27 = vshll.u32 %v946_v53, 16  ;;  %v1099_v15 = vrot.slane %v3416_v19, 1 }
  0x75   : > { %1142 = vrot.lane.b32.xlu0 %v3431_v59, %s2879_s19  ;;  %1144 = vrot.lane.b32.xlu1 %v3437_v43, %s2879_s19  ;;  %v736_v62 = vadd.f32 1.0, %v2774_v51  ;;  %v1041_v12 = vrot.slane %v1039_v57, 1  ;;  %v1100_v61 = vrot.slane %v944_v21, 1  ;;  %v3468_v16 = vsel %vm1080_vm3, %v1096_v2, %v1097_v3 }
  0x76   : > { %v1046_v10 = vrot.slane %v1044_v27, 1  ;;  %v1103_v58 = vrot.slane %v946_v53, 1  ;;  %v804_v6 = vstv %s803_s10  ;;  %s3775_s10 = scalar_lea.vmem [#allocation2], %s2285_s13 }
  0x77   : > { %2781 = vrcp.f32 %v736_v62  ;;  %v1042_v4 = vor.u32 %v1041_v12, %v1037_v11  ;;  %v3473_v18 = vsel %vm1080_vm3, %v1099_v15, %v1100_v61  ;;  %vm805_vm4 = vcmp.eq.s32.totalorder %v804_v6, 1  ;;  %v2703_v6 = vld [vmem:[%s3931_s8] sm:$0xff]   ;;  %s2108_s17 = sshll.u32 %s3775_s10, 4  ;;  %s3863_s17 = int_to_ptr.vmem [resolvable:$true] %s2108_s17 }
  0x78   : > { %s2785_s18 = scalar_lea.vmem %s3863_s17, 2048 }
  0x79   : > { %1058 = vrot.lane.b32.xlu0 %v3449_v23, %s2879_s19  ;;  %1060 = vrot.lane.b32.xlu1 %v3455_v63, %s2879_s19  ;;  %v3480_v9 = vsel %vm951_vm2, %v1042_v4, %v1046_v10  ;;  %p2786_p6 = scmp.ne.s32.totalorder %s3863_s17, %s2785_s18 }
  0x7b   : > { %p2787_p7 = pnand %p2786_p6, %p2989_p3 }
  0x7d   : > { %1114 = vrot.lane.b32.xlu0 %v3399_v56, %s2879_s19  ;;  %1116 = vrot.lane.b32.xlu1 %v3416_v19, %s2879_s19  ;;  %p2788_p9 = pneg %p2787_p7 }
  0x7f   : > { %v2776_v28 = vpop.eup %2775 }
  0x80   : > { %v794_v21 = vmul.f32 %v2776_v28, %v3191_v17  ;;  %v2778_v35 = vpop.eup %2777  ;;  %v1102_v17 = vrot.slane %v3443_v48, 1 }
  0x81   : > { %1146 = vrot.lane.b32.xlu0 %v3468_v16, %s2879_s19  ;;  %1148 = vrot.lane.b32.xlu1 %v3473_v18, %s2879_s19  ;;  %v2780_v36 = vpop.eup %2779  ;;  %v795_v13 = vmul.f32 %v2778_v35, %v3262_v31 }
  0x82   : > { %v875_v7 = vrot.slane %v794_v21, 7  ;;  %v737_v25 = vadd.f32 1.0, %v2780_v36  ;;  %v3498_v60 = vsel %vm1080_vm3, %v1102_v17, %v1103_v58 }
  0x83   : > { %v876_v41 = vrot.slane %v795_v13, 7 }
  0x84   : > { %v919_v37 = vsel %vm850_vm0, 0.0, %v875_v7  ;;  %2783 = vrcp.f32 %v737_v25  ;;  %v2782_v14 = vpop.eup %2781 }
  0x85   : > { %1062 = vrot.lane.b32.xlu0 %v3480_v9, %s2879_s19  ;;  %v877_v40 = vsel %vm850_vm0, %v875_v7, %v876_v41  ;;  %v929_v32 = vsel %vm850_vm0, %v876_v41, 0.0  ;;  %v796_v49 = vmul.f32 %v2782_v14, %v3201_v29  ;;  %v1081_v41 = vrot.slane %v3348_v1, 1 }
  0x86   : > { %v3491_v42 = vpack.c.bf16 %v877_v40, %v919_v37  ;;  %v948_v31 = vpack.c.bf16 %v929_v32, %v929_v32  ;;  %v1082_v37 = vrot.slane %v3350_v24, 1 }
  0x87   : > { %v828_v53 = vsel %vm805_vm4, %v796_v49, 0.0 }
  0x88   : > { %v1123_v54 = vshrl.u32 %v3491_v42, 16  ;;  %v1125_v55 = vshll.u32 %v3491_v42, 16  ;;  %v1130_v46 = vshll.u32 %v948_v31, 16  ;;  %v1135_v57 = vrot.slane %v3491_v42, 1 }
  0x89   : > { %1118 = vrot.lane.b32.xlu0 %v3443_v48, %s2879_s19  ;;  %v1136_v62 = vrot.slane %v948_v31, 1  ;;  %v878_v3 = vrot.slane %v828_v53, 7  ;;  %v1083_v17 = vsel %vm1080_vm3, %v1081_v41, %v1082_v37 }
  0x8a   : > { %v1127_v47 = vrot.slane %v1125_v55, 1  ;;  %v1132_v22 = vrot.slane %v1130_v46, 1  ;;  %v2701_v46 = vld [vmem:[%s3928_s5 + $0x110] sm:$0xff]  }
  0x8b   : > { %v3513_v12 = vsel %vm1080_vm3, %v1135_v57, %v1136_v62  ;;  %v920_v15 = vsel %vm850_vm0, 0.0, %v878_v3 }
  0x8c   : > { %v1128_v50 = vor.u32 %v1127_v47, %v1123_v54 }
  0x8d   : > { %1150 = vrot.lane.b32.xlu0 %v3498_v60, %s2879_s19 }
  0x8e   : > { %v3504_v51 = vsel %vm951_vm2, %v1128_v50, %v1132_v22 }
  0x8f   : > { %1166 = vrot.lane.b32.xlu1 %v3504_v51, %s2879_s19 }
  0x91   : > { %v2784_v2 = vpop.eup %2783 }
  0x92   : > { %v797_v11 = vmul.f32 %v2784_v2, %v3210_v33 }
  0x93   : > { %1120 = vrot.lane.b32.xlu1 %v3491_v42, %s2879_s19 }
  0x94   : > { %v829_v29 = vsel %vm805_vm4, %v797_v11, 0.0 }
  0x95   : > { %v879_v27 = vrot.slane %v829_v29, 7 }
  0x97   : > { %v880_v61 = vsel %vm850_vm0, %v878_v3, %v879_v27  ;;  %v930_v4 = vsel %vm850_vm0, %v879_v27, 0.0  ;;  %1152 = vrot.lane.b32.xlu1 %v3513_v12, %s2879_s19 }
  0x98   : > { %v3520_v10 = vpack.c.bf16 %v880_v61, %v920_v15  ;;  %v3522_v33 = vpack.c.bf16 %v930_v4, %v930_v4 }
  0x9a   : > { %v1155_v28 = vshrl.u32 %v3520_v10, 16  ;;  %v1157_v21 = vshll.u32 %v3520_v10, 16  ;;  %v1162_v35 = vshll.u32 %v3522_v33, 16 }
  0x9c   : > { %v1159_v36 = vrot.slane %v1157_v21, 1  ;;  %v1164_v13 = vrot.slane %v1162_v35, 1 }
  0x9e   : > { %v1160_v7 = vor.u32 %v1159_v36, %v1155_v28 }
  0xa0   : > { %v1165_v25 = vsel %vm951_vm2, %v1160_v7, %v1164_v13 }
  0xa1   : > { %1168 = vrot.lane.b32.xlu0 %v1165_v25, %s2879_s19  ;;  %s3598_s19 = scalar_lea.vmem %s3930_s7, %s2299_s23 }
  0xc9   : > { %v1107_v58 = vpop.permute.xlu0 %1106 }
  0xca   : > { %v1202_v40 = vsel %vm1175_vm5, %v1083_v17, %v1107_v58 }
  0xcb   : > { %1615 = vmatprep.mubr.bf16.mxu0 %v1202_v40 }
  0xce   : > { %v1053_v32 = vpop.permute.xlu1 %1052 }
  0xcf   : > { %v1183_v31 = vsel %vm1175_vm5, %v3297_v8, %v1053_v32 }
  0xd0   : > { %1712 = vmatprep.mubr.bf16.mxu1 %v1183_v31 }
  0xd2   : > { %v1139_v14 = vpop.permute.xlu1 %1138 }
  0xd3   : > { %v1234_v24 = vsel %vm1175_vm5, %v3371_v30, %v1139_v14 }
  0xd4   : > { %1713 = vmatmul.mubr.bf16.vlgmr.msra.gmra.mxu1 %v1234_v24  ;;  %v1879_v24 = vld [vmem:[%s3598_s19 + $0x28] sm:$0xff] }
  0xd5   : > { %2574 = vmatpush3.bf16.msra.mxu1 %v3335_v44  ;;  %v2702_v44 = vld [vmem:[%s3928_s5 + $0x108] sm:$0xff]  }
  0xd6   : > { %v1051_v54 = vpop.permute.xlu1 %1050  ;;  %2575 = vmatprep.subr.bf16.mxu1 %v2703_v6 }
  0xd7   : > { %v1049_v55 = vpop.permute.xlu0 %1048  ;;  %v1180_v50 = vsel %vm1175_vm5, %v3307_v20, %v1051_v54 }
  0xd8   : > { %v1177_v8 = vsel %vm1175_vm5, %v3348_v1, %v1049_v55 }
  0xd9   : > { %1616 = vmatmul.mubr.bf16.vlgmr.msra.gmra.mxu0 %v1177_v8  ;;  %2576 = vmatpush3.bf16.msra.mxu1 %v2703_v6  ;;  %v1877_v6 = vld [vmem:[%s3598_s19 + $0x18] sm:$0xff]  ;;  %v1883_v8 = vld [vmem:[%s3598_s19 + $0x48] sm:$0xff] }
  0xda   : > { %2550 = vmatpush3.bf16.msra.mxu0 %v3321_v39  ;;  %v1141_v22 = vpop.permute.xlu1 %1140  ;;  %v2704_v39 = vld [vmem:[%s3928_s5 + $0x100] sm:$0xff]  }
  0xdb   : > { %v1109_v47 = vpop.permute.xlu0 %1108  ;;  %2551 = vmatprep.subr.bf16.mxu0 %v2701_v46  ;;  %v1238_v1 = vsel %vm1175_vm5, %v3338_v52, %v1141_v22  ;;  %v1173_v22 = vrot.slane %v3522_v33, 1 }
  0xdc   : > { %v1206_v30 = vsel %vm1175_vm5, %v3346_v0, %v1109_v47 }
  0xdd   : > { %1623 = vmatprep.mubr.bf16.mxu0 %v1206_v30  ;;  %v1885_v30 = vld [vmem:[%s3598_s19 + $0x58] sm:$0xff] }
  0xde   : > { %2552 = vmatpush3.bf16.msra.mxu0 %v2701_v46  ;;  %v1881_v46 = vld [vmem:[%s3598_s19 + $0x38] sm:$0xff] }
  0xdf   : > { %v1055_v49 = vpop.permute.xlu0 %1054  ;;  %2553 = vmatprep.subr.bf16.mxu0 %v2702_v44  ;;  %v1057_v57 = vpop.permute.xlu1 %1056 }
  0xe0   : > { %v1186_v53 = vsel %vm1175_vm5, %v3354_v5, %v1055_v49  ;;  %v1189_v0 = vsel %vm1175_vm5, %v3389_v45, %v1057_v57  ;;  %v1886_v49 = vld [vmem:[%s3598_s19 + $0x60] sm:$0xff]  ;;  %v1889_v57 = vld [vmem:[%s3598_s19 + $0x78] sm:$0xff] }
  0xe1   : > { %1624 = vmatmul.mubr.bf16.gmra.mxu0 %v1180_v50  ;;  %1720 = vmatprep.mubr.bf16.mxu1 %v1186_v53 }
  0xe2   : > { %1721 = vmatmul.mubr.bf16.gmra.mxu1 %v1238_v1  ;;  %2554 = vmatpush3.bf16.msra.mxu0 %v2702_v44  ;;  %v1887_v1 = vld [vmem:[%s3598_s19 + $0x68] sm:$0xff] }
  0xe3   : > { %v1111_v52 = vpop.permute.xlu0 %1110  ;;  %1728 = vmatprep.mubr.bf16.mxu1 %v1189_v0  ;;  %2555 = vmatprep.subr.bf16.mxu0 %v2704_v39  ;;  %v1113_v2 = vpop.permute.xlu1 %1112  ;;  %v1896_v50 = vpack.c.bf16 %v1887_v1, %v1886_v49 }
  0xe4   : > { %v1210_v62 = vsel %vm1175_vm5, %v3378_v38, %v1111_v52  ;;  %v1214_v5 = vsel %vm1175_vm5, %v3431_v59, %v1113_v2 }
  0xe5   : > { %1631 = vmatprep.mubr.bf16.mxu0 %v1210_v62 }
  0xe6   : > { %2556 = vmatpush3.bf16.msra.mxu0 %v2704_v39 }
  0xe7   : > { %v1143_v20 = vpop.permute.xlu0 %1142  ;;  %v1145_v45 = vpop.permute.xlu1 %1144 }
  0xe8   : > { %v1242_v3 = vsel %vm1175_vm5, %v3405_v26, %v1143_v20  ;;  %v1246_v15 = vsel %vm1175_vm5, %v3421_v34, %v1145_v45 }
  0xe9   : > { %1632 = vmatmul.mubr.bf16.gmra.mxu0 %v1183_v31 }
  0xea   : > { %1729 = vmatmul.mubr.bf16.gmra.mxu1 %v1242_v3  ;;  %1639 = vmatprep.mubr.bf16.mxu0 %v1214_v5 }
  0xeb   : > { %v1059_v11 = vpop.permute.xlu0 %1058  ;;  %v1061_v27 = vpop.permute.xlu1 %1060 }
  0xec   : > { %v1192_v29 = vsel %vm1175_vm5, %v3399_v56, %v1059_v11  ;;  %v1195_v26 = vsel %vm1175_vm5, %v3416_v19, %v1061_v27 }
  0xed   : > { %1736 = vmatprep.mubr.bf16.mxu1 %v1192_v29 }
  0xef   : > { %v1115_v61 = vpop.permute.xlu0 %1114  ;;  %v1117_v21 = vpop.permute.xlu1 %1116 }
  0xf0   : > { %v1218_v4 = vsel %vm1175_vm5, %v3437_v43, %v1115_v61  ;;  %v1222_v35 = vsel %vm1175_vm5, %v3468_v16, %v1117_v21 }
  0xf1   : > { %1640 = vmatmul.mubr.bf16.gmra.mxu0 %v1186_v53 }
  0xf2   : > { %1737 = vmatmul.mubr.bf16.gmra.mxu1 %v1246_v15  ;;  %1647 = vmatprep.mubr.bf16.mxu0 %v1218_v4 }
  0xf3   : > { %v1147_v28 = vpop.permute.xlu0 %1146  ;;  %1744 = vmatprep.mubr.bf16.mxu1 %v1195_v26  ;;  %v1149_v19 = vpop.permute.xlu1 %1148 }
  0xf4   : > { %v1250_v56 = vsel %vm1175_vm5, %v3449_v23, %v1147_v28  ;;  %v1254_v7 = vsel %vm1175_vm5, %v3455_v63, %v1149_v19 }
  0xf7   : > { %v1063_v34 = vpop.permute.xlu0 %1062 }
  0xf8   : > { %v1198_v36 = vsel %vm1175_vm5, %v3443_v48, %v1063_v34 }
  0xf9   : > { %1648 = vmatmul.mubr.bf16.gmra.mxu0 %v1189_v0 }
  0xfa   : > { %1745 = vmatmul.mubr.bf16.gmra.mxu1 %v1250_v56  ;;  %1655 = vmatprep.mubr.bf16.mxu0 %v1222_v35 }
  0xfb   : > { %1752 = vmatprep.mubr.bf16.mxu1 %v1198_v36  ;;  %v1119_v13 = vpop.permute.xlu0 %1118 }
  0xfc   : > { %v1226_v23 = vsel %vm1175_vm5, %v3473_v18, %v1119_v13 }
  0xff   : > { %v1151_v41 = vpop.permute.xlu0 %1150 }
 0x100   : > { %v1258_v37 = vsel %vm1175_vm5, %v3480_v9, %v1151_v41  ;;  %v1874_v9 = vld [vmem:[%s3598_s19] sm:$0xff] }
 0x101   : > { %1656 = vmatmul.mubr.bf16.gmra.mxu0 %v1192_v29  ;;  %v1167_v25 = vpop.permute.xlu1 %1166 }
 0x102   : > { %1753 = vmatmul.mubr.bf16.gmra.mxu1 %v1254_v7  ;;  %1663 = vmatprep.mubr.bf16.mxu0 %v1226_v23  ;;  %v1265_v48 = vsel %vm1175_vm5, %v3491_v42, %v1167_v25  ;;  %v1875_v42 = vld [vmem:[%s3598_s19 + $0x8] sm:$0xff] }
 0x103   : > { %1760 = vmatprep.mubr.bf16.mxu1 %v1265_v48  ;;  %v1890_v31 = vpack.c.bf16 %v1875_v42, %v1874_v9 }
 0x105   : > { %v1121_v17 = vpop.permute.xlu1 %1120 }
 0x106   : > { %v1230_v58 = vsel %vm1175_vm5, %v3498_v60, %v1121_v17 }
 0x109   : > { %1664 = vmatmul.mubr.bf16.gmra.mxu0 %v1195_v26  ;;  %v1153_v63 = vpop.permute.xlu1 %1152 }
 0x10a   : > { %1761 = vmatmul.mubr.bf16.gmra.mxu1 %v1258_v37  ;;  %1671 = vmatprep.mubr.bf16.mxu0 %v1230_v58  ;;  %v1262_v32 = vsel %vm1175_vm5, %v3504_v51, %v1153_v63  ;;  %v1878_v51 = vld [vmem:[%s3598_s19 + $0x20] sm:$0xff] }
 0x10b   : > { %v1892_v55 = vpack.c.bf16 %v1879_v24, %v1878_v51 }
 0x111   : > { %1672 = vmatmul.mubr.bf16.gmra.mxu0 %v1198_v36 }
 0x112   : > { %2557 = vmatprep.mubr.msk.bf16.mxu0 %vm1175_vm5, %v3378_v38  ;;  %v1876_v38 = vld [vmem:[%s3598_s19 + $0x10] sm:$0xff] }
 0x113   : > { %v1169_v40 = vpop.permute.xlu0 %1168  ;;  %v1891_v54 = vpack.c.bf16 %v1877_v6, %v1876_v38 }
 0x114   : > { %v1268_v14 = vsel %vm1175_vm5, %v3520_v10, %v1169_v40 }
 0x115   : > { %1768 = vmatprep.mubr.bf16.mxu1 %v1268_v14 }
 0x116   : > { %1769 = vmatmul.mubr.bf16.gmra.mxu1 %v1262_v32 }
 0x117   : > { %2577 = vmatprep.mubr.msk.bf16.mxu1 %vm1914_vm6, %v1890_v31 }
 0x119   : > { %2558 = vmatmul.mubr.msk.bf16.vlgmr.msra.gmra.mxu0 %vm1175_vm5, %v3431_v59  ;;  %v1880_v59 = vld [vmem:[%s3598_s19 + $0x30] sm:$0xff] }
 0x11a   : > { %2561 = vmatprep.mubr.msk.bf16.mxu0 %vm1175_vm5, %v3437_v43  ;;  %v1882_v43 = vld [vmem:[%s3598_s19 + $0x40] sm:$0xff]  ;;  %v1893_v47 = vpack.c.bf16 %v1881_v46, %v1880_v59 }
 0x11b   : > { %v1894_v44 = vpack.c.bf16 %v1883_v8, %v1882_v43 }
 0x11e   : > { %2578 = vmatmul.mubr.msk.bf16.vlgmr.msra.gmra.mxu1 %vm1914_vm6, %v1891_v54 }
 0x11f   : > { %2581 = vmatprep.mubr.msk.bf16.mxu1 %vm1914_vm6, %v1892_v55 }
 0x121   : > { %2562 = vmatmul.mubr.msk.bf16.gmra.mxu0 %vm1175_vm5, %v3468_v16  ;;  %v1884_v16 = vld [vmem:[%s3598_s19 + $0x50] sm:$0xff] }
 0x122   : > { %2565 = vmatprep.mubr.msk.bf16.mxu0 %vm1175_vm5, %v3473_v18  ;;  %v1172_v18 = vrot.slane %v3520_v10, 1  ;;  %v1895_v39 = vpack.c.bf16 %v1885_v30, %v1884_v16 }
 0x124   : > { %v1174_v53 = vsel %vm1080_vm3, %v1172_v18, %v1173_v22 }
 0x126   : > { %2582 = vmatmul.mubr.msk.bf16.gmra.mxu1 %vm1914_vm6, %v1893_v47 }
 0x127   : > { %2585 = vmatprep.mubr.msk.bf16.mxu1 %vm1914_vm6, %v1894_v44 }
 0x129   : > { %2566 = vmatmul.mubr.msk.bf16.gmra.mxu0 %vm1175_vm5, %v3498_v60  ;;  %v1888_v60 = vld [vmem:[%s3598_s19 + $0x70] sm:$0xff]  ;;  %s2789_s19 = sshll.u32 %s2880_s15, 4  ;;  %s2790_s19 = int_to_ptr.vmem [resolvable:$false] %s2789_s19 }
 0x12a   : > { %2569 = vmatprep.mubr.msk.bf16.mxu0 %vm1175_vm5, %v3513_v12  ;;  %v1897_v0 = vpack.c.bf16 %v1889_v57, %v1888_v60  ;;  %v3729_v60 = vld [vmem:[%s3929_s6] ss:$0 sm:$0xff]  ;;  %s2791_s3 = scalar_lea.vmem %s2790_s19, 4096  ;;  %p2792_p10 = scmp.lt.s32.totalorder %s3863_s17, %s2790_s19 }
 0x12b   : > { %p2793_p11 = scmp.lt.s32.totalorder %s2791_s3, %s2785_s18 }
 0x12d   : > { %p2794_p12 = por %p2793_p11, %p2792_p10 }
 0x12e   : > { %2586 = vmatmul.mubr.msk.bf16.gmra.mxu1 %vm1914_vm6, %v1895_v39 }
 0x12f   : > { %2589 = vmatprep.mubr.msk.bf16.mxu1 %vm1914_vm6, %v1896_v50  ;;  %p2795_p13 = pnand %p2794_p12, %p2788_p9 }
 0x131   : > { %2570 = vmatmul.mubr.msk.bf16.gmra.mxu0 %vm1175_vm5, %v1174_v53 }
 0x136   : > { %2590 = vmatmul.mubr.msk.bf16.gmra.mxu1 %vm1914_vm6, %v1897_v0 }
 0x194   : > { %v3646_v12 = vpop.f32.mrf.mxu1 }
 0x196   : > { %v3648_v10 = vpop.f32.mrf.mxu1 }
 0x198   : > { %v3650_v52 = vpop.f32.mrf.mxu1 }
 0x199   : > { %v2415_v33 = vpop.f32.mrf.mxu0 }
 0x19a   : > { %v3654_v20 = vpop.f32.mrf.mxu1 }
 0x19b   : > { %v2416_v62 = vpop.f32.mrf.mxu0 }
 0x19c   : > { %v2417_v50 = vadd.f32 %v2416_v62, %v2415_v33 }
 0x19d   : > { %v3652_v2 = vpop.f32.mrf.mxu0 }
 0x19f   : > { %v2419_v5 = vpop.f32.mrf.mxu0 }
 0x1a0   : > { %v2420_v33 = vadd.f32 %v2419_v5, %v3652_v2 }
 0x1a1   : > { %v2421_v3 = vpop.f32.mrf.mxu0 }
 0x1a2   : > { %v2485_v45 = vpop.f32.mrf.mxu1 }
 0x1a3   : > { %v2422_v11 = vpop.f32.mrf.mxu0 }
 0x1a4   : > { %v2486_v29 = vpop.f32.mrf.mxu1  ;;  %v2423_v49 = vadd.f32 %v2422_v11, %v2421_v3  ;;  %v1618_v11 = vadd.f32 %v2417_v50, %v3729_v60  ;;  %v1621_v50 = vadd.f32 %v2420_v33, %v3729_v60 }
 0x1a5   : > { %v2424_v27 = vpop.f32.mrf.mxu0  ;;  %v2487_v0 = vadd.f32 %v2486_v29, %v2485_v45 }
 0x1a6   : > { %v2488_v15 = vpop.f32.mrf.mxu1  ;;  %v1626_v57 = vadd.f32 %v2423_v49, %v3729_v60 }
 0x1a7   : > { %v2425_v61 = vpop.f32.mrf.mxu0 }
 0x1a8   : > { %v2489_v4 = vpop.f32.mrf.mxu1  ;;  %v1723_v29 = vadd.f32 %v2487_v0, %v1626_v57 }
 0x1a9   : > { %v2427_v26 = vpop.f32.mrf.mxu0  ;;  %v2490_v49 = vadd.f32 %v2489_v4, %v2488_v15 }
 0x1aa   : > { %v3656_v28 = vpop.f32.mrf.mxu1 }
 0x1ab   : > { %v2428_v21 = vpop.f32.mrf.mxu0 }
 0x1ac   : > { %v3658_v56 = vpop.f32.mrf.mxu1 }
 0x1ad   : > { %v3660_v35 = vpop.f32.mrf.mxu0 }
 0x1ae   : > { %v3662_v34 = vpop.f32.mrf.mxu1 }
 0x1af   : > { %v3664_v36 = vpop.f32.mrf.mxu0 }
 0x1b0   : > { %v3666_v19 = vpop.f32.mrf.mxu1 }
 0x1b1   : > { %v2433_v13 = vpop.f32.mrf.mxu0 }
 0x1b2   : > { %v3668_v7 = vpop.f32.mrf.mxu1 }
 0x1b3   : > { %v2434_v23 = vpop.f32.mrf.mxu0 }
 0x1b4   : > { %v2498_v25 = vpop.f32.mrf.mxu1  ;;  %v2435_v45 = vadd.f32 %v2434_v23, %v2433_v13 }
 0x1b5   : > { %v2436_v41 = vpop.f32.mrf.mxu0  ;;  %v2499_v4 = vadd.f32 %v2498_v25, %v3668_v7 }
 0x1b6   : > { %v3670_v48 = vpop.f32.mrf.mxu1  ;;  %v1642_v15 = vadd.f32 %v2435_v45, %v3729_v60 }
 0x1b7   : > { %v2437_v37 = vpop.f32.mrf.mxu0 }
 0x1b8   : > { %v3672_v17 = vpop.f32.mrf.mxu1 }
 0x1b9   : > { %v3674_v58 = vpop.f32.mrf.mxu0  ;;  %v2502_v57 = vadd.f32 %v3672_v17, %v3670_v48 }
 0x1ba   : > { %v3676_v63 = vpop.f32.mrf.mxu1 }
 0x1bb   : > { %v3678_v9 = vpop.f32.mrf.mxu0 }
 0x1bc   : > { %v3680_v42 = vpop.f32.mrf.mxu1 }
 0x1bd   : > { %v3682_v40 = vpop.f32.mrf.mxu0 }
 0x1be   : > { %v3684_v32 = vpop.f32.mrf.mxu1 }
 0x1bf   : > { %v3686_v31 = vpop.f32.mrf.mxu0 }
 0x1c0   : > { %v3688_v14 = vpop.f32.mrf.mxu1 }
 0x1c1   : > { %v3690_v38 = vpop.f32.mrf.mxu0 }
 0x1c2   : > { %v3692_v6 = vpop.f32.mrf.mxu1 }
 0x1c3   : > { %v2446_v51 = vpop.f32.mrf.mxu0 }
 0x1c4   : > { %v3694_v24 = vpop.f32.mrf.mxu1 }
 0x1c5   : > { %v3696_v54 = vpop.f32.mrf.mxu0 }
 0x1c6   : > { %v3698_v55 = vpop.f32.mrf.mxu1 }
 0x1c7   : > { %v3700_v59 = vpop.f32.mrf.mxu0 }
 0x1c8   : > { %v3702_v46 = vpop.f32.mrf.mxu1 }
 0x1c9   : > { %v3704_v43 = vpop.f32.mrf.mxu0 }
 0x1ca   : > { %v3706_v8 = vpop.f32.mrf.mxu1 }
 0x1cb   : > { %3961 = vst [vmem:[#allocation14_spill] sm:$0xff] %v3706_v8  ;;  %v3708_v47 = vpop.f32.mrf.mxu0 }
 0x1cc   : > { %v3710_v44 = vpop.f32.mrf.mxu1 }
 0x1cd   : > { %3962 = vst [vmem:[#allocation15_spill] sm:$0xff] %v3710_v44  ;;  %v3712_v16 = vpop.f32.mrf.mxu0 }
 0x1ce   : > { %3963 = vst [vmem:[#allocation16_spill] sm:$0xff] %v3712_v16  ;;  %v3716_v18 = vpop.f32.mrf.mxu1 }
 0x1cf   : > { %v3714_v30 = vpop.f32.mrf.mxu0  ;;  %3965 = vst [vmem:[#allocation18_spill] sm:$0xff] %v3716_v18  ;;  %v2426_v18 = vadd.f32 %v2425_v61, %v2424_v27  ;;  %v2429_v61 = vadd.f32 %v2428_v21, %v2427_v26 }
 0x1d0   : > { %3964 = vst [vmem:[#allocation17_spill] sm:$0xff] %v3714_v30  ;;  %v3722_v39 = vpop.f32.mrf.mxu1 }
 0x1d1   : > { %v3718_v22 = vpop.f32.mrf.mxu0  ;;  %3966 = vst [vmem:[#allocation19_spill] sm:$0xff] %v3722_v39  ;;  %v2481_v39 = vadd.f32 %v3648_v10, %v3646_v12  ;;  %v1629_v44 = vadd.f32 %v2426_v18, %v3729_v60  ;;  %v2484_v12 = vadd.f32 %v3654_v20, %v3650_v52  ;;  %v2438_v10 = vadd.f32 %v2437_v37, %v2436_v41  ;;  %v3763_v41 = vld [vmem:[%s3932_s9] ss:$0 sm:$0xff] }
 0x1d2   : > { %v1634_v23 = vadd.f32 %v2429_v61, %v3729_v60  ;;  %v2493_v18 = vadd.f32 %v3658_v56, %v3656_v28  ;;  %v2432_v52 = vadd.f32 %v3664_v36, %v3660_v35  ;;  %v2447_v28 = vadd.f32 %v2446_v51, %v3690_v38 }
 0x1d3   : > { %v3720_v1 = vpop.f32.mrf.mxu0  ;;  %v1715_v5 = vadd.f32 %v2481_v39, %v1618_v11  ;;  %v1726_v21 = vadd.f32 %v2490_v49, %v1629_v44  ;;  %v1718_v37 = vadd.f32 %v2484_v12, %v1621_v50  ;;  %v1645_v44 = vadd.f32 %v2438_v10, %v3729_v60 }
 0x1d4   : > { %v1739_v11 = vadd.f32 %v2499_v4, %v1642_v15  ;;  %v1731_v45 = vadd.f32 %v2493_v18, %v1634_v23  ;;  %v2505_v12 = vadd.f32 %v3680_v42, %v3676_v63  ;;  %v2444_v10 = vadd.f32 %v3686_v31, %v3682_v40 }
 0x1d5   : > { %v3724_v53 = vpop.f32.mrf.mxu0  ;;  %v1742_v61 = vadd.f32 %v2502_v57, %v1645_v44  ;;  %v2459_v63 = vadd.f32 %v3720_v1, %v3718_v22 }
 0x1d6   : > { %3967 = vst [vmem:[#allocation20_spill] sm:$0xff] %v3724_v53  ;;  %v3734_v3 = vpop.f32.mrf.mxu1 }
 0x1d7   : > { %v3732_v30 = vpop.f32.mrf.mxu0  ;;  %v1674_v44 = vadd.f32 %v2459_v63, %v3729_v60 }
 0x1d8   : > { %3968 = vst [vmem:[#allocation21_spill] sm:$0xff] %v3732_v30  ;;  %v3740_v16 = vpop.f32.mrf.mxu1 }
 0x1d9   : > { %v2559_v62 = vpop.f32.mrf.mxu0  ;;  %v2523_v57 = vadd.f32 %v3740_v16, %v3734_v3  ;;  %v3973_v3 = vld [vmem:[#allocation16_spill] sm:$0xff] }
 0x1da   : > { %v3743_v8 = vpop.f32.mrf.mxu1  ;;  %v1820_v2 = vadd.f32 %v2559_v62, %v1723_v29  ;;  %v1637_v62 = vadd.f32 %v2432_v52, %v3729_v60  ;;  %v2441_v29 = vadd.f32 %v3678_v9, %v3674_v58  ;;  %v2450_v58 = vadd.f32 %v3700_v59, %v3696_v54 }
 0x1db   : > { %v1811_v27 = vpop.f32.mrf.mxu0 }
 0x1dc   : > { %v3749_v53 = vpop.f32.mrf.mxu1  ;;  %v1812_v26 = vadd.f32 %v1811_v27, %v1715_v5  ;;  %v1658_v27 = vadd.f32 %v2447_v28, %v3729_v60  ;;  %v1650_v15 = vadd.f32 %v2441_v29, %v3729_v60  ;;  %v1661_v31 = vadd.f32 %v2450_v58, %v3729_v60 }
 0x1dd   : > { %v2560_v30 = vpop.f32.mrf.mxu0  ;;  %v3969_v28 = vld [vmem:[#allocation20_spill] sm:$0xff] }
 0x1de   : > { %v2579_v20 = vpop.f32.mrf.mxu1  ;;  %v1823_v25 = vadd.f32 %v2560_v30, %v1726_v21  ;;  %v2496_v30 = vadd.f32 %v3666_v19, %v3662_v34  ;;  %v2511_v34 = vadd.f32 %v3694_v24, %v3692_v6  ;;  %v2514_v21 = vadd.f32 %v3702_v46, %v3698_v55 }
 0x1df   : > { %v1814_v13 = vpop.f32.mrf.mxu0  ;;  %v2038_v7 = vadd.f32 %v2579_v20, %v1820_v2  ;;  %v1653_v20 = vadd.f32 %v2444_v10, %v3729_v60  ;;  %v2508_v55 = vadd.f32 %v3688_v14, %v3684_v32  ;;  %v2453_v46 = vadd.f32 %v3708_v47, %v3704_v43  ;;  %v3970_v32 = vld [vmem:[#allocation21_spill] sm:$0xff] }
 0x1e0   : > { %v1973_v56 = vpop.f32.mrf.mxu1  ;;  %v1815_v0 = vadd.f32 %v1814_v13, %v1718_v37  ;;  %v1734_v24 = vadd.f32 %v2496_v30, %v1637_v62  ;;  %v1755_v40 = vadd.f32 %v2511_v34, %v1658_v27  ;;  %v1747_v37 = vadd.f32 %v2505_v12, %v1650_v15  ;;  %v3972_v62 = vld [vmem:[#allocation15_spill] sm:$0xff] }
 0x1e1   : > { %v2563_v39 = vpop.f32.mrf.mxu0  ;;  %v2061_v35 = vadd.f32 %v3763_v41, %v2038_v7  ;;  %v2036_v36 = vadd.f32 %v1973_v56, %v1812_v26  ;;  %v2462_v14 = vadd.f32 %v3970_v32, %v3969_v28  ;;  %v1750_v16 = vadd.f32 %v2508_v55, %v1653_v20  ;;  %v3976_v12 = vld [vmem:[#allocation19_spill] sm:$0xff] }
 0x1e2   : > { %v2580_v49 = vpop.f32.mrf.mxu1  ;;  %v1836_v38 = vadd.f32 %v2563_v39, %v1739_v11  ;;  %v1666_v11 = vadd.f32 %v2453_v46, %v3729_v60 }
 0x1e3   : > { %v1827_v33 = vpop.f32.mrf.mxu0  ;;  %2077 = vst.msk [vmem:[%s3775_s10 + $0x10] sm:$0xff] %vm1175_vm5, %v2061_v35  ;;  %v2059_v48 = vadd.f32 %v3763_v41, %v2036_v36  ;;  %v2039_v17 = vadd.f32 %v2580_v49, %v1823_v25  ;;  %v1758_v36 = vadd.f32 %v2514_v21, %v1661_v31  ;;  %v1677_v27 = vadd.f32 %v2462_v14, %v3729_v60 }
 0x1e4   : > { %v1976_v19 = vpop.f32.mrf.mxu1  ;;  %v1828_v2 = vadd.f32 %v1827_v33, %v1731_v45  ;;  %v3971_v33 = vld [vmem:[#allocation14_spill] sm:$0xff]  ;;  %v3974_v45 = vld [vmem:[#allocation17_spill] sm:$0xff] }
 0x1e5   : > { %v2564_v51 = vpop.f32.mrf.mxu0  ;;  %2075 = vst.msk [vmem:[%s3775_s10] sm:$0xff] %vm1175_vm5, %v2059_v48  ;;  %v2062_v9 = vadd.f32 %v3763_v41, %v2039_v17  ;;  %v2037_v50 = vadd.f32 %v1976_v19, %v1815_v0  ;;  %v2517_v30 = vadd.f32 %v3972_v62, %v3971_v33  ;;  %v2456_v29 = vadd.f32 %v3974_v45, %v3973_v3 }
 0x1e6   : > { %v2583_v6 = vpop.f32.mrf.mxu1  ;;  %v1839_v4 = vadd.f32 %v2564_v51, %v1742_v61  ;;  %v1771_v19 = vadd.f32 %v2523_v57, %v1674_v44  ;;  %v2526_v61 = vadd.f32 %v3749_v53, %v3743_v8 }
 0x1e7   : > { %v1830_v5 = vpop.f32.mrf.mxu0  ;;  %2078 = vst.msk [vmem:[%s3775_s10 + $0x18] sm:$0xff] %vm1175_vm5, %v2062_v9  ;;  %v2060_v54 = vadd.f32 %v3763_v41, %v2037_v50  ;;  %v2042_v59 = vadd.f32 %v2583_v6, %v1836_v38  ;;  %v1669_v15 = vadd.f32 %v2456_v29, %v3729_v60 }
 0x1e8   : > { %v1989_v42 = vpop.f32.mrf.mxu1  ;;  %v1831_v18 = vadd.f32 %v1830_v5, %v1734_v24  ;;  %v3975_v5 = vld [vmem:[#allocation18_spill] sm:$0xff]  ;;  %v1763_v24 = vadd.f32 %v2517_v30, %v1666_v11 }
 0x1e9   : > { %v2567_v26 = vpop.f32.mrf.mxu0  ;;  %2076 = vst.msk [vmem:[%s3775_s10 + $0x8] sm:$0xff] %vm1175_vm5, %v2060_v54  ;;  %v2065_v13 = vadd.f32 %v3763_v41, %v2042_v59  ;;  %v2040_v23 = vadd.f32 %v1989_v42, %v1828_v2  ;;  %v2520_v10 = vadd.f32 %v3976_v12, %v3975_v5  ;;  %v1774_v42 = vadd.f32 %v2526_v61, %v1677_v27 }
 0x1ea   : > { %v2584_v22 = vpop.f32.mrf.mxu1  ;;  %v1852_v25 = vadd.f32 %v2567_v26, %v1755_v40 }
 0x1eb   : > { %v1843_v52 = vpop.f32.mrf.mxu0  ;;  %2081 = vst.msk [vmem:[%s3775_s10 + $0x30] sm:$0xff] %vm1175_vm5, %v2065_v13  ;;  %v2063_v1 = vadd.f32 %v3763_v41, %v2040_v23  ;;  %v2043_v7 = vadd.f32 %v2584_v22, %v1839_v4 }
 0x1ec   : > { %v1992_v56 = vpop.f32.mrf.mxu1  ;;  %v1844_v35 = vadd.f32 %v1843_v52, %v1747_v37 }
 0x1ed   : > { %v2568_v39 = vpop.f32.mrf.mxu0  ;;  %2079 = vst.msk [vmem:[%s3775_s10 + $0x20] sm:$0xff] %vm1175_vm5, %v2063_v1  ;;  %v2066_v43 = vadd.f32 %v3763_v41, %v2043_v7  ;;  %v2041_v47 = vadd.f32 %v1992_v56, %v1831_v18  ;;  %v1766_v18 = vadd.f32 %v2520_v10, %v1669_v15 }
 0x1ee   : > { %v2587_v49 = vpop.f32.mrf.mxu1  ;;  %v1855_v38 = vadd.f32 %v2568_v39, %v1758_v36 }
 0x1ef   : > { %v1846_v0 = vpop.f32.mrf.mxu0  ;;  %2082 = vst.msk [vmem:[%s3775_s10 + $0x38] sm:$0xff] %vm1175_vm5, %v2066_v43  ;;  %v2064_v48 = vadd.f32 %v3763_v41, %v2041_v47  ;;  %v2046_v17 = vadd.f32 %v2587_v49, %v1852_v25 }
 0x1f0   : > { %v2005_v34 = vpop.f32.mrf.mxu1  ;;  %v1847_v50 = vadd.f32 %v1846_v0, %v1750_v16 }
 0x1f1   : > { %v2571_v51 = vpop.f32.mrf.mxu0  ;;  %2080 = vst.msk [vmem:[%s3775_s10 + $0x28] sm:$0xff] %vm1175_vm5, %v2064_v48  ;;  %v2069_v58 = vadd.f32 %v3763_v41, %v2046_v17  ;;  %v2044_v9 = vadd.f32 %v2005_v34, %v1844_v35 }
 0x1f2   : > { %v2588_v6 = vpop.f32.mrf.mxu1  ;;  %v1868_v54 = vadd.f32 %v2571_v51, %v1771_v19 }
 0x1f3   : > { %v1859_v2 = vpop.f32.mrf.mxu0  ;;  %2085 = vst.msk [vmem:[%s3775_s10 + $0x50] sm:$0xff] %vm1175_vm5, %v2069_v58  ;;  %v2067_v8 = vadd.f32 %v3763_v41, %v2044_v9  ;;  %v2047_v53 = vadd.f32 %v2588_v6, %v1855_v38 }
 0x1f4   : > { %v2008_v4 = vpop.f32.mrf.mxu1  ;;  %v1860_v63 = vadd.f32 %v1859_v2, %v1763_v24 }
 0x1f5   : > { %v2572_v59 = vpop.f32.mrf.mxu0  ;;  %2083 = vst.msk [vmem:[%s3775_s10 + $0x40] sm:$0xff] %vm1175_vm5, %v2067_v8  ;;  %v2070_v26 = vadd.f32 %v3763_v41, %v2047_v53  ;;  %v2045_v21 = vadd.f32 %v2008_v4, %v1847_v50 }
 0x1f6   : > { %v2591_v60 = vpop.f32.mrf.mxu1  ;;  %v1871_v23 = vadd.f32 %v2572_v59, %v1774_v42 }
 0x1f7   : > { %v1862_v40 = vpop.f32.mrf.mxu0  ;;  %2086 = vst.msk [vmem:[%s3775_s10 + $0x58] sm:$0xff] %vm1175_vm5, %v2070_v26  ;;  %v2068_v31 = vadd.f32 %v3763_v41, %v2045_v21  ;;  %v2050_v13 = vadd.f32 %v2591_v60, %v1868_v54 }
 0x1f8   : > { %v2021_v52 = vpop.f32.mrf.mxu1  ;;  %v1863_v46 = vadd.f32 %v1862_v40, %v1766_v18 }
 0x1f9   : > { %2084 = vst.msk [vmem:[%s3775_s10 + $0x48] sm:$0xff] %vm1175_vm5, %v2068_v31  ;;  %v2073_v20 = vadd.f32 %v3763_v41, %v2050_v13  ;;  %v2048_v55 = vadd.f32 %v2021_v52, %v1860_v63 }
 0x1fa   : > { %v2592_v22 = vpop.f32.mrf.mxu1 }
 0x1fb   : > { %2089 = vst.msk [vmem:[%s3775_s10 + $0x70] sm:$0xff] %vm1175_vm5, %v2073_v20  ;;  %v2071_v1 = vadd.f32 %v3763_v41, %v2048_v55  ;;  %v2051_v7 = vadd.f32 %v2592_v22, %v1871_v23 }
 0x1fc   : > { %v2024_v25 = vpop.f32.mrf.mxu1 }
 0x1fd   : > { %2087 = vst.msk [vmem:[%s3775_s10 + $0x60] sm:$0xff] %vm1175_vm5, %v2071_v1  ;;  %v2074_v37 = vadd.f32 %v3763_v41, %v2051_v7  ;;  %v2049_v39 = vadd.f32 %v2024_v25, %v1863_v46 }
 0x1ff   : > { %2090 = vst.msk [vmem:[%s3775_s10 + $0x78] sm:$0xff] %vm1175_vm5, %v2074_v37  ;;  %v2072_v44 = vadd.f32 %v3763_v41, %v2049_v39 }
 0x201   : > { %2088 = vst.msk [vmem:[%s3775_s10 + $0x68] sm:$0xff] %vm1175_vm5, %v2072_v44 }
 0x202   : > { %2798 = shalt.err (!%p2795_p13)
}
 0x203   : > { %s2799_s23 = scalar_lea.hbm %s3861_s28, 2048  ;;  %s2803_s20 = scalar_lea.hbm %s3977_s25, 8192 }
 0x204   : > { %p2800_p0 = scmp.ne.s32.totalorder %s3861_s28, %s2799_s23  ;;  %p2804_p4 = scmp.lt.s32.totalorder %s3861_s28, %s3977_s25 }
 0x205   : > { %p2805_p5 = scmp.lt.s32.totalorder %s2803_s20, %s2799_s23 }
 0x206   : > { %p2801_p1 = pnand %p2800_p0, %p2989_p3 }
 0x207   : > { %p2806_p6 = por %p2805_p5, %p2804_p4 }
 0x208   : > { %p2802_p2 = pneg %p2801_p1 }
 0x20a   : > { %p2807_p7 = pnand %p2806_p6, %p2802_p2 }
 0x20c   : > { %2810 = shalt.err (!%p2807_p7)
}
 0x20d   : > { %s2881_s11 = smov 128   ;;  %s2882_s21 = smov 8  }
 0x20e   : > { %2593 = dma.vmem_to_hbm [thread:$0]  (%p2989_p3), %s3863_s17, 2048, %s3861_s28, %s3872_s22, %s2881_s11, %s2881_s11, %s2882_s21  }
 0x20f PF: > { %s3978_s30 = sld [smem:[#allocation9_spill]] }
 0x210   : > { %s3979_s16 = sld [smem:[#allocation5_spill]] }
 0x215   : > { %p2599_p9 = scmp.ge.s32.totalorder %s3978_s30, 2 }
 0x216   : > { %s2123_s27 = sand.u32 1, %s3979_s16  }
 0x217   : > { %p2596_p10 = pnand %p2599_p9, %p2998_p8  ;;  %s2124_s18 = scalar_lea.sflag [#allocation3], %s2123_s27 }
 0x219   : > { %p2597_p11 = pneg %p2596_p10 }
 0x21b   : > { %2844 = dma.done.wait (%p2597_p11), %s2124_s18, 2048  }
 0x21c   : > { %2846 = vsyncadd (%p2597_p11), %s2124_s18, 4294965248  ;;  %s23_s20 = sadd.s32 1, %s3978_s30   ;;  %s3981_s15 = sld [smem:[#allocation6_spill]] }
 0x21d   : > { %p20_p12 = scmp.ge.s32.totalorder %s23_s20, 6   ;;  %s3982_s19 = sld [smem:[#allocation13_spill]] }
 0x21e   : > { %s3983_s16 = sld [smem:[#allocation7_spill]]  ;;  %s3987_s13 = smov %s2853_s14 }
 0x21f   : > { %s3984_s17 = sld [smem:[#allocation8_spill]] }
 0x220   : > { %s3985_s18 = sld [smem:[#allocation10_spill]] }
 0x221   : > { %s3986_s26 = sld [smem:[#allocation11_spill]] }
 0x222   : > { %s3988_s14 = smov %s3981_s15 }
 0x223   : > { %s3989_s15 = smov %s3982_s19  ;;  %22 = sbr.rel (!%p20_p12) target bundleno = 8 (0x8), region = 110 }
 0x227   : > { %s3990_s19 = smov %s3986_s26 }
 0x228   :  { %2129 = vsyncpa [#allocation3], 1 }
 0x229   :  { %2131 = vsyncpa [#allocation3 + $0x1], 1 }

</bundles_post_ra>
